<compile_context>
chip_gen: v5e
topology: v5e:2x2
jax: 0.10.0
libtpu: 0.0.40
codegen_flags: <defaults>
</compile_context>

<pallas_src>
import functools

import numpy as np
import jax
import jax.numpy as jnp
from jax import lax
from jax.experimental import pallas as pl
from jax.experimental.pallas import tpu as pltpu

EPS = 1e-5                      # BatchNorm2d default eps
NEG_SLOPE = 0.01                # LeakyReLU default negative_slope
MATMUL_DTYPE = jnp.bfloat16     # MXU operand / intermediate-activation dtype (f32 accumulate)


def _round_up(x, m):
    return (x + m - 1) // m * m


@functools.lru_cache(maxsize=1)
def _vmem_limit():
    """Generation-aware scoped-VMEM limit: ~75% of physical, capped at 100 MiB."""
    try:
        cap = int(pltpu.get_tpu_info().vmem_capacity_bytes)
    except Exception:
        cap = 64 * 1024 * 1024          # conservative v7x-sized fallback
    return int(min(cap * 3 // 4, 100 * 1024 * 1024))


# ----------------------------------------------------------------------------
# Pallas kernels
# ----------------------------------------------------------------------------
def matmul_stats_kernel(w_ref, p_ref, y_ref, sum_ref, sq_ref):
    """Pass 1 of conv/1x1 + BatchNorm: y = W @ P for one M-tile (stored bf16), plus per-channel
    sum / sum-of-squares (from the pre-cast f32 y) accumulated directly into the per-chunk
    output blocks, which stay resident across the inner 'arbitrary' axis."""
    t = pl.program_id(1)
    y = jnp.dot(w_ref[...], p_ref[...], preferred_element_type=jnp.float32)
    y_ref[...] = y.astype(y_ref.dtype)

    @pl.when(t == 0)
    def _init():
        sum_ref[...] = jnp.zeros_like(sum_ref)
        sq_ref[...] = jnp.zeros_like(sq_ref)

    sum_ref[...] += jnp.sum(y, axis=1, keepdims=True)[None]
    sq_ref[...] += jnp.sum(y * y, axis=1, keepdims=True)[None]


def affine_lrelu_kernel(y_ref, sc_ref, sh_ref, o_ref):
    """Pass 2: per-channel affine (folded batch-stat BatchNorm) + LeakyReLU, tiled along M."""
    z = y_ref[...].astype(jnp.float32) * sc_ref[...] + sh_ref[...]
    o_ref[...] = jnp.where(z >= 0, z, NEG_SLOPE * z).astype(o_ref.dtype)


def affine_lrelu_add_kernel(y_ref, sc_ref, sh_ref, r_ref, o_ref):
    """Pass 2 with the FFT-branch result fused into the final store."""
    z = y_ref[...].astype(jnp.float32) * sc_ref[...] + sh_ref[...]
    z = jnp.where(z >= 0, z, NEG_SLOPE * z) + r_ref[...]
    o_ref[...] = z.astype(o_ref.dtype)


def upsample2x_kernel(x_ref, ah_ref, awt_ref, o_ref, *, pb, h, w, ho, wo):
    """Bilinear x2 upsample of a block of pb planes (align_corners=True):
       width pass  : one (pb*H, W) @ (W, Wo) matmul,
       relayout    : (pb, H, Wo) -> (H, pb*Wo)  (planes on lanes),
       height pass : one lane-dense (Ho, H) @ (H, pb*Wo) matmul,
       store       : relayout to a lane/sublane-dense (pb, Ho*Wo) block."""
    t = jnp.dot(x_ref[...], awt_ref[...], preferred_element_type=jnp.float32)   # (pb*h, wo)
    t = jnp.transpose(t.reshape(pb, h, wo), (1, 0, 2)).reshape(h, pb * wo)
    y = jnp.dot(ah_ref[...], t.astype(ah_ref.dtype),
                preferred_element_type=jnp.float32)                             # (ho, pb*wo)
    y = jnp.transpose(y.reshape(ho, pb, wo), (1, 0, 2)).reshape(pb, ho * wo)
    o_ref[...] = y


# ----------------------------------------------------------------------------
# pallas_call wrappers
# ----------------------------------------------------------------------------
def _matmul_stats(w, feats, tm, n_chunks, tpc):
    """Pass 1: grid = (chunk, tile); chunk axis is 'parallel' (v7x megacore), tile axis is the
    sequential BN reduction.  Partial per-chunk stats come out as (n_chunks, Cout, 1)."""
    cout, k = w.shape
    m_pad = feats.shape[1]
    return pl.pallas_call(
        matmul_stats_kernel,
        out_shape=(jax.ShapeDtypeStruct((cout, m_pad), MATMUL_DTYPE),
                   jax.ShapeDtypeStruct((n_chunks, cout, 1), jnp.float32),
                   jax.ShapeDtypeStruct((n_chunks, cout, 1), jnp.float32)),
        grid=(n_chunks, tpc),
        in_specs=[pl.BlockSpec((cout, k), lambda c, t: (0, 0)),
                  # NOTE: if profiling shows exposed DMA here, add pipeline_mode=pl.Buffered(3)
                  pl.BlockSpec((k, tm), lambda c, t: (0, c * tpc + t))],
        out_specs=(pl.BlockSpec((cout, tm), lambda c, t: (0, c * tpc + t)),
                   pl.BlockSpec((1, cout, 1), lambda c, t: (c, 0, 0)),
                   pl.BlockSpec((1, cout, 1), lambda c, t: (c, 0, 0))),
        compiler_params=pltpu.CompilerParams(
            dimension_semantics=("parallel", "arbitrary"),
            vmem_limit_bytes=_vmem_limit()),
    )(w, feats)


def _affine_lrelu(y, scale, shift, tm, out_dtype, residual=None):
    cout, m_pad = y.shape
    grid = (m_pad // tm,)
    cp = pltpu.CompilerParams(dimension_semantics=("parallel",),
                              vmem_limit_bytes=_vmem_limit())
    tile = pl.BlockSpec((cout, tm), lambda t: (0, t))
    vec = pl.BlockSpec((cout, 1), lambda t: (0, 0))
    if residual is None:
        return pl.pallas_call(
            affine_lrelu_kernel,
            out_shape=jax.ShapeDtypeStruct((cout, m_pad), out_dtype),
            grid=grid, in_specs=[tile, vec, vec], out_specs=tile,
            compiler_params=cp,
        )(y, scale, shift)
    return pl.pallas_call(
        affine_lrelu_add_kernel,
        out_shape=jax.ShapeDtypeStruct((cout, m_pad), out_dtype),
        grid=grid, in_specs=[tile, vec, vec, tile], out_specs=tile,
        compiler_params=cp,
    )(y, scale, shift, residual)


def _bn_scale_shift(s, q, count, gamma, beta):
    """Fold batch-stat BatchNorm (biased variance, PyTorch training forward) into an affine,
    combining the per-chunk partial sums in f32."""
    total = jnp.sum(s[:, :, 0], axis=0)
    total_sq = jnp.sum(q[:, :, 0], axis=0)
    mean = total / count
    var = jnp.maximum(total_sq / count - mean * mean, 0.0)
    inv = gamma * lax.rsqrt(var + EPS)
    return inv[:, None], (beta - mean * inv)[:, None]


def _linear_bn_lrelu(feats_km, w_ck, gamma, beta, tile_m, out_dtype, residual=None):
    """(conv-as-matmul) -> BatchNorm(batch stats) -> LeakyReLU on (K, M) features -> (Cout, M).
    Two tiled, pipelined Pallas passes with an exact cross-tile/cross-chunk BN reduction."""
    k, m = feats_km.shape
    cout = w_ck.shape[0]
    cout_p = _round_up(cout, 8)                        # sublane-dense output channel dim

    tm = min(_round_up(tile_m, 128), _round_up(m, 128))
    # Keep the double-buffered (K, tm) bf16 input block comfortably inside VMEM.
    tm_cap = max(128, (8 * 1024 * 1024) // max(k * 2, 1) // 128 * 128)
    tm = max(128, min(tm, tm_cap))

    total = (m + tm - 1) // tm
    n_chunks = 2 if total >= 2 else 1                  # v7x: both TCs run pass 1
    tpc = (total + n_chunks - 1) // n_chunks
    m_pad = tm * tpc * n_chunks

    feats = feats_km.astype(MATMUL_DTYPE)
    if m_pad > m:
        # zero columns produce zero conv output (no bias in pass 1) -> stats stay exact
        feats = jnp.pad(feats, ((0, 0), (0, m_pad - m)))
    w = w_ck.astype(MATMUL_DTYPE)
    if cout_p > cout:
        w = jnp.pad(w, ((0, cout_p - cout), (0, 0)))
        gamma = jnp.pad(gamma, (0, cout_p - cout), constant_values=1.0)
        beta = jnp.pad(beta, (0, cout_p - cout))

    y, s, q = _matmul_stats(w, feats, tm, n_chunks, tpc)
    scale, shift = _bn_scale_shift(s, q, float(m), gamma, beta)
    if residual is not None:
        residual = jnp.pad(residual, ((0, cout_p - cout), (0, m_pad - m)))
    out = _affine_lrelu(y, scale, shift, tm, out_dtype, residual)
    return out[:cout, :m]


def _im2col_3x3(x_cnhw):
    """(C, N, H, W) -> (9*C, N*H*W) patches (bf16), rows ordered (c, dy*3+dx) to match
    torch Conv2d weight.reshape(Cout, Cin*9)."""
    c, n, h, w = x_cnhw.shape
    xp = jnp.pad(x_cnhw, ((0, 0), (0, 0), (1, 1), (1, 1)))
    taps = [xp[:, :, dy:dy + h, dx:dx + w] for dy in range(3) for dx in range(3)]
    return jnp.stack(taps, axis=1).reshape(c * 9, n * h * w)


def conv3x3_bn_lrelu(x_cnhw, w_oihw, gamma, beta, tile_m, out_dtype, residual=None):
    c, n, h, w = x_cnhw.shape
    cout = w_oihw.shape[0]
    feats = _im2col_3x3(x_cnhw.astype(MATMUL_DTYPE))          # bf16 patches (9C, M)
    wmat = w_oihw.reshape(cout, c * 9)
    out = _linear_bn_lrelu(feats, wmat, gamma, beta, tile_m, out_dtype, residual)
    return out.reshape(cout, n, h, w)


# ----------------------------------------------------------------------------
# Bilinear x2 upsample (align_corners=True, as in the module)
# ----------------------------------------------------------------------------
def upsample_matrix(n_in, n_out):
    a = np.zeros((n_out, n_in), np.float64)
    for i in range(n_out):
        src = i * (n_in - 1) / (n_out - 1) if n_out > 1 else 0.0
        lo = min(int(np.floor(src)), max(n_in - 2, 0))
        frac = src - lo
        a[i, lo] += 1.0 - frac
        a[i, min(lo + 1, n_in - 1)] += frac
    return jnp.asarray(a, jnp.float32)


def _plane_block(p, hw_out):
    """Planes per grid step: a multiple of 8 (sublane-dense (pb, Ho*Wo) output blocks) that
    divides the zero-padded plane count and keeps per-step VMEM bounded."""
    cap = max(8, min(64, (4 * 1024 * 1024) // max(hw_out * 4, 1) // 8 * 8))
    if p <= 8:
        return p, p
    p8 = _round_up(p, 8)
    pb = 8
    for kk in range(cap // 8, 0, -1):
        if p8 % (8 * kk) == 0:
            pb = 8 * kk
            break
    return pb, p8


def bilinear_upsample_x2_cnhw(x_nchw):
    """(N, C, H, W) f32 -> (C, N, 2H, 2W) f32, bilinear x2 with align_corners=True."""
    n, c, h, w = x_nchw.shape
    ho, wo = 2 * h, 2 * w
    p = c * n
    planes = jnp.transpose(x_nchw, (1, 0, 2, 3)).reshape(p, h, w)
    pb, p_pad = _plane_block(p, ho * wo)
    if p_pad > p:
        planes = jnp.pad(planes, ((0, p_pad - p), (0, 0), (0, 0)))
    planes2d = planes.reshape(p_pad * h, w).astype(MATMUL_DTYPE)
    ah = upsample_matrix(h, ho).astype(MATMUL_DTYPE)          # (Ho, H)
    awt = upsample_matrix(w, wo).T.astype(MATMUL_DTYPE)       # (W, Wo)

    kernel = functools.partial(upsample2x_kernel, pb=pb, h=h, w=w, ho=ho, wo=wo)
    out = pl.pallas_call(
        kernel,
        out_shape=jax.ShapeDtypeStruct((p_pad, ho * wo), jnp.float32),
        grid=(p_pad // pb,),
        in_specs=[pl.BlockSpec((pb * h, w), lambda i: (i, 0)),
                  pl.BlockSpec((ho, h), lambda i: (0, 0)),
                  pl.BlockSpec((w, wo), lambda i: (0, 0))],
        out_specs=pl.BlockSpec((pb, ho * wo), lambda i: (i, 0)),
        compiler_params=pltpu.CompilerParams(
            dimension_semantics=("parallel",),
            vmem_limit_bytes=_vmem_limit()),
    )(planes2d, ah, awt)
    return out[:p].reshape(c, n, ho, wo)


# ----------------------------------------------------------------------------
# DoubleConv / Up forward
# ----------------------------------------------------------------------------
def double_conv(x_cnhw, p, tile_m):
    """DoubleConv.forward on a (C, N, H, W) f32 activation: (conv3x3->BN->LReLU)x2 spatial
    branch plus rFFT -> (1x1 conv->BN->LReLU)x2 -> irFFT branch; the branch sum is fused into
    the final Pallas pass."""
    c, n, h, w = x_cnhw.shape
    cout = p['w2'].shape[0]

    # ---- FFT branch (spectrum MLP in Pallas; FFTs themselves are XLA) ----
    spec = jnp.fft.rfft2(x_cnhw, axes=(-2, -1), norm='ortho')      # (C, N, H, Wf) complex64
    wf = spec.shape[-1]
    feat = jnp.concatenate([spec.real, spec.imag], axis=0).reshape(2 * c, n * h * wf)
    c2m = p['fw1'].shape[0]
    c2o = p['fw2'].shape[0]
    f1 = _linear_bn_lrelu(feat, p['fw1'].reshape(c2m, 2 * c), p['fg1'], p['fbt1'],
                          tile_m, MATMUL_DTYPE)
    f2 = _linear_bn_lrelu(f1, p['fw2'].reshape(c2o, c2m), p['fg2'], p['fbt2'],
                          tile_m, jnp.float32)
    f2 = f2.reshape(c2o, n, h, wf)
    y_cplx = f2[:c2o // 2] + 1j * f2[c2o // 2:]
    fft_spatial = jnp.fft.irfft2(y_cplx, s=(h, w), axes=(-2, -1), norm='ortho')  # (Cout,N,H,W)

    # ---- spatial branch; FFT result fused into conv2's pass-2 kernel ----
    act1 = conv3x3_bn_lrelu(x_cnhw, p['w1'], p['g1'], p['bt1'], tile_m, MATMUL_DTYPE)
    out = conv3x3_bn_lrelu(act1, p['w2'], p['g2'], p['bt2'], tile_m, jnp.float32,
                           residual=fft_spatial.reshape(cout, n * h * w))
    return out                                                     # (Cout, N, H, W) f32


def up_forward(x1, x2, params, tile_m=2048):
    """Up.forward(x1, x2): bilinear x2 upsample, pad, concat([x2, x1]), DoubleConv."""
    x1u = bilinear_upsample_x2_cnhw(x1)                            # (C1, N, 2H, 2W) f32
    dy = x2.shape[2] - x1u.shape[2]
    dx = x2.shape[3] - x1u.shape[3]
    x1p = jnp.pad(x1u, ((0, 0), (0, 0), (dy // 2, dy - dy // 2), (dx // 2, dx - dx // 2)))
    # Single NCHW -> (C, N, H, W) relayout for the skip connection; the whole DoubleConv then
    # runs in the channels-on-sublanes / pixels-on-lanes layout with no more transposes.
    x_cnhw = jnp.concatenate([jnp.transpose(x2, (1, 0, 2, 3)), x1p], axis=0)
    out = double_conv(x_cnhw, params, tile_m)
    return jnp.transpose(out, (1, 0, 2, 3))


# ----------------------------------------------------------------------------
# Pure-JAX references (verification of the Pallas kernels)
# ----------------------------------------------------------------------------
def ref_up_matched(x1, x2, p):
    """jnp reimplementation mirroring the Pallas algorithm's bf16 rounding points (MXU
    operands, pass-1 output, conv1/fft1 activations, bf16 upsample) so kernel-plumbing errors
    are isolated from bf16 rounding noise."""
    bf = MATMUL_DTYPE
    n, c1, h1, w1 = x1.shape
    ah = upsample_matrix(h1, 2 * h1).astype(bf)
    awt = upsample_matrix(w1, 2 * w1).T.astype(bf)
    t = jnp.einsum('nchw,wp->nchp', x1.astype(bf), awt,
                   preferred_element_type=jnp.float32).astype(bf)
    x1u = jnp.einsum('oh,nchp->ncop', ah, t, preferred_element_type=jnp.float32)
    dy = x2.shape[2] - x1u.shape[2]
    dx = x2.shape[3] - x1u.shape[3]
    x1p = jnp.pad(x1u, ((0, 0), (0, 0), (dy // 2, dy - dy // 2), (dx // 2, dx - dx // 2)))
    x = jnp.concatenate([x2, x1p], axis=1)
    _, _, h, w = x.shape

    def conv_bn_lrelu(inp, wgt, g, bt, pad, out_bf16):
        y = lax.conv_general_dilated(inp.astype(bf), wgt.astype(bf), (1, 1),
                                     ((pad, pad), (pad, pad)),
                                     dimension_numbers=('NCHW', 'OIHW', 'NCHW'),
                                     preferred_element_type=jnp.float32)
        mean = jnp.mean(y, axis=(0, 2, 3), keepdims=True)
        var = jnp.mean((y - mean) ** 2, axis=(0, 2, 3), keepdims=True)
        scale = g[None, :, None, None] * lax.rsqrt(var + EPS)
        shift = bt[None, :, None, None] - mean * scale
        z = y.astype(bf).astype(jnp.float32) * scale + shift
        z = jnp.where(z >= 0, z, NEG_SLOPE * z)
        if out_bf16:
            z = z.astype(bf).astype(jnp.float32)
        return z

    yf = jnp.fft.rfft2(x, axes=(-2, -1), norm='ortho')
    yf = jnp.concatenate([yf.real, yf.imag], axis=1)
    hf = conv_bn_lrelu(yf, p['fw1'], p['fg1'], p['fbt1'], 0, True)
    hf = conv_bn_lrelu(hf, p['fw2'], p['fg2'], p['fbt2'], 0, False)
    co = hf.shape[1] // 2
    ysp = jnp.fft.irfft2(hf[:, :co] + 1j * hf[:, co:], s=(h, w), axes=(-2, -1), norm='ortho')

    m = conv_bn_lrelu(x, p['w1'], p['g1'], p['bt1'], 1, True)
    m = conv_bn_lrelu(m, p['w2'], p['g2'], p['bt2'], 1, False)
    return m + ysp


def ref_up_f32(x1, x2, p):
    """Straight f32 PyTorch-equivalent math (with conv biases), loose sanity reference."""
    n, c1, h1, w1 = x1.shape
    ah = upsample_matrix(h1, 2 * h1)
    aw = upsample_matrix(w1, 2 * w1)
    x1u = jnp.einsum('oh,nchw->ncow', ah, x1)
    x1u = jnp.einsum('pw,ncow->ncop', aw, x1u)
    dy = x2.shape[2] - x1u.shape[2]
    dx = x2.shape[3] - x1u.shape[3]
    x1p = jnp.pad(x1u, ((0, 0), (0, 0), (dy // 2, dy - dy // 2), (dx // 2, dx - dx // 2)))
    x = jnp.concatenate([x2, x1p], axis=1)
    _, _, h, w = x.shape

    def conv_bn_lrelu(inp, wgt, b, g, bt, pad):
        y = lax.conv_general_dilated(inp, wgt, (1, 1), ((pad, pad), (pad, pad)),
                                     dimension_numbers=('NCHW', 'OIHW', 'NCHW'))
        y = y + b[None, :, None, None]
        mean = jnp.mean(y, axis=(0, 2, 3), keepdims=True)
        var = jnp.mean((y - mean) ** 2, axis=(0, 2, 3), keepdims=True)
        z = g[None, :, None, None] * (y - mean) * lax.rsqrt(var + EPS) + bt[None, :, None, None]
        return jnp.where(z >= 0, z, NEG_SLOPE * z)

    yf = jnp.fft.rfft2(x, axes=(-2, -1), norm='ortho')
    yf = jnp.concatenate([yf.real, yf.imag], axis=1)
    hf = conv_bn_lrelu(yf, p['fw1'], p['fb1'], p['fg1'], p['fbt1'], 0)
    hf = conv_bn_lrelu(hf, p['fw2'], p['fb2'], p['fg2'], p['fbt2'], 0)
    co = hf.shape[1] // 2
    ysp = jnp.fft.irfft2(hf[:, :co] + 1j * hf[:, co:], s=(h, w), axes=(-2, -1), norm='ortho')

    m = conv_bn_lrelu(x, p['w1'], p['b1'], p['g1'], p['bt1'], 1)
    m = conv_bn_lrelu(m, p['w2'], p['b2'], p['g2'], p['bt2'], 1)
    return m + ysp


# ----------------------------------------------------------------------------
# Deterministic parameter init (shapes from Up(in_channels, out_channels, bilinear=True))
# ----------------------------------------------------------------------------
def init_params(key, in_ch, out_ch):
    mid = in_ch // 2
    ks = jax.random.split(key, 16)

    def conv_w(k, co, ci, kh, kw):
        return jax.random.normal(k, (co, ci, kh, kw), jnp.float32) / np.sqrt(ci * kh * kw)

    def vec(k, nn, scale=0.1):
        return scale * jax.random.normal(k, (nn,), jnp.float32)

    p = {}
    # main: conv3x3(in->mid), BN(mid), conv3x3(mid->out), BN(out)
    p['w1'] = conv_w(ks[0], mid, in_ch, 3, 3);  p['b1'] = vec(ks[1], mid)
    p['g1'] = 1.0 + vec(ks[2], mid);            p['bt1'] = vec(ks[3], mid)
    p['w2'] = conv_w(ks[4], out_ch, mid, 3, 3); p['b2'] = vec(ks[5], out_ch)
    p['g2'] = 1.0 + vec(ks[6], out_ch);         p['bt2'] = vec(ks[7], out_ch)
    # main_fft: conv1x1(2in->2mid), BN(2mid), conv1x1(2mid->2out), BN(2out)
    p['fw1'] = conv_w(ks[8], 2 * mid, 2 * in_ch, 1, 1);   p['fb1'] = vec(ks[9], 2 * mid)
    p['fg1'] = 1.0 + vec(ks[10], 2 * mid);                p['fbt1'] = vec(ks[11], 2 * mid)
    p['fw2'] = conv_w(ks[12], 2 * out_ch, 2 * mid, 1, 1); p['fb2'] = vec(ks[13], 2 * out_ch)
    p['fg2'] = 1.0 + vec(ks[14], 2 * out_ch);             p['fbt2'] = vec(ks[15], 2 * out_ch)
    return p


if __name__ == "__main__":
    key = jax.random.PRNGKey(0)
    k1, k2, kp = jax.random.split(key, 3)

    in_ch, out_ch = 8, 8            # Up(8, 8, bilinear=True): mid = 4
    n = 2
    # x1: deeper feature map (in_ch//2 channels, half spatial); x2: skip connection.
    x1 = jax.random.normal(k1, (n, in_ch // 2, 8, 8), jnp.float32)
    x2 = jax.random.normal(k2, (n, in_ch // 2, 16, 16), jnp.float32)
    params = init_params(kp, in_ch, out_ch)

    # tile_m=128 keeps this small demo multi-tile AND multi-chunk so the cross-tile BN
    # reduction and the 'parallel' chunk split are exercised; production shapes use the
    # 2048 default.
    fwd = jax.jit(functools.partial(up_forward, params=params, tile_m=128))
    out = jax.block_until_ready(fwd(x1, x2))
    assert out.shape == (n, out_ch, 16, 16), out.shape

    # Reference mirroring the kernel's bf16 rounding points -> tight check of kernel plumbing.
    ref_m = jax.block_until_ready(ref_up_matched(x1, x2, params))
    err_m = float(jnp.max(jnp.abs(out - ref_m)))
    # Full-f32 reference (with biases) -> loose sanity check on total bf16 rounding drift.
    ref_f = jax.block_until_ready(ref_up_f32(x1, x2, params))
    err_f = float(jnp.max(jnp.abs(out - ref_f)))

    assert err_m < 1e-2, f"max abs error vs precision-matched reference: {err_m}"
    assert err_f < 2e-1, f"max abs error vs f32 reference: {err_f}"

    print("KERNEL_OK")
</pallas_src>

<mosaic_0001>
module attributes {stable_mosaic.version = 11 : i64} {
  func.func @upsample2x_kernel(%arg0: i32, %arg1: memref<64x8xbf16, #tpu.memory_space<vmem>>, %arg2: memref<16x8xbf16, #tpu.memory_space<vmem>>, %arg3: memref<8x16xbf16, #tpu.memory_space<vmem>>, %arg4: memref<8x256xf32, #tpu.memory_space<vmem>>) attributes {dimension_semantics = [#tpu.dimension_semantics<parallel>], iteration_bounds = array<i64: 1>, scalar_prefetch = 0 : i64, scratch_operands = 0 : i64, tpu.core_type = #tpu.core_type<tc>, window_params = [{transform_indices = @transform_0, window_bounds = array<i64: 64, 8>}, {pipeline_mode = #tpu.pipeline_mode<synchronous>, transform_indices = @transform_1, window_bounds = array<i64: 16, 8>}, {pipeline_mode = #tpu.pipeline_mode<synchronous>, transform_indices = @transform_2, window_bounds = array<i64: 8, 16>}, {transform_indices = @transform_3, window_bounds = array<i64: 8, 256>}]} {
    %c0 = arith.constant 0 : index
    %c0_0 = arith.constant 0 : index
    %0 = vector.load %arg1[%c0, %c0_0] : memref<64x8xbf16, #tpu.memory_space<vmem>>, vector<64x8xbf16>
    %c0_1 = arith.constant 0 : index
    %c0_2 = arith.constant 0 : index
    %1 = vector.load %arg3[%c0_1, %c0_2] : memref<8x16xbf16, #tpu.memory_space<vmem>>, vector<8x16xbf16>
    %cst = arith.constant dense<0.000000e+00> : vector<64x16xf32>
    %2 = tpu.matmul %0, %1, %cst {dimension_numbers = #tpu.dot_dimension_numbers<[1], [0], [0], [1], [0, 0, 1, 1], [], []>} : vector<64x8xbf16>, vector<8x16xbf16>, vector<64x16xf32> -> vector<64x16xf32>
    %3 = vector.shape_cast %2 : vector<64x16xf32> to vector<8x8x16xf32>
    %4 = tpu.transpose %3, [1, 0, 2] : vector<8x8x16xf32> -> vector<8x8x16xf32>
    %5 = vector.shape_cast %4 : vector<8x8x16xf32> to vector<8x128xf32>
    %c0_3 = arith.constant 0 : index
    %c0_4 = arith.constant 0 : index
    %6 = vector.load %arg2[%c0_3, %c0_4] : memref<16x8xbf16, #tpu.memory_space<vmem>>, vector<16x8xbf16>
    %7 = arith.truncf %5 : vector<8x128xf32> to vector<8x128xbf16>
    %cst_5 = arith.constant dense<0.000000e+00> : vector<16x128xf32>
    %8 = tpu.matmul %6, %7, %cst_5 {dimension_numbers = #tpu.dot_dimension_numbers<[1], [0], [0], [1], [0, 0, 1, 1], [], []>} : vector<16x8xbf16>, vector<8x128xbf16>, vector<16x128xf32> -> vector<16x128xf32>
    %9 = vector.shape_cast %8 : vector<16x128xf32> to vector<16x8x16xf32>
    %10 = tpu.transpose %9, [1, 0, 2] : vector<16x8x16xf32> -> vector<8x16x16xf32>
    %11 = vector.shape_cast %10 : vector<8x16x16xf32> to vector<8x256xf32>
    %c0_6 = arith.constant 0 : index
    %c0_7 = arith.constant 0 : index
    %12 = vector.load %arg4[%c0_6, %c0_7] : memref<8x256xf32, #tpu.memory_space<vmem>>, vector<8x256xf32>
    tpu.vector_store %arg4[%c0_6, %c0_7], %11 {strides = array<i32>} : memref<8x256xf32, #tpu.memory_space<vmem>>, vector<8x256xf32>,
    return
  }
  func.func @transform_0(%arg0: i32) -> (i32, i32) {
    %c0_i32 = arith.constant 0 : i32
    %c0_i32_0 = arith.constant 0 : i32
    return %arg0, %c0_i32 : i32, i32
  }
  func.func @transform_1(%arg0: i32) -> (i32, i32) {
    %c0_i32 = arith.constant 0 : i32
    %c0_i32_0 = arith.constant 0 : i32
    %c0_i32_1 = arith.constant 0 : i32
    return %c0_i32, %c0_i32_0 : i32, i32
  }
  func.func @transform_2(%arg0: i32) -> (i32, i32) {
    %c0_i32 = arith.constant 0 : i32
    %c0_i32_0 = arith.constant 0 : i32
    %c0_i32_1 = arith.constant 0 : i32
    return %c0_i32, %c0_i32_0 : i32, i32
  }
  func.func @transform_3(%arg0: i32) -> (i32, i32) {
    %c0_i32 = arith.constant 0 : i32
    %c0_i32_0 = arith.constant 0 : i32
    return %arg0, %c0_i32 : i32, i32
  }
}

module attributes {stable_mosaic.version = 11 : i64} {
  func.func @matmul_stats_kernel(%arg0: i32, %arg1: i32, %arg2: memref<8x16xbf16, #tpu.memory_space<vmem>>, %arg3: memref<16x128xbf16, #tpu.memory_space<vmem>>, %arg4: memref<8x128xbf16, #tpu.memory_space<vmem>>, %arg5: memref<1x8x1xf32, #tpu.memory_space<vmem>>, %arg6: memref<1x8x1xf32, #tpu.memory_space<vmem>>) attributes {dimension_semantics = [#tpu.dimension_semantics<parallel>, #tpu.dimension_semantics<arbitrary>], iteration_bounds = array<i64: 2, 2>, scalar_prefetch = 0 : i64, scratch_operands = 0 : i64, tpu.core_type = #tpu.core_type<tc>, window_params = [{pipeline_mode = #tpu.pipeline_mode<synchronous>, transform_indices = @transform_0, window_bounds = array<i64: 8, 16>}, {transform_indices = @transform_1, window_bounds = array<i64: 16, 128>}, {transform_indices = @transform_2, window_bounds = array<i64: 8, 128>}, {transform_indices = @transform_3, window_bounds = array<i64: 1, 8, 1>}, {transform_indices = @transform_4, window_bounds = array<i64: 1, 8, 1>}]} {
    %c0 = arith.constant 0 : index
    %c0_0 = arith.constant 0 : index
    %0 = vector.load %arg2[%c0, %c0_0] : memref<8x16xbf16, #tpu.memory_space<vmem>>, vector<8x16xbf16>
    %c0_1 = arith.constant 0 : index
    %c0_2 = arith.constant 0 : index
    %1 = vector.load %arg3[%c0_1, %c0_2] : memref<16x128xbf16, #tpu.memory_space<vmem>>, vector<16x128xbf16>
    %cst = arith.constant dense<0.000000e+00> : vector<8x128xf32>
    %2 = tpu.matmul %0, %1, %cst {dimension_numbers = #tpu.dot_dimension_numbers<[1], [0], [0], [1], [0, 0, 1, 1], [], []>} : vector<8x16xbf16>, vector<16x128xbf16>, vector<8x128xf32> -> vector<8x128xf32>
    %3 = arith.truncf %2 : vector<8x128xf32> to vector<8x128xbf16>
    %c0_3 = arith.constant 0 : index
    %c0_4 = arith.constant 0 : index
    %4 = vector.load %arg4[%c0_3, %c0_4] : memref<8x128xbf16, #tpu.memory_space<vmem>>, vector<8x128xbf16>
    tpu.vector_store %arg4[%c0_3, %c0_4], %3 {strides = array<i32>} : memref<8x128xbf16, #tpu.memory_space<vmem>>, vector<8x128xbf16>,
    %c0_i32 = arith.constant 0 : i32
    %5 = arith.cmpi eq, %arg1, %c0_i32 : i32
    %6 = arith.extui %5 : i1 to i32
    %c0_i32_5 = arith.constant 0 : i32
    %7 = arith.cmpi ne, %6, %c0_i32_5 : i32
    scf.if %7 {
      %cst_20 = arith.constant 0.000000e+00 : f32
      %21 = vector.broadcast %cst_20 : f32 to vector<1x8x1xf32>
      %c0_21 = arith.constant 0 : index
      %c0_22 = arith.constant 0 : index
      %c0_23 = arith.constant 0 : index
      %22 = vector.load %arg5[%c0_21, %c0_22, %c0_23] : memref<1x8x1xf32, #tpu.memory_space<vmem>>, vector<1x8x1xf32>
      tpu.vector_store %arg5[%c0_21, %c0_22, %c0_23], %21 {strides = array<i32>} : memref<1x8x1xf32, #tpu.memory_space<vmem>>, vector<1x8x1xf32>,
      %cst_24 = arith.constant 0.000000e+00 : f32
      %23 = vector.broadcast %cst_24 : f32 to vector<1x8x1xf32>
      %c0_25 = arith.constant 0 : index
      %c0_26 = arith.constant 0 : index
      %c0_27 = arith.constant 0 : index
      %24 = vector.load %arg6[%c0_25, %c0_26, %c0_27] : memref<1x8x1xf32, #tpu.memory_space<vmem>>, vector<1x8x1xf32>
      tpu.vector_store %arg6[%c0_25, %c0_26, %c0_27], %23 {strides = array<i32>} : memref<1x8x1xf32, #tpu.memory_space<vmem>>, vector<1x8x1xf32>,
    } else {
    }
    %c0_6 = arith.constant 0 : index
    %c0_7 = arith.constant 0 : index
    %c0_8 = arith.constant 0 : index
    %8 = vector.load %arg5[%c0_6, %c0_7, %c0_8] : memref<1x8x1xf32, #tpu.memory_space<vmem>>, vector<1x8x1xf32>
    %cst_9 = arith.constant dense<0.000000e+00> : vector<8xf32>
    %9 = vector.multi_reduction <add>, %2, %cst_9 [1] : vector<8x128xf32> to vector<8xf32>
    %10 = vector.shape_cast %9 : vector<8xf32> to vector<8x1xf32>
    %11 = vector.shape_cast %10 : vector<8x1xf32> to vector<1x8x1xf32>
    %12 = arith.addf %8, %11 : vector<1x8x1xf32>
    %c0_10 = arith.constant 0 : index
    %c0_11 = arith.constant 0 : index
    %c0_12 = arith.constant 0 : index
    %13 = vector.load %arg5[%c0_10, %c0_11, %c0_12] : memref<1x8x1xf32, #tpu.memory_space<vmem>>, vector<1x8x1xf32>
    tpu.vector_store %arg5[%c0_10, %c0_11, %c0_12], %12 {strides = array<i32>} : memref<1x8x1xf32, #tpu.memory_space<vmem>>, vector<1x8x1xf32>,
    %c0_13 = arith.constant 0 : index
    %c0_14 = arith.constant 0 : index
    %c0_15 = arith.constant 0 : index
    %14 = vector.load %arg6[%c0_13, %c0_14, %c0_15] : memref<1x8x1xf32, #tpu.memory_space<vmem>>, vector<1x8x1xf32>
    %15 = arith.mulf %2, %2 : vector<8x128xf32>
    %cst_16 = arith.constant dense<0.000000e+00> : vector<8xf32>
    %16 = vector.multi_reduction <add>, %15, %cst_16 [1] : vector<8x128xf32> to vector<8xf32>
    %17 = vector.shape_cast %16 : vector<8xf32> to vector<8x1xf32>
    %18 = vector.shape_cast %17 : vector<8x1xf32> to vector<1x8x1xf32>
    %19 = arith.addf %14, %18 : vector<1x8x1xf32>
    %c0_17 = arith.constant 0 : index
    %c0_18 = arith.constant 0 : index
    %c0_19 = arith.constant 0 : index
    %20 = vector.load %arg6[%c0_17, %c0_18, %c0_19] : memref<1x8x1xf32, #tpu.memory_space<vmem>>, vector<1x8x1xf32>
    tpu.vector_store %arg6[%c0_17, %c0_18, %c0_19], %19 {strides = array<i32>} : memref<1x8x1xf32, #tpu.memory_space<vmem>>, vector<1x8x1xf32>,
    return
  }
  func.func @transform_0(%arg0: i32, %arg1: i32) -> (i32, i32) {
    %c0_i32 = arith.constant 0 : i32
    %c0_i32_0 = arith.constant 0 : i32
    %c0_i32_1 = arith.constant 0 : i32
    return %c0_i32, %c0_i32_0 : i32, i32
  }
  func.func @transform_1(%arg0: i32, %arg1: i32) -> (i32, i32) {
    %c2_i32 = arith.constant 2 : i32
    %0 = arith.muli %arg0, %c2_i32 : i32
    %1 = arith.addi %0, %arg1 : i32
    %c0_i32 = arith.constant 0 : i32
    %c0_i32_0 = arith.constant 0 : i32
    return %c0_i32, %1 : i32, i32
  }
  func.func @transform_2(%arg0: i32, %arg1: i32) -> (i32, i32) {
    %c2_i32 = arith.constant 2 : i32
    %0 = arith.muli %arg0, %c2_i32 : i32
    %1 = arith.addi %0, %arg1 : i32
    %c0_i32 = arith.constant 0 : i32
    %c0_i32_0 = arith.constant 0 : i32
    return %c0_i32, %1 : i32, i32
  }
  func.func @transform_3(%arg0: i32, %arg1: i32) -> (i32, i32, i32) {
    %c0_i32 = arith.constant 0 : i32
    %c0_i32_0 = arith.constant 0 : i32
    %c0_i32_1 = arith.constant 0 : i32
    return %arg0, %c0_i32, %c0_i32_0 : i32, i32, i32
  }
  func.func @transform_4(%arg0: i32, %arg1: i32) -> (i32, i32, i32) {
    %c0_i32 = arith.constant 0 : i32
    %c0_i32_0 = arith.constant 0 : i32
    %c0_i32_1 = arith.constant 0 : i32
    return %arg0, %c0_i32, %c0_i32_0 : i32, i32, i32
  }
}

module attributes {stable_mosaic.version = 11 : i64} {
  func.func @affine_lrelu_kernel(%arg0: i32, %arg1: memref<8x128xbf16, #tpu.memory_space<vmem>>, %arg2: memref<8x1xf32, #tpu.memory_space<vmem>>, %arg3: memref<8x1xf32, #tpu.memory_space<vmem>>, %arg4: memref<8x128xbf16, #tpu.memory_space<vmem>>) attributes {dimension_semantics = [#tpu.dimension_semantics<parallel>], iteration_bounds = array<i64: 4>, scalar_prefetch = 0 : i64, scratch_operands = 0 : i64, tpu.core_type = #tpu.core_type<tc>, window_params = [{transform_indices = @transform_0, window_bounds = array<i64: 8, 128>}, {pipeline_mode = #tpu.pipeline_mode<synchronous>, transform_indices = @transform_1, window_bounds = array<i64: 8, 1>}, {pipeline_mode = #tpu.pipeline_mode<synchronous>, transform_indices = @transform_2, window_bounds = array<i64: 8, 1>}, {transform_indices = @transform_3, window_bounds = array<i64: 8, 128>}]} {
    %c0 = arith.constant 0 : index
    %c0_0 = arith.constant 0 : index
    %0 = vector.load %arg1[%c0, %c0_0] : memref<8x128xbf16, #tpu.memory_space<vmem>>, vector<8x128xbf16>
    %1 = arith.extf %0 : vector<8x128xbf16> to vector<8x128xf32>
    %c0_1 = arith.constant 0 : index
    %c0_2 = arith.constant 0 : index
    %2 = vector.load %arg2[%c0_1, %c0_2] : memref<8x1xf32, #tpu.memory_space<vmem>>, vector<8x1xf32>
    %3 = vector.broadcast %2 : vector<8x1xf32> to vector<8x128xf32>
    %4 = arith.mulf %1, %3 : vector<8x128xf32>
    %c0_3 = arith.constant 0 : index
    %c0_4 = arith.constant 0 : index
    %5 = vector.load %arg3[%c0_3, %c0_4] : memref<8x1xf32, #tpu.memory_space<vmem>>, vector<8x1xf32>
    %6 = vector.broadcast %5 : vector<8x1xf32> to vector<8x128xf32>
    %7 = arith.addf %4, %6 : vector<8x128xf32>
    %cst = arith.constant 0.000000e+00 : f32
    %8 = vector.broadcast %cst : f32 to vector<8x128xf32>
    %9 = arith.cmpf oge, %7, %8 : vector<8x128xf32>
    %cst_5 = arith.constant 0.00999999977 : f32
    %10 = vector.broadcast %cst_5 : f32 to vector<8x128xf32>
    %11 = arith.mulf %10, %7 : vector<8x128xf32>
    %12 = arith.select %9, %7, %11 : vector<8x128xi1>, vector<8x128xf32>
    %13 = arith.truncf %12 : vector<8x128xf32> to vector<8x128xbf16>
    %c0_6 = arith.constant 0 : index
    %c0_7 = arith.constant 0 : index
    %14 = vector.load %arg4[%c0_6, %c0_7] : memref<8x128xbf16, #tpu.memory_space<vmem>>, vector<8x128xbf16>
    tpu.vector_store %arg4[%c0_6, %c0_7], %13 {strides = array<i32>} : memref<8x128xbf16, #tpu.memory_space<vmem>>, vector<8x128xbf16>,
    return
  }
  func.func @transform_0(%arg0: i32) -> (i32, i32) {
    %c0_i32 = arith.constant 0 : i32
    %c0_i32_0 = arith.constant 0 : i32
    return %c0_i32, %arg0 : i32, i32
  }
  func.func @transform_1(%arg0: i32) -> (i32, i32) {
    %c0_i32 = arith.constant 0 : i32
    %c0_i32_0 = arith.constant 0 : i32
    %c0_i32_1 = arith.constant 0 : i32
    return %c0_i32, %c0_i32_0 : i32, i32
  }
  func.func @transform_2(%arg0: i32) -> (i32, i32) {
    %c0_i32 = arith.constant 0 : i32
    %c0_i32_0 = arith.constant 0 : i32
    %c0_i32_1 = arith.constant 0 : i32
    return %c0_i32, %c0_i32_0 : i32, i32
  }
  func.func @transform_3(%arg0: i32) -> (i32, i32) {
    %c0_i32 = arith.constant 0 : i32
    %c0_i32_0 = arith.constant 0 : i32
    return %c0_i32, %arg0 : i32, i32
  }
}

module attributes {stable_mosaic.version = 11 : i64} {
  func.func @matmul_stats_kernel(%arg0: i32, %arg1: i32, %arg2: memref<16x8xbf16, #tpu.memory_space<vmem>>, %arg3: memref<8x128xbf16, #tpu.memory_space<vmem>>, %arg4: memref<16x128xbf16, #tpu.memory_space<vmem>>, %arg5: memref<1x16x1xf32, #tpu.memory_space<vmem>>, %arg6: memref<1x16x1xf32, #tpu.memory_space<vmem>>) attributes {dimension_semantics = [#tpu.dimension_semantics<parallel>, #tpu.dimension_semantics<arbitrary>], iteration_bounds = array<i64: 2, 2>, scalar_prefetch = 0 : i64, scratch_operands = 0 : i64, tpu.core_type = #tpu.core_type<tc>, window_params = [{pipeline_mode = #tpu.pipeline_mode<synchronous>, transform_indices = @transform_0, window_bounds = array<i64: 16, 8>}, {transform_indices = @transform_1, window_bounds = array<i64: 8, 128>}, {transform_indices = @transform_2, window_bounds = array<i64: 16, 128>}, {transform_indices = @transform_3, window_bounds = array<i64: 1, 16, 1>}, {transform_indices = @transform_4, window_bounds = array<i64: 1, 16, 1>}]} {
    %c0 = arith.constant 0 : index
    %c0_0 = arith.constant 0 : index
    %0 = vector.load %arg2[%c0, %c0_0] : memref<16x8xbf16, #tpu.memory_space<vmem>>, vector<16x8xbf16>
    %c0_1 = arith.constant 0 : index
    %c0_2 = arith.constant 0 : index
    %1 = vector.load %arg3[%c0_1, %c0_2] : memref<8x128xbf16, #tpu.memory_space<vmem>>, vector<8x128xbf16>
    %cst = arith.constant dense<0.000000e+00> : vector<16x128xf32>
    %2 = tpu.matmul %0, %1, %cst {dimension_numbers = #tpu.dot_dimension_numbers<[1], [0], [0], [1], [0, 0, 1, 1], [], []>} : vector<16x8xbf16>, vector<8x128xbf16>, vector<16x128xf32> -> vector<16x128xf32>
    %3 = arith.truncf %2 : vector<16x128xf32> to vector<16x128xbf16>
    %c0_3 = arith.constant 0 : index
    %c0_4 = arith.constant 0 : index
    %4 = vector.load %arg4[%c0_3, %c0_4] : memref<16x128xbf16, #tpu.memory_space<vmem>>, vector<16x128xbf16>
    tpu.vector_store %arg4[%c0_3, %c0_4], %3 {strides = array<i32>} : memref<16x128xbf16, #tpu.memory_space<vmem>>, vector<16x128xbf16>,
    %c0_i32 = arith.constant 0 : i32
    %5 = arith.cmpi eq, %arg1, %c0_i32 : i32
    %6 = arith.extui %5 : i1 to i32
    %c0_i32_5 = arith.constant 0 : i32
    %7 = arith.cmpi ne, %6, %c0_i32_5 : i32
    scf.if %7 {
      %cst_20 = arith.constant 0.000000e+00 : f32
      %21 = vector.broadcast %cst_20 : f32 to vector<1x16x1xf32>
      %c0_21 = arith.constant 0 : index
      %c0_22 = arith.constant 0 : index
      %c0_23 = arith.constant 0 : index
      %22 = vector.load %arg5[%c0_21, %c0_22, %c0_23] : memref<1x16x1xf32, #tpu.memory_space<vmem>>, vector<1x16x1xf32>
      tpu.vector_store %arg5[%c0_21, %c0_22, %c0_23], %21 {strides = array<i32>} : memref<1x16x1xf32, #tpu.memory_space<vmem>>, vector<1x16x1xf32>,
      %cst_24 = arith.constant 0.000000e+00 : f32
      %23 = vector.broadcast %cst_24 : f32 to vector<1x16x1xf32>
      %c0_25 = arith.constant 0 : index
      %c0_26 = arith.constant 0 : index
      %c0_27 = arith.constant 0 : index
      %24 = vector.load %arg6[%c0_25, %c0_26, %c0_27] : memref<1x16x1xf32, #tpu.memory_space<vmem>>, vector<1x16x1xf32>
      tpu.vector_store %arg6[%c0_25, %c0_26, %c0_27], %23 {strides = array<i32>} : memref<1x16x1xf32, #tpu.memory_space<vmem>>, vector<1x16x1xf32>,
    } else {
    }
    %c0_6 = arith.constant 0 : index
    %c0_7 = arith.constant 0 : index
    %c0_8 = arith.constant 0 : index
    %8 = vector.load %arg5[%c0_6, %c0_7, %c0_8] : memref<1x16x1xf32, #tpu.memory_space<vmem>>, vector<1x16x1xf32>
    %cst_9 = arith.constant dense<0.000000e+00> : vector<16xf32>
    %9 = vector.multi_reduction <add>, %2, %cst_9 [1] : vector<16x128xf32> to vector<16xf32>
    %10 = vector.shape_cast %9 : vector<16xf32> to vector<16x1xf32>
    %11 = vector.shape_cast %10 : vector<16x1xf32> to vector<1x16x1xf32>
    %12 = arith.addf %8, %11 : vector<1x16x1xf32>
    %c0_10 = arith.constant 0 : index
    %c0_11 = arith.constant 0 : index
    %c0_12 = arith.constant 0 : index
    %13 = vector.load %arg5[%c0_10, %c0_11, %c0_12] : memref<1x16x1xf32, #tpu.memory_space<vmem>>, vector<1x16x1xf32>
    tpu.vector_store %arg5[%c0_10, %c0_11, %c0_12], %12 {strides = array<i32>} : memref<1x16x1xf32, #tpu.memory_space<vmem>>, vector<1x16x1xf32>,
    %c0_13 = arith.constant 0 : index
    %c0_14 = arith.constant 0 : index
    %c0_15 = arith.constant 0 : index
    %14 = vector.load %arg6[%c0_13, %c0_14, %c0_15] : memref<1x16x1xf32, #tpu.memory_space<vmem>>, vector<1x16x1xf32>
    %15 = arith.mulf %2, %2 : vector<16x128xf32>
    %cst_16 = arith.constant dense<0.000000e+00> : vector<16xf32>
    %16 = vector.multi_reduction <add>, %15, %cst_16 [1] : vector<16x128xf32> to vector<16xf32>
    %17 = vector.shape_cast %16 : vector<16xf32> to vector<16x1xf32>
    %18 = vector.shape_cast %17 : vector<16x1xf32> to vector<1x16x1xf32>
    %19 = arith.addf %14, %18 : vector<1x16x1xf32>
    %c0_17 = arith.constant 0 : index
    %c0_18 = arith.constant 0 : index
    %c0_19 = arith.constant 0 : index
    %20 = vector.load %arg6[%c0_17, %c0_18, %c0_19] : memref<1x16x1xf32, #tpu.memory_space<vmem>>, vector<1x16x1xf32>
    tpu.vector_store %arg6[%c0_17, %c0_18, %c0_19], %19 {strides = array<i32>} : memref<1x16x1xf32, #tpu.memory_space<vmem>>, vector<1x16x1xf32>,
    return
  }
  func.func @transform_0(%arg0: i32, %arg1: i32) -> (i32, i32) {
    %c0_i32 = arith.constant 0 : i32
    %c0_i32_0 = arith.constant 0 : i32
    %c0_i32_1 = arith.constant 0 : i32
    return %c0_i32, %c0_i32_0 : i32, i32
  }
  func.func @transform_1(%arg0: i32, %arg1: i32) -> (i32, i32) {
    %c2_i32 = arith.constant 2 : i32
    %0 = arith.muli %arg0, %c2_i32 : i32
    %1 = arith.addi %0, %arg1 : i32
    %c0_i32 = arith.constant 0 : i32
    %c0_i32_0 = arith.constant 0 : i32
    return %c0_i32, %1 : i32, i32
  }
  func.func @transform_2(%arg0: i32, %arg1: i32) -> (i32, i32) {
    %c2_i32 = arith.constant 2 : i32
    %0 = arith.muli %arg0, %c2_i32 : i32
    %1 = arith.addi %0, %arg1 : i32
    %c0_i32 = arith.constant 0 : i32
    %c0_i32_0 = arith.constant 0 : i32
    return %c0_i32, %1 : i32, i32
  }
  func.func @transform_3(%arg0: i32, %arg1: i32) -> (i32, i32, i32) {
    %c0_i32 = arith.constant 0 : i32
    %c0_i32_0 = arith.constant 0 : i32
    %c0_i32_1 = arith.constant 0 : i32
    return %arg0, %c0_i32, %c0_i32_0 : i32, i32, i32
  }
  func.func @transform_4(%arg0: i32, %arg1: i32) -> (i32, i32, i32) {
    %c0_i32 = arith.constant 0 : i32
    %c0_i32_0 = arith.constant 0 : i32
    %c0_i32_1 = arith.constant 0 : i32
    return %arg0, %c0_i32, %c0_i32_0 : i32, i32, i32
  }
}

module attributes {stable_mosaic.version = 11 : i64} {
  func.func @affine_lrelu_kernel(%arg0: i32, %arg1: memref<16x128xbf16, #tpu.memory_space<vmem>>, %arg2: memref<16x1xf32, #tpu.memory_space<vmem>>, %arg3: memref<16x1xf32, #tpu.memory_space<vmem>>, %arg4: memref<16x128xf32, #tpu.memory_space<vmem>>) attributes {dimension_semantics = [#tpu.dimension_semantics<parallel>], iteration_bounds = array<i64: 4>, scalar_prefetch = 0 : i64, scratch_operands = 0 : i64, tpu.core_type = #tpu.core_type<tc>, window_params = [{transform_indices = @transform_0, window_bounds = array<i64: 16, 128>}, {pipeline_mode = #tpu.pipeline_mode<synchronous>, transform_indices = @transform_1, window_bounds = array<i64: 16, 1>}, {pipeline_mode = #tpu.pipeline_mode<synchronous>, transform_indices = @transform_2, window_bounds = array<i64: 16, 1>}, {transform_indices = @transform_3, window_bounds = array<i64: 16, 128>}]} {
    %c0 = arith.constant 0 : index
    %c0_0 = arith.constant 0 : index
    %0 = vector.load %arg1[%c0, %c0_0] : memref<16x128xbf16, #tpu.memory_space<vmem>>, vector<16x128xbf16>
    %1 = arith.extf %0 : vector<16x128xbf16> to vector<16x128xf32>
    %c0_1 = arith.constant 0 : index
    %c0_2 = arith.constant 0 : index
    %2 = vector.load %arg2[%c0_1, %c0_2] : memref<16x1xf32, #tpu.memory_space<vmem>>, vector<16x1xf32>
    %3 = vector.broadcast %2 : vector<16x1xf32> to vector<16x128xf32>
    %4 = arith.mulf %1, %3 : vector<16x128xf32>
    %c0_3 = arith.constant 0 : index
    %c0_4 = arith.constant 0 : index
    %5 = vector.load %arg3[%c0_3, %c0_4] : memref<16x1xf32, #tpu.memory_space<vmem>>, vector<16x1xf32>
    %6 = vector.broadcast %5 : vector<16x1xf32> to vector<16x128xf32>
    %7 = arith.addf %4, %6 : vector<16x128xf32>
    %cst = arith.constant 0.000000e+00 : f32
    %8 = vector.broadcast %cst : f32 to vector<16x128xf32>
    %9 = arith.cmpf oge, %7, %8 : vector<16x128xf32>
    %cst_5 = arith.constant 0.00999999977 : f32
    %10 = vector.broadcast %cst_5 : f32 to vector<16x128xf32>
    %11 = arith.mulf %10, %7 : vector<16x128xf32>
    %12 = arith.select %9, %7, %11 : vector<16x128xi1>, vector<16x128xf32>
    %c0_6 = arith.constant 0 : index
    %c0_7 = arith.constant 0 : index
    %13 = vector.load %arg4[%c0_6, %c0_7] : memref<16x128xf32, #tpu.memory_space<vmem>>, vector<16x128xf32>
    tpu.vector_store %arg4[%c0_6, %c0_7], %12 {strides = array<i32>} : memref<16x128xf32, #tpu.memory_space<vmem>>, vector<16x128xf32>,
    return
  }
  func.func @transform_0(%arg0: i32) -> (i32, i32) {
    %c0_i32 = arith.constant 0 : i32
    %c0_i32_0 = arith.constant 0 : i32
    return %c0_i32, %arg0 : i32, i32
  }
  func.func @transform_1(%arg0: i32) -> (i32, i32) {
    %c0_i32 = arith.constant 0 : i32
    %c0_i32_0 = arith.constant 0 : i32
    %c0_i32_1 = arith.constant 0 : i32
    return %c0_i32, %c0_i32_0 : i32, i32
  }
  func.func @transform_2(%arg0: i32) -> (i32, i32) {
    %c0_i32 = arith.constant 0 : i32
    %c0_i32_0 = arith.constant 0 : i32
    %c0_i32_1 = arith.constant 0 : i32
    return %c0_i32, %c0_i32_0 : i32, i32
  }
  func.func @transform_3(%arg0: i32) -> (i32, i32) {
    %c0_i32 = arith.constant 0 : i32
    %c0_i32_0 = arith.constant 0 : i32
    return %c0_i32, %arg0 : i32, i32
  }
}

module attributes {stable_mosaic.version = 11 : i64} {
  func.func @matmul_stats_kernel(%arg0: i32, %arg1: i32, %arg2: memref<8x72xbf16, #tpu.memory_space<vmem>>, %arg3: memref<72x128xbf16, #tpu.memory_space<vmem>>, %arg4: memref<8x128xbf16, #tpu.memory_space<vmem>>, %arg5: memref<1x8x1xf32, #tpu.memory_space<vmem>>, %arg6: memref<1x8x1xf32, #tpu.memory_space<vmem>>) attributes {dimension_semantics = [#tpu.dimension_semantics<parallel>, #tpu.dimension_semantics<arbitrary>], iteration_bounds = array<i64: 2, 2>, scalar_prefetch = 0 : i64, scratch_operands = 0 : i64, tpu.core_type = #tpu.core_type<tc>, window_params = [{pipeline_mode = #tpu.pipeline_mode<synchronous>, transform_indices = @transform_0, window_bounds = array<i64: 8, 72>}, {transform_indices = @transform_1, window_bounds = array<i64: 72, 128>}, {transform_indices = @transform_2, window_bounds = array<i64: 8, 128>}, {transform_indices = @transform_3, window_bounds = array<i64: 1, 8, 1>}, {transform_indices = @transform_4, window_bounds = array<i64: 1, 8, 1>}]} {
    %c0 = arith.constant 0 : index
    %c0_0 = arith.constant 0 : index
    %0 = vector.load %arg2[%c0, %c0_0] : memref<8x72xbf16, #tpu.memory_space<vmem>>, vector<8x72xbf16>
    %c0_1 = arith.constant 0 : index
    %c0_2 = arith.constant 0 : index
    %1 = vector.load %arg3[%c0_1, %c0_2] : memref<72x128xbf16, #tpu.memory_space<vmem>>, vector<72x128xbf16>
    %cst = arith.constant dense<0.000000e+00> : vector<8x128xf32>
    %2 = tpu.matmul %0, %1, %cst {dimension_numbers = #tpu.dot_dimension_numbers<[1], [0], [0], [1], [0, 0, 1, 1], [], []>} : vector<8x72xbf16>, vector<72x128xbf16>, vector<8x128xf32> -> vector<8x128xf32>
    %3 = arith.truncf %2 : vector<8x128xf32> to vector<8x128xbf16>
    %c0_3 = arith.constant 0 : index
    %c0_4 = arith.constant 0 : index
    %4 = vector.load %arg4[%c0_3, %c0_4] : memref<8x128xbf16, #tpu.memory_space<vmem>>, vector<8x128xbf16>
    tpu.vector_store %arg4[%c0_3, %c0_4], %3 {strides = array<i32>} : memref<8x128xbf16, #tpu.memory_space<vmem>>, vector<8x128xbf16>,
    %c0_i32 = arith.constant 0 : i32
    %5 = arith.cmpi eq, %arg1, %c0_i32 : i32
    %6 = arith.extui %5 : i1 to i32
    %c0_i32_5 = arith.constant 0 : i32
    %7 = arith.cmpi ne, %6, %c0_i32_5 : i32
    scf.if %7 {
      %cst_20 = arith.constant 0.000000e+00 : f32
      %21 = vector.broadcast %cst_20 : f32 to vector<1x8x1xf32>
      %c0_21 = arith.constant 0 : index
      %c0_22 = arith.constant 0 : index
      %c0_23 = arith.constant 0 : index
      %22 = vector.load %arg5[%c0_21, %c0_22, %c0_23] : memref<1x8x1xf32, #tpu.memory_space<vmem>>, vector<1x8x1xf32>
      tpu.vector_store %arg5[%c0_21, %c0_22, %c0_23], %21 {strides = array<i32>} : memref<1x8x1xf32, #tpu.memory_space<vmem>>, vector<1x8x1xf32>,
      %cst_24 = arith.constant 0.000000e+00 : f32
      %23 = vector.broadcast %cst_24 : f32 to vector<1x8x1xf32>
      %c0_25 = arith.constant 0 : index
      %c0_26 = arith.constant 0 : index
      %c0_27 = arith.constant 0 : index
      %24 = vector.load %arg6[%c0_25, %c0_26, %c0_27] : memref<1x8x1xf32, #tpu.memory_space<vmem>>, vector<1x8x1xf32>
      tpu.vector_store %arg6[%c0_25, %c0_26, %c0_27], %23 {strides = array<i32>} : memref<1x8x1xf32, #tpu.memory_space<vmem>>, vector<1x8x1xf32>,
    } else {
    }
    %c0_6 = arith.constant 0 : index
    %c0_7 = arith.constant 0 : index
    %c0_8 = arith.constant 0 : index
    %8 = vector.load %arg5[%c0_6, %c0_7, %c0_8] : memref<1x8x1xf32, #tpu.memory_space<vmem>>, vector<1x8x1xf32>
    %cst_9 = arith.constant dense<0.000000e+00> : vector<8xf32>
    %9 = vector.multi_reduction <add>, %2, %cst_9 [1] : vector<8x128xf32> to vector<8xf32>
    %10 = vector.shape_cast %9 : vector<8xf32> to vector<8x1xf32>
    %11 = vector.shape_cast %10 : vector<8x1xf32> to vector<1x8x1xf32>
    %12 = arith.addf %8, %11 : vector<1x8x1xf32>
    %c0_10 = arith.constant 0 : index
    %c0_11 = arith.constant 0 : index
    %c0_12 = arith.constant 0 : index
    %13 = vector.load %arg5[%c0_10, %c0_11, %c0_12] : memref<1x8x1xf32, #tpu.memory_space<vmem>>, vector<1x8x1xf32>
    tpu.vector_store %arg5[%c0_10, %c0_11, %c0_12], %12 {strides = array<i32>} : memref<1x8x1xf32, #tpu.memory_space<vmem>>, vector<1x8x1xf32>,
    %c0_13 = arith.constant 0 : index
    %c0_14 = arith.constant 0 : index
    %c0_15 = arith.constant 0 : index
    %14 = vector.load %arg6[%c0_13, %c0_14, %c0_15] : memref<1x8x1xf32, #tpu.memory_space<vmem>>, vector<1x8x1xf32>
    %15 = arith.mulf %2, %2 : vector<8x128xf32>
    %cst_16 = arith.constant dense<0.000000e+00> : vector<8xf32>
    %16 = vector.multi_reduction <add>, %15, %cst_16 [1] : vector<8x128xf32> to vector<8xf32>
    %17 = vector.shape_cast %16 : vector<8xf32> to vector<8x1xf32>
    %18 = vector.shape_cast %17 : vector<8x1xf32> to vector<1x8x1xf32>
    %19 = arith.addf %14, %18 : vector<1x8x1xf32>
    %c0_17 = arith.constant 0 : index
    %c0_18 = arith.constant 0 : index
    %c0_19 = arith.constant 0 : index
    %20 = vector.load %arg6[%c0_17, %c0_18, %c0_19] : memref<1x8x1xf32, #tpu.memory_space<vmem>>, vector<1x8x1xf32>
    tpu.vector_store %arg6[%c0_17, %c0_18, %c0_19], %19 {strides = array<i32>} : memref<1x8x1xf32, #tpu.memory_space<vmem>>, vector<1x8x1xf32>,
    return
  }
  func.func @transform_0(%arg0: i32, %arg1: i32) -> (i32, i32) {
    %c0_i32 = arith.constant 0 : i32
    %c0_i32_0 = arith.constant 0 : i32
    %c0_i32_1 = arith.constant 0 : i32
    return %c0_i32, %c0_i32_0 : i32, i32
  }
  func.func @transform_1(%arg0: i32, %arg1: i32) -> (i32, i32) {
    %c2_i32 = arith.constant 2 : i32
    %0 = arith.muli %arg0, %c2_i32 : i32
    %1 = arith.addi %0, %arg1 : i32
    %c0_i32 = arith.constant 0 : i32
    %c0_i32_0 = arith.constant 0 : i32
    return %c0_i32, %1 : i32, i32
  }
  func.func @transform_2(%arg0: i32, %arg1: i32) -> (i32, i32) {
    %c2_i32 = arith.constant 2 : i32
    %0 = arith.muli %arg0, %c2_i32 : i32
    %1 = arith.addi %0, %arg1 : i32
    %c0_i32 = arith.constant 0 : i32
    %c0_i32_0 = arith.constant 0 : i32
    return %c0_i32, %1 : i32, i32
  }
  func.func @transform_3(%arg0: i32, %arg1: i32) -> (i32, i32, i32) {
    %c0_i32 = arith.constant 0 : i32
    %c0_i32_0 = arith.constant 0 : i32
    %c0_i32_1 = arith.constant 0 : i32
    return %arg0, %c0_i32, %c0_i32_0 : i32, i32, i32
  }
  func.func @transform_4(%arg0: i32, %arg1: i32) -> (i32, i32, i32) {
    %c0_i32 = arith.constant 0 : i32
    %c0_i32_0 = arith.constant 0 : i32
    %c0_i32_1 = arith.constant 0 : i32
    return %arg0, %c0_i32, %c0_i32_0 : i32, i32, i32
  }
}

module attributes {stable_mosaic.version = 11 : i64} {
  func.func @matmul_stats_kernel(%arg0: i32, %arg1: i32, %arg2: memref<8x36xbf16, #tpu.memory_space<vmem>>, %arg3: memref<36x128xbf16, #tpu.memory_space<vmem>>, %arg4: memref<8x128xbf16, #tpu.memory_space<vmem>>, %arg5: memref<1x8x1xf32, #tpu.memory_space<vmem>>, %arg6: memref<1x8x1xf32, #tpu.memory_space<vmem>>) attributes {dimension_semantics = [#tpu.dimension_semantics<parallel>, #tpu.dimension_semantics<arbitrary>], iteration_bounds = array<i64: 2, 2>, scalar_prefetch = 0 : i64, scratch_operands = 0 : i64, tpu.core_type = #tpu.core_type<tc>, window_params = [{pipeline_mode = #tpu.pipeline_mode<synchronous>, transform_indices = @transform_0, window_bounds = array<i64: 8, 36>}, {transform_indices = @transform_1, window_bounds = array<i64: 36, 128>}, {transform_indices = @transform_2, window_bounds = array<i64: 8, 128>}, {transform_indices = @transform_3, window_bounds = array<i64: 1, 8, 1>}, {transform_indices = @transform_4, window_bounds = array<i64: 1, 8, 1>}]} {
    %c0 = arith.constant 0 : index
    %c0_0 = arith.constant 0 : index
    %0 = vector.load %arg2[%c0, %c0_0] : memref<8x36xbf16, #tpu.memory_space<vmem>>, vector<8x36xbf16>
    %c0_1 = arith.constant 0 : index
    %c0_2 = arith.constant 0 : index
    %1 = vector.load %arg3[%c0_1, %c0_2] : memref<36x128xbf16, #tpu.memory_space<vmem>>, vector<36x128xbf16>
    %cst = arith.constant dense<0.000000e+00> : vector<8x128xf32>
    %2 = tpu.matmul %0, %1, %cst {dimension_numbers = #tpu.dot_dimension_numbers<[1], [0], [0], [1], [0, 0, 1, 1], [], []>} : vector<8x36xbf16>, vector<36x128xbf16>, vector<8x128xf32> -> vector<8x128xf32>
    %3 = arith.truncf %2 : vector<8x128xf32> to vector<8x128xbf16>
    %c0_3 = arith.constant 0 : index
    %c0_4 = arith.constant 0 : index
    %4 = vector.load %arg4[%c0_3, %c0_4] : memref<8x128xbf16, #tpu.memory_space<vmem>>, vector<8x128xbf16>
    tpu.vector_store %arg4[%c0_3, %c0_4], %3 {strides = array<i32>} : memref<8x128xbf16, #tpu.memory_space<vmem>>, vector<8x128xbf16>,
    %c0_i32 = arith.constant 0 : i32
    %5 = arith.cmpi eq, %arg1, %c0_i32 : i32
    %6 = arith.extui %5 : i1 to i32
    %c0_i32_5 = arith.constant 0 : i32
    %7 = arith.cmpi ne, %6, %c0_i32_5 : i32
    scf.if %7 {
      %cst_20 = arith.constant 0.000000e+00 : f32
      %21 = vector.broadcast %cst_20 : f32 to vector<1x8x1xf32>
      %c0_21 = arith.constant 0 : index
      %c0_22 = arith.constant 0 : index
      %c0_23 = arith.constant 0 : index
      %22 = vector.load %arg5[%c0_21, %c0_22, %c0_23] : memref<1x8x1xf32, #tpu.memory_space<vmem>>, vector<1x8x1xf32>
      tpu.vector_store %arg5[%c0_21, %c0_22, %c0_23], %21 {strides = array<i32>} : memref<1x8x1xf32, #tpu.memory_space<vmem>>, vector<1x8x1xf32>,
      %cst_24 = arith.constant 0.000000e+00 : f32
      %23 = vector.broadcast %cst_24 : f32 to vector<1x8x1xf32>
      %c0_25 = arith.constant 0 : index
      %c0_26 = arith.constant 0 : index
      %c0_27 = arith.constant 0 : index
      %24 = vector.load %arg6[%c0_25, %c0_26, %c0_27] : memref<1x8x1xf32, #tpu.memory_space<vmem>>, vector<1x8x1xf32>
      tpu.vector_store %arg6[%c0_25, %c0_26, %c0_27], %23 {strides = array<i32>} : memref<1x8x1xf32, #tpu.memory_space<vmem>>, vector<1x8x1xf32>,
    } else {
    }
    %c0_6 = arith.constant 0 : index
    %c0_7 = arith.constant 0 : index
    %c0_8 = arith.constant 0 : index
    %8 = vector.load %arg5[%c0_6, %c0_7, %c0_8] : memref<1x8x1xf32, #tpu.memory_space<vmem>>, vector<1x8x1xf32>
    %cst_9 = arith.constant dense<0.000000e+00> : vector<8xf32>
    %9 = vector.multi_reduction <add>, %2, %cst_9 [1] : vector<8x128xf32> to vector<8xf32>
    %10 = vector.shape_cast %9 : vector<8xf32> to vector<8x1xf32>
    %11 = vector.shape_cast %10 : vector<8x1xf32> to vector<1x8x1xf32>
    %12 = arith.addf %8, %11 : vector<1x8x1xf32>
    %c0_10 = arith.constant 0 : index
    %c0_11 = arith.constant 0 : index
    %c0_12 = arith.constant 0 : index
    %13 = vector.load %arg5[%c0_10, %c0_11, %c0_12] : memref<1x8x1xf32, #tpu.memory_space<vmem>>, vector<1x8x1xf32>
    tpu.vector_store %arg5[%c0_10, %c0_11, %c0_12], %12 {strides = array<i32>} : memref<1x8x1xf32, #tpu.memory_space<vmem>>, vector<1x8x1xf32>,
    %c0_13 = arith.constant 0 : index
    %c0_14 = arith.constant 0 : index
    %c0_15 = arith.constant 0 : index
    %14 = vector.load %arg6[%c0_13, %c0_14, %c0_15] : memref<1x8x1xf32, #tpu.memory_space<vmem>>, vector<1x8x1xf32>
    %15 = arith.mulf %2, %2 : vector<8x128xf32>
    %cst_16 = arith.constant dense<0.000000e+00> : vector<8xf32>
    %16 = vector.multi_reduction <add>, %15, %cst_16 [1] : vector<8x128xf32> to vector<8xf32>
    %17 = vector.shape_cast %16 : vector<8xf32> to vector<8x1xf32>
    %18 = vector.shape_cast %17 : vector<8x1xf32> to vector<1x8x1xf32>
    %19 = arith.addf %14, %18 : vector<1x8x1xf32>
    %c0_17 = arith.constant 0 : index
    %c0_18 = arith.constant 0 : index
    %c0_19 = arith.constant 0 : index
    %20 = vector.load %arg6[%c0_17, %c0_18, %c0_19] : memref<1x8x1xf32, #tpu.memory_space<vmem>>, vector<1x8x1xf32>
    tpu.vector_store %arg6[%c0_17, %c0_18, %c0_19], %19 {strides = array<i32>} : memref<1x8x1xf32, #tpu.memory_space<vmem>>, vector<1x8x1xf32>,
    return
  }
  func.func @transform_0(%arg0: i32, %arg1: i32) -> (i32, i32) {
    %c0_i32 = arith.constant 0 : i32
    %c0_i32_0 = arith.constant 0 : i32
    %c0_i32_1 = arith.constant 0 : i32
    return %c0_i32, %c0_i32_0 : i32, i32
  }
  func.func @transform_1(%arg0: i32, %arg1: i32) -> (i32, i32) {
    %c2_i32 = arith.constant 2 : i32
    %0 = arith.muli %arg0, %c2_i32 : i32
    %1 = arith.addi %0, %arg1 : i32
    %c0_i32 = arith.constant 0 : i32
    %c0_i32_0 = arith.constant 0 : i32
    return %c0_i32, %1 : i32, i32
  }
  func.func @transform_2(%arg0: i32, %arg1: i32) -> (i32, i32) {
    %c2_i32 = arith.constant 2 : i32
    %0 = arith.muli %arg0, %c2_i32 : i32
    %1 = arith.addi %0, %arg1 : i32
    %c0_i32 = arith.constant 0 : i32
    %c0_i32_0 = arith.constant 0 : i32
    return %c0_i32, %1 : i32, i32
  }
  func.func @transform_3(%arg0: i32, %arg1: i32) -> (i32, i32, i32) {
    %c0_i32 = arith.constant 0 : i32
    %c0_i32_0 = arith.constant 0 : i32
    %c0_i32_1 = arith.constant 0 : i32
    return %arg0, %c0_i32, %c0_i32_0 : i32, i32, i32
  }
  func.func @transform_4(%arg0: i32, %arg1: i32) -> (i32, i32, i32) {
    %c0_i32 = arith.constant 0 : i32
    %c0_i32_0 = arith.constant 0 : i32
    %c0_i32_1 = arith.constant 0 : i32
    return %arg0, %c0_i32, %c0_i32_0 : i32, i32, i32
  }
}

module attributes {stable_mosaic.version = 11 : i64} {
  func.func @affine_lrelu_add_kernel(%arg0: i32, %arg1: memref<8x128xbf16, #tpu.memory_space<vmem>>, %arg2: memref<8x1xf32, #tpu.memory_space<vmem>>, %arg3: memref<8x1xf32, #tpu.memory_space<vmem>>, %arg4: memref<8x128xf32, #tpu.memory_space<vmem>>, %arg5: memref<8x128xf32, #tpu.memory_space<vmem>>) attributes {dimension_semantics = [#tpu.dimension_semantics<parallel>], iteration_bounds = array<i64: 4>, scalar_prefetch = 0 : i64, scratch_operands = 0 : i64, tpu.core_type = #tpu.core_type<tc>, window_params = [{transform_indices = @transform_0, window_bounds = array<i64: 8, 128>}, {pipeline_mode = #tpu.pipeline_mode<synchronous>, transform_indices = @transform_1, window_bounds = array<i64: 8, 1>}, {pipeline_mode = #tpu.pipeline_mode<synchronous>, transform_indices = @transform_2, window_bounds = array<i64: 8, 1>}, {transform_indices = @transform_3, window_bounds = array<i64: 8, 128>}, {transform_indices = @transform_4, window_bounds = array<i64: 8, 128>}]} {
    %c0 = arith.constant 0 : index
    %c0_0 = arith.constant 0 : index
    %0 = vector.load %arg1[%c0, %c0_0] : memref<8x128xbf16, #tpu.memory_space<vmem>>, vector<8x128xbf16>
    %1 = arith.extf %0 : vector<8x128xbf16> to vector<8x128xf32>
    %c0_1 = arith.constant 0 : index
    %c0_2 = arith.constant 0 : index
    %2 = vector.load %arg2[%c0_1, %c0_2] : memref<8x1xf32, #tpu.memory_space<vmem>>, vector<8x1xf32>
    %3 = vector.broadcast %2 : vector<8x1xf32> to vector<8x128xf32>
    %4 = arith.mulf %1, %3 : vector<8x128xf32>
    %c0_3 = arith.constant 0 : index
    %c0_4 = arith.constant 0 : index
    %5 = vector.load %arg3[%c0_3, %c0_4] : memref<8x1xf32, #tpu.memory_space<vmem>>, vector<8x1xf32>
    %6 = vector.broadcast %5 : vector<8x1xf32> to vector<8x128xf32>
    %7 = arith.addf %4, %6 : vector<8x128xf32>
    %cst = arith.constant 0.000000e+00 : f32
    %8 = vector.broadcast %cst : f32 to vector<8x128xf32>
    %9 = arith.cmpf oge, %7, %8 : vector<8x128xf32>
    %cst_5 = arith.constant 0.00999999977 : f32
    %10 = vector.broadcast %cst_5 : f32 to vector<8x128xf32>
    %11 = arith.mulf %10, %7 : vector<8x128xf32>
    %12 = arith.select %9, %7, %11 : vector<8x128xi1>, vector<8x128xf32>
    %c0_6 = arith.constant 0 : index
    %c0_7 = arith.constant 0 : index
    %13 = vector.load %arg4[%c0_6, %c0_7] : memref<8x128xf32, #tpu.memory_space<vmem>>, vector<8x128xf32>
    %14 = arith.addf %12, %13 : vector<8x128xf32>
    %c0_8 = arith.constant 0 : index
    %c0_9 = arith.constant 0 : index
    %15 = vector.load %arg5[%c0_8, %c0_9] : memref<8x128xf32, #tpu.memory_space<vmem>>, vector<8x128xf32>
    tpu.vector_store %arg5[%c0_8, %c0_9], %14 {strides = array<i32>} : memref<8x128xf32, #tpu.memory_space<vmem>>, vector<8x128xf32>,
    return
  }
  func.func @transform_0(%arg0: i32) -> (i32, i32) {
    %c0_i32 = arith.constant 0 : i32
    %c0_i32_0 = arith.constant 0 : i32
    return %c0_i32, %arg0 : i32, i32
  }
  func.func @transform_1(%arg0: i32) -> (i32, i32) {
    %c0_i32 = arith.constant 0 : i32
    %c0_i32_0 = arith.constant 0 : i32
    %c0_i32_1 = arith.constant 0 : i32
    return %c0_i32, %c0_i32_0 : i32, i32
  }
  func.func @transform_2(%arg0: i32) -> (i32, i32) {
    %c0_i32 = arith.constant 0 : i32
    %c0_i32_0 = arith.constant 0 : i32
    %c0_i32_1 = arith.constant 0 : i32
    return %c0_i32, %c0_i32_0 : i32, i32
  }
  func.func @transform_3(%arg0: i32) -> (i32, i32) {
    %c0_i32 = arith.constant 0 : i32
    %c0_i32_0 = arith.constant 0 : i32
    return %c0_i32, %arg0 : i32, i32
  }
  func.func @transform_4(%arg0: i32) -> (i32, i32) {
    %c0_i32 = arith.constant 0 : i32
    %c0_i32_0 = arith.constant 0 : i32
    return %c0_i32, %arg0 : i32, i32
  }
}

</mosaic_0001>

<bundles_post_ra>
// kernel: up_forward.9
= control target key start
LH: loop header
LB: loop body
LE: loop exit
PB: predicated region body
PF: predicated region fallthrough
CT: control target
= control target key end

     0   :  { %vm57_vm0 = vcmask 1043456   ;;  %vm44_vm1 = vcmask 64512   ;;  %v1218_v11 = vmov 1983009808   ;;  %vm91_vm2 = vcmask 1047556   ;;  %s1221_s21 = smov 80   ;;  %s1762_s2 = inlined_call_operand.vmem [shape: bf16[8,16], index: 2, kind: input, shape index: {}]   ;;  %s1763_s0 = inlined_call_operand.vmem [shape: bf16[64,8], index: 0, kind: input, shape index: {}]   ;;  %s1764_s1 = inlined_call_operand.vmem [shape: bf16[16,8], index: 1, kind: input, shape index: {}]   ;;  %s1765_s3 = inlined_call_operand.vmem [shape: f32[8,256], index: 3, kind: output, shape index: {}]  }
   0x1   :  { %v23_v0 = vld [vmem:[%s1762_s2] sm:$0xf]  ;;  %v1203_v2 = vld [vmem:[%s1763_s0 + $0x8] sm:$0xff]  ;;  %v1205_v4 = vld [vmem:[%s1763_s0 + $0x18] sm:$0xff]  ;;  %v96_v12 = vunpack.c.l.s4 %v1218_v11  ;;  %v1219_v30 = vmov 1934713408  }
   0x2   :  { %v59_v1 = vsel %vm57_vm0, %v23_v0, 0  ;;  %v1202_v3 = vld [vmem:[%s1763_s0] sm:$0xff]  ;;  %v1204_v5 = vld [vmem:[%s1763_s0 + $0x10] sm:$0xff]  ;;  %v144_v31 = vunpack.c.l.s4 %v1219_v30  ;;  %s1220_s0 = smov 16   ;;  %s1222_s22 = smov 48   ;;  %vm343_vm3 = vcmask 130048  }
   0x3   :  { %1207 = vmatpush.bf16.msra.mxu2 %v59_v1  ;;  %68 = vmatpush.bf16.msra.mxu0 %v59_v1  ;;  %v1269_v19 = vunpack.c.0.s8 %v96_v12  ;;  %s1223_s23 = smov 32   ;;  %s1224_s24 = smov 96   ;;  %vm345_vm4 = vcmask 261120   ;;  %vm347_vm5 = vcmask 392192   ;;  %vm349_vm6 = vcmask 523264  }
   0x4   :  { %1208 = vmatpush.bf16.msra.mxu3 %v59_v1  ;;  %v1282_v41 = vunpack.c.0.s8 %v144_v31  ;;  %s1225_s25 = smov 64   ;;  %s1226_s26 = smov 112   ;;  %vm351_vm7 = vcmask 654336   ;;  %vm353_vm8 = vcmask 785408   ;;  %vm355_vm9 = vcmask 916480  }
   0x6   :  { %1194 = vmatmul.msk.bf16.vlgmr.msra.gmra.mxu2 %vm44_vm1, %v1203_v2  ;;  %1193 = vmatmul.msk.bf16.vlgmr.msra.gmra.mxu0 %vm44_vm1, %v1202_v3 }
   0x7   :  { %1196 = vmatmul.msk.bf16.vlgmr.msra.gmra.mxu3 %vm44_vm1, %v1205_v4 }
  0x16   :  { %1195 = vmatmul.msk.bf16.gmra.mxu2 %vm44_vm1, %v1204_v5 }
  0x83   :  { %v70_v6 = vpop.f32.mrf.mxu0 }
  0x84   :  { %v93_v16 = vrot.slane %v70_v6, 4 }
  0x89   :  { %v75_v7 = vpop.f32.mrf.mxu2 }
  0x8a   :  { %v90_v10 = vrot.slane %v75_v7, 4  ;;  %v85_v15 = vpop.f32.mrf.mxu3  ;;  %v94_v21 = vsel %vm91_vm2, %v75_v7, %v93_v16 }
  0x8b   :  { %v72_v8 = vpop.f32.mrf.mxu0  ;;  %v115_v22 = vrot.slane %v85_v15, 4  ;;  %v102_v27 = vperm.slane %v94_v21, %v1269_v19 }
  0x8c   :  { %v105_v13 = vrot.slane %v72_v8, 4  ;;  %v92_v18 = vsel %vm91_vm2, %v90_v10, %v70_v6 }
  0x8d   :  { %v98_v24 = vperm.slane %v92_v18, %v1269_v19  ;;  %v153_v37 = vrot.slane %v102_v27, 4 }
  0x8f   :  { %v141_v33 = vrot.slane %v98_v24, 4 }
  0x91   :  { %v77_v9 = vpop.f32.mrf.mxu2 }
  0x92   :  { %v103_v14 = vrot.slane %v77_v9, 4  ;;  %v106_v20 = vsel %vm91_vm2, %v77_v9, %v105_v13  ;;  %v87_v35 = vpop.f32.mrf.mxu3 }
  0x93   :  { %v114_v25 = vperm.slane %v106_v20, %v1269_v19  ;;  %v127_v42 = vrot.slane %v87_v35, 4 }
  0x94   :  { %v104_v17 = vsel %vm91_vm2, %v103_v14, %v72_v8 }
  0x95   :  { %v110_v23 = vperm.slane %v104_v17, %v1269_v19  ;;  %v151_v34 = vrot.slane %v114_v25, 4  ;;  %v154_v44 = vsel %vm91_vm2, %v114_v25, %v153_v37 }
  0x96   :  { %v162_v54 = vperm.slane %v154_v44, %v1282_v41 }
  0x97   :  { %v139_v29 = vrot.slane %v110_v23, 4  ;;  %v142_v38 = vsel %vm91_vm2, %v110_v23, %v141_v33  ;;  %v152_v43 = vsel %vm91_vm2, %v151_v34, %v102_v27 }
  0x98   :  { %v150_v47 = vperm.slane %v142_v38, %v1282_v41  ;;  %v158_v53 = vperm.slane %v152_v43, %v1282_v41  ;;  %v201_v7 = vrot.slane %v162_v54, 4 }
  0x99   :  { %v80_v26 = vpop.f32.mrf.mxu2  ;;  %v140_v40 = vsel %vm91_vm2, %v139_v29, %v98_v24 }
  0x9a   :  { %v117_v28 = vrot.slane %v80_v26, 4  ;;  %v116_v32 = vsel %vm91_vm2, %v115_v22, %v80_v26  ;;  %v146_v50 = vperm.slane %v140_v40, %v1282_v41  ;;  %v193_v60 = vrot.slane %v150_v47, 4 }
  0x9b   :  { %v122_v39 = vperm.slane %v116_v32, %v1269_v19  ;;  %v197_v6 = vrot.slane %v158_v53, 4 }
  0x9c   :  { %v118_v36 = vsel %vm91_vm2, %v85_v15, %v117_v28  ;;  %v189_v62 = vrot.slane %v146_v50, 4 }
  0x9d   :  { %v126_v45 = vperm.slane %v118_v36, %v1269_v19  ;;  %v165_v51 = vrot.slane %v122_v39, 4 }
  0x9f   :  { %v177_v56 = vrot.slane %v126_v45, 4 }
  0xa1   :  { %v82_v46 = vpop.f32.mrf.mxu2 }
  0xa2   :  { %v128_v48 = vsel %vm91_vm2, %v127_v42, %v82_v46  ;;  %v129_v49 = vrot.slane %v82_v46, 4 }
  0xa3   :  { %v134_v52 = vperm.slane %v128_v48, %v1269_v19 }
  0xa4   :  { %v130_v55 = vsel %vm91_vm2, %v87_v35, %v129_v49 }
  0xa5   :  { %v138_v57 = vperm.slane %v130_v55, %v1269_v19  ;;  %v163_v58 = vrot.slane %v134_v52, 4  ;;  %v166_v59 = vsel %vm91_vm2, %v134_v52, %v165_v51 }
  0xa6   :  { %v174_v61 = vperm.slane %v166_v59, %v1282_v41 }
  0xa7   :  { %v164_v63 = vsel %vm91_vm2, %v163_v58, %v122_v39  ;;  %v175_v0 = vrot.slane %v138_v57, 4  ;;  %v178_v1 = vsel %vm91_vm2, %v138_v57, %v177_v56 }
  0xa8   :  { %v170_v2 = vperm.slane %v164_v63, %v1282_v41  ;;  %v186_v3 = vperm.slane %v178_v1, %v1282_v41  ;;  %v191_v4 = vrot.slane %v174_v61, 4  ;;  %v194_v5 = vsel %vm91_vm2, %v174_v61, %v193_v60 }
  0xa9   :  { %v176_v8 = vsel %vm91_vm2, %v175_v0, %v126_v45  ;;  %v215_v9 = vrot.slane %v194_v5, 4 }
  0xaa   :  { %v182_v10 = vperm.slane %v176_v8, %v1282_v41  ;;  %v187_v11 = vrot.slane %v170_v2, 4  ;;  %v190_v12 = vsel %vm91_vm2, %v170_v2, %v189_v62  ;;  %v192_v13 = vsel %vm91_vm2, %v191_v4, %v150_v47 }
  0xab   :  { %v199_v14 = vrot.slane %v186_v3, 4  ;;  %v202_v15 = vsel %vm91_vm2, %v186_v3, %v201_v7  ;;  %v203_v16 = vrot.slane %v192_v13, 4  ;;  %v217_v17 = vrot.slane %v190_v12, 4 }
  0xac   :  { %v195_v18 = vrot.slane %v182_v10, 4  ;;  %v239_v20 = vrot.slane %v202_v15, 4  ;;  %v188_v21 = vsel %vm91_vm2, %v187_v11, %v146_v50  ;;  %v198_v22 = vsel %vm91_vm2, %v182_v10, %v197_v6 }
  0xad   :  { %v218_v23 = vsel %vm91_vm2, %v194_v5, %v217_v17  ;;  %v200_v24 = vsel %vm91_vm2, %v199_v14, %v162_v54  ;;  %v204_v25 = vsel %vm91_vm2, %v203_v16, %v188_v21  ;;  %v205_v26 = vrot.slane %v188_v21, 4 }
  0xae   :  { %v196_v27 = vsel %vm91_vm2, %v195_v18, %v158_v53  ;;  %v210_v28 = vperm.slane %v204_v25, %v1269_v19  ;;  %v216_v29 = vsel %vm91_vm2, %v215_v9, %v190_v12  ;;  %v227_v30 = vrot.slane %v200_v24, 4 }
  0xaf   :  { %v222_v31 = vperm.slane %v216_v29, %v1269_v19  ;;  %v229_v32 = vrot.slane %v196_v27, 4  ;;  %v240_v33 = vsel %vm91_vm2, %v239_v20, %v198_v22  ;;  %v241_v34 = vrot.slane %v198_v22, 4 }
  0xb0   :  { %v228_v35 = vsel %vm91_vm2, %v227_v30, %v196_v27  ;;  %v246_v36 = vperm.slane %v240_v33, %v1269_v19  ;;  %v206_v37 = vsel %vm91_vm2, %v192_v13, %v205_v26  ;;  %v226_v38 = vperm.slane %v218_v23, %v1269_v19 }
  0xb1   :  { %v234_v39 = vperm.slane %v228_v35, %v1269_v19  ;;  %v251_v40 = vrot.slane %v222_v31, 4  ;;  %v214_v42 = vperm.slane %v206_v37, %v1269_v19  ;;  %v230_v43 = vsel %vm91_vm2, %v200_v24, %v229_v32 }
  0xb2   :  { %v275_v44 = vrot.slane %v246_v36, 4  ;;  %v238_v45 = vperm.slane %v230_v43, %v1269_v19  ;;  %v242_v46 = vsel %vm91_vm2, %v202_v15, %v241_v34  ;;  %v263_v47 = vrot.slane %v226_v38, 4 }
  0xb3   :  { %v252_v48 = vsel %vm91_vm2, %v251_v40, %v210_v28  ;;  %v250_v49 = vperm.slane %v242_v46, %v1269_v19  ;;  %v253_v50 = vrot.slane %v210_v28, 4  ;;  %v277_v51 = vrot.slane %v234_v39, 4 }
  0xb4   :  { %v258_v52 = vperm.slane %v252_v48, %v1282_v41  ;;  %v276_v53 = vsel %vm91_vm2, %v275_v44, %v234_v39  ;;  %v264_v54 = vsel %vm91_vm2, %v263_v47, %v214_v42  ;;  %v289_v55 = vrot.slane %v238_v45, 4  ;;  %v1206_v39 = vld [vmem:[%s1764_s1] sm:$0xff] }
  0xb5   :  { %v282_v56 = vperm.slane %v276_v53, %v1282_v41  ;;  %v270_v57 = vperm.slane %v264_v54, %v1282_v41  ;;  %v287_v58 = vrot.slane %v250_v49, 4  ;;  %v254_v59 = vsel %vm91_vm2, %v222_v31, %v253_v50 }
  0xb6   :  { %v301_v60 = vrot.slane %v258_v52, 4  ;;  %v262_v61 = vperm.slane %v254_v59, %v1282_v41  ;;  %v278_v62 = vsel %vm91_vm2, %v246_v36, %v277_v51  ;;  %v265_v6 = vrot.slane %v214_v42, 4 }
  0xb7   :  { %v299_v63 = vrot.slane %v282_v56, 4  ;;  %v288_v0 = vsel %vm91_vm2, %v287_v58, %v238_v45  ;;  %v309_v1 = vrot.slane %v270_v57, 4  ;;  %v286_v2 = vperm.slane %v278_v62, %v1282_v41 }
  0xb8   :  { %v302_v3 = vsel %vm91_vm2, %v282_v56, %v301_v60  ;;  %v294_v4 = vperm.slane %v288_v0, %v1282_v41  ;;  %v305_v5 = vrot.slane %v262_v61, 4  ;;  %v290_v7 = vsel %vm91_vm2, %v250_v49, %v289_v55 }
  0xb9   :  { %316 = vrot.lane.b32.xlu0 %v302_v3, %s1220_s0  ;;  %v300_v8 = vsel %vm91_vm2, %v299_v63, %v258_v52  ;;  %v298_v11 = vperm.slane %v290_v7, %v1282_v41  ;;  %v303_v12 = vrot.slane %v286_v2, 4  ;;  %v266_v13 = vsel %vm91_vm2, %v226_v38, %v265_v6 }
  0xba   :  { %v310_v9 = vsel %vm91_vm2, %v294_v4, %v309_v1  ;;  %v306_v10 = vsel %vm91_vm2, %v286_v2, %v305_v5  ;;  %v307_v15 = vrot.slane %v294_v4, 4  ;;  %v274_v17 = vperm.slane %v266_v13, %v1282_v41 }
  0xbb   :  { %332 = vrot.lane.b32.xlu2 %v310_v9, %s1221_s21  ;;  %324 = vrot.lane.b32.xlu1 %v306_v10, %s1222_s22  ;;  %v311_v14 = vrot.slane %v298_v11, 4  ;;  %v304_v16 = vsel %vm91_vm2, %v303_v12, %v262_v61 }
  0xbc   :  { %v308_v20 = vsel %vm91_vm2, %v307_v15, %v270_v57  ;;  %v313_v21 = vrot.slane %v274_v17, 4 }
  0xbd   :  { %v312_v18 = vsel %vm91_vm2, %v311_v14, %v274_v17 }
  0xbe   :  { %v314_v22 = vsel %vm91_vm2, %v298_v11, %v313_v21 }
  0xc1   :  { %320 = vrot.lane.b32.xlu0 %v304_v16, %s1223_s23 }
  0xc3   :  { %336 = vrot.lane.b32.xlu2 %v312_v18, %s1224_s24  ;;  %328 = vrot.lane.b32.xlu1 %v308_v20, %s1225_s25 }
  0xc9   :  { %340 = vrot.lane.b32.xlu0 %v314_v22, %s1226_s26 }
 0x115   :  { %v333_v25 = vpop.permute.xlu2 %332 }
 0x11d   :  { %v337_v33 = vpop.permute.xlu2 %336 }
 0x12b   :  { %v317_v23 = vpop.permute.xlu0 %316 }
 0x12c   :  { %v344_v26 = vsel %vm343_vm3, %v300_v8, %v317_v23 }
 0x12d   :  { %v325_v24 = vpop.permute.xlu1 %324 }
 0x133   :  { %v321_v27 = vpop.permute.xlu0 %320 }
 0x134   :  { %v346_v28 = vsel %vm345_vm4, %v344_v26, %v321_v27 }
 0x135   :  { %v329_v29 = vpop.permute.xlu1 %328  ;;  %v348_v30 = vsel %vm347_vm5, %v346_v28, %v325_v24 }
 0x136   :  { %v350_v31 = vsel %vm349_vm6, %v348_v30, %v329_v29 }
 0x137   :  { %v352_v32 = vsel %vm351_vm7, %v350_v31, %v333_v25 }
 0x138   :  { %v354_v35 = vsel %vm353_vm8, %v352_v32, %v337_v33 }
 0x13b   :  { %v341_v34 = vpop.permute.xlu0 %340 }
 0x13c   :  { %v356_v36 = vsel %vm355_vm9, %v354_v35, %v341_v34 }
 0x13d   :  { %v359_v37 = vpack.c.bf16 %v356_v36, %v356_v36 }
 0x13f   :  { %v369_v38 = vsel %vm57_vm0, %v359_v37, 0 }
 0x140   :  { %378 = vmatpush.bf16.msra.mxu1 %v369_v38 }
 0x143   :  { %1201 = vmatmul.msk.bf16.vlgmr.msra.gmra.mxu1 %vm44_vm1, %v1206_v39 }
 0x1c0   :  { %v380_v40 = vpop.f32.mrf.mxu1 }
 0x1c1   :  { %393 = vrot.lane.b32.xlu2 %v380_v40, %s1224_s24  ;;  %411 = vrot.lane.b32.xlu0 %v380_v40, %s1222_s22  ;;  %v431_v63 = vrot.slane %v380_v40, 4 }
 0x1c2   :  { %417 = vrot.lane.b32.xlu1 %v380_v40, %s1223_s23 }
 0x1c8   :  { %v382_v42 = vpop.f32.mrf.mxu1 }
 0x1c9   :  { %387 = vrot.lane.b32.xlu2 %v380_v40, %s1226_s26  ;;  %423 = vrot.lane.b32.xlu0 %v380_v40, %s1220_s0  ;;  %v543_v9 = vrot.slane %v382_v42, 4 }
 0x1ca   :  { %405 = vrot.lane.b32.xlu1 %v380_v40, %s1225_s25 }
 0x1d1   :  { %395 = vrot.lane.b32.xlu0 %v382_v42, %s1224_s24  ;;  %419 = vrot.lane.b32.xlu2 %v382_v42, %s1223_s23 }
 0x1d2   :  { %413 = vrot.lane.b32.xlu1 %v382_v42, %s1222_s22 }
 0x1d9   :  { %389 = vrot.lane.b32.xlu0 %v382_v42, %s1226_s26  ;;  %407 = vrot.lane.b32.xlu2 %v382_v42, %s1225_s25 }
 0x1da   :  { %425 = vrot.lane.b32.xlu1 %v382_v42, %s1220_s0 }
 0x1e1   :  { %401 = vrot.lane.b32.xlu2 %v382_v42, %s1221_s21 }
 0x1e2   :  { %399 = vrot.lane.b32.xlu1 %v380_v40, %s1221_s21 }
 0x21b   :  { %v394_v43 = vpop.permute.xlu2 %393 }
 0x21c   :  { %v429_v58 = vrot.slane %v394_v43, 4  ;;  %v432_v5 = vsel %vm91_vm2, %v394_v43, %v431_v63 }
 0x21d   :  { %v1402_v16 = vperm.slane %v432_v5, %v1269_v19 }
 0x21e   :  { %v430_v4 = vsel %vm91_vm2, %v429_v58, %v380_v40 }
 0x21f   :  { %v1399_v15 = vperm.slane %v430_v4, %v1269_v19  ;;  %v491_v30 = vrot.slane %v1402_v16, 4 }
 0x221   :  { %v479_v29 = vrot.slane %v1399_v15, 4 }
 0x223   :  { %v1384_v44 = vpop.permute.xlu2 %387 }
 0x224   :  { %v443_v32 = vrot.slane %v1384_v44, 4 }
 0x22b   :  { %v420_v45 = vpop.permute.xlu2 %419 }
 0x22c   :  { %v565_v6 = vrot.slane %v420_v45, 4 }
 0x233   :  { %v412_v46 = vpop.permute.xlu0 %411  ;;  %v408_v54 = vpop.permute.xlu2 %407 }
 0x234   :  { %v418_v47 = vpop.permute.xlu1 %417  ;;  %v467_v48 = vrot.slane %v412_v46, 4  ;;  %v567_v0 = vrot.slane %v408_v54, 4  ;;  %v566_v10 = vsel %vm91_vm2, %v565_v6, %v408_v54 }
 0x235   :  { %v453_v49 = vrot.slane %v418_v47, 4  ;;  %v572_v21 = vperm.slane %v566_v10, %v1269_v19 }
 0x236   :  { %v568_v11 = vsel %vm91_vm2, %v420_v45, %v567_v0 }
 0x237   :  { %v576_v22 = vperm.slane %v568_v11, %v1269_v19  ;;  %v615_v36 = vrot.slane %v572_v21, 4 }
 0x239   :  { %v627_v37 = vrot.slane %v576_v22, 4 }
 0x23b   :  { %v424_v50 = vpop.permute.xlu0 %423  ;;  %v402_v24 = vpop.permute.xlu2 %401 }
 0x23c   :  { %v465_v51 = vrot.slane %v424_v50, 4  ;;  %v468_v52 = vsel %vm91_vm2, %v424_v50, %v467_v48  ;;  %v406_v53 = vpop.permute.xlu1 %405  ;;  %v553_v34 = vrot.slane %v402_v24, 4 }
 0x23d   :  { %v476_v55 = vperm.slane %v468_v52, %v1269_v19  ;;  %v454_v56 = vsel %vm91_vm2, %v453_v49, %v406_v53  ;;  %v455_v57 = vrot.slane %v406_v53, 4 }
 0x23e   :  { %v466_v59 = vsel %vm91_vm2, %v465_v51, %v412_v46  ;;  %v460_v60 = vperm.slane %v454_v56, %v1269_v19 }
 0x23f   :  { %v472_v61 = vperm.slane %v466_v59, %v1269_v19  ;;  %v456_v62 = vsel %vm91_vm2, %v418_v47, %v455_v57  ;;  %v513_v2 = vrot.slane %v476_v55, 4 }
 0x240   :  { %v464_v1 = vperm.slane %v456_v62, %v1269_v19  ;;  %v503_v3 = vrot.slane %v460_v60, 4 }
 0x241   :  { %v501_v7 = vrot.slane %v472_v61, 4 }
 0x242   :  { %v515_v12 = vrot.slane %v464_v1, 4  ;;  %v504_v17 = vsel %vm91_vm2, %v472_v61, %v503_v3  ;;  %v514_v18 = vsel %vm91_vm2, %v513_v2, %v464_v1 }
 0x243   :  { %v396_v8 = vpop.permute.xlu0 %395  ;;  %v502_v23 = vsel %vm91_vm2, %v501_v7, %v460_v60  ;;  %v1412_v26 = vperm.slane %v504_v17, %v1282_v41  ;;  %v1416_v28 = vperm.slane %v514_v18, %v1282_v41 }
 0x244   :  { %v541_v13 = vrot.slane %v396_v8, 4  ;;  %v414_v14 = vpop.permute.xlu1 %413  ;;  %v544_v25 = vsel %vm91_vm2, %v396_v8, %v543_v9  ;;  %v516_v27 = vsel %vm91_vm2, %v476_v55, %v515_v12  ;;  %v1423_v33 = vperm.slane %v502_v23, %v1282_v41 }
 0x245   :  { %v552_v35 = vperm.slane %v544_v25, %v1269_v19  ;;  %v1427_v38 = vperm.slane %v516_v27, %v1282_v41  ;;  %v579_v39 = vrot.slane %v414_v14, 4  ;;  %v533_v43 = vrot.slane %v1416_v28, 4 }
 0x246   :  { %v542_v20 = vsel %vm91_vm2, %v541_v13, %v382_v42  ;;  %v529_v42 = vrot.slane %v1412_v26, 4  ;;  %v525_v52 = vrot.slane %v1423_v33, 4 }
 0x247   :  { %v548_v31 = vperm.slane %v542_v20, %v1269_v19  ;;  %v603_v53 = vrot.slane %v552_v35, 4 }
 0x249   :  { %v591_v48 = vrot.slane %v548_v31, 4 }
 0x24b   :  { %v390_v40 = vpop.permute.xlu0 %389 }
 0x24c   :  { %v554_v45 = vsel %vm91_vm2, %v553_v34, %v390_v40  ;;  %v555_v46 = vrot.slane %v390_v40, 4  ;;  %v426_v47 = vpop.permute.xlu1 %425 }
 0x24d   :  { %v560_v49 = vperm.slane %v554_v45, %v1269_v19  ;;  %v577_v50 = vrot.slane %v426_v47, 4  ;;  %v580_v51 = vsel %vm91_vm2, %v426_v47, %v579_v39 }
 0x24e   :  { %v556_v54 = vsel %vm91_vm2, %v402_v24, %v555_v46  ;;  %v588_v55 = vperm.slane %v580_v51, %v1269_v19 }
 0x24f   :  { %v564_v56 = vperm.slane %v556_v54, %v1269_v19  ;;  %v589_v57 = vrot.slane %v560_v49, 4  ;;  %v592_v58 = vsel %vm91_vm2, %v560_v49, %v591_v48  ;;  %v578_v59 = vsel %vm91_vm2, %v577_v50, %v414_v14 }
 0x250   :  { %v600_v60 = vperm.slane %v592_v58, %v1282_v41  ;;  %v584_v61 = vperm.slane %v578_v59, %v1269_v19  ;;  %v625_v62 = vrot.slane %v588_v55, 4  ;;  %v628_v63 = vsel %vm91_vm2, %v588_v55, %v627_v37 }
 0x251   :  { %v590_v0 = vsel %vm91_vm2, %v589_v57, %v548_v31  ;;  %v601_v1 = vrot.slane %v564_v56, 4  ;;  %v604_v2 = vsel %vm91_vm2, %v564_v56, %v603_v53  ;;  %v636_v3 = vperm.slane %v628_v63, %v1282_v41 }
 0x252   :  { %v596_v4 = vperm.slane %v590_v0, %v1282_v41  ;;  %v612_v5 = vperm.slane %v604_v2, %v1282_v41  ;;  %v643_v6 = vrot.slane %v600_v60, 4  ;;  %v613_v7 = vrot.slane %v584_v61, 4 }
 0x253   :  { %v602_v8 = vsel %vm91_vm2, %v601_v1, %v552_v35  ;;  %v616_v9 = vsel %vm91_vm2, %v584_v61, %v615_v36  ;;  %v626_v10 = vsel %vm91_vm2, %v625_v62, %v576_v22  ;;  %v649_v11 = vrot.slane %v636_v3, 4 }
 0x254   :  { %v608_v12 = vperm.slane %v602_v8, %v1282_v41  ;;  %v639_v13 = vrot.slane %v596_v4, 4  ;;  %v651_v14 = vrot.slane %v612_v5, 4  ;;  %v614_v17 = vsel %vm91_vm2, %v613_v7, %v572_v21  ;;  %v400_v18 = vpop.permute.xlu1 %399 }
 0x255   :  { %v620_v20 = vperm.slane %v614_v17, %v1282_v41  ;;  %v624_v23 = vperm.slane %v616_v9, %v1282_v41  ;;  %v632_v24 = vperm.slane %v626_v10, %v1282_v41  ;;  %v650_v25 = vsel %vm91_vm2, %v649_v11, %v612_v5 }
 0x256   :  { %v647_v27 = vrot.slane %v608_v12, 4  ;;  %v652_v31 = vsel %vm91_vm2, %v636_v3, %v651_v14  ;;  %v789_v22 = vrot.slane %v650_v25, 4  ;;  %v441_v34 = vrot.slane %v400_v18, 4 }
 0x257   :  { %v637_v35 = vrot.slane %v620_v20, 4  ;;  %v640_v36 = vsel %vm91_vm2, %v620_v20, %v639_v13  ;;  %v641_v37 = vrot.slane %v624_v23, 4  ;;  %v644_v21 = vsel %vm91_vm2, %v624_v23, %v643_v6 }
 0x258   :  { %v645_v39 = vrot.slane %v632_v24, 4  ;;  %v648_v40 = vsel %vm91_vm2, %v632_v24, %v647_v27  ;;  %v777_v45 = vrot.slane %v644_v21, 4  ;;  %v779_v46 = vrot.slane %v640_v36, 4 }
 0x259   :  { %v638_v47 = vsel %vm91_vm2, %v637_v35, %v596_v4  ;;  %v642_v48 = vsel %vm91_vm2, %v641_v37, %v600_v60  ;;  %v801_v49 = vrot.slane %v652_v31, 4  ;;  %v803_v50 = vrot.slane %v648_v40, 4 }
 0x25a   :  { %v646_v51 = vsel %vm91_vm2, %v645_v39, %v608_v12  ;;  %v765_v53 = vrot.slane %v642_v48, 4  ;;  %v767_v54 = vrot.slane %v638_v47, 4  ;;  %v778_v55 = vsel %vm91_vm2, %v777_v45, %v640_v36 }
 0x25b   :  { %v780_v56 = vsel %vm91_vm2, %v644_v21, %v779_v46  ;;  %v784_v57 = vperm.slane %v778_v55, %v1269_v19  ;;  %v790_v58 = vsel %vm91_vm2, %v789_v22, %v646_v51  ;;  %v791_v59 = vrot.slane %v646_v51, 4 }
 0x25c   :  { %v766_v61 = vsel %vm91_vm2, %v765_v53, %v638_v47  ;;  %v768_v62 = vsel %vm91_vm2, %v642_v48, %v767_v54  ;;  %v1471_v60 = vperm.slane %v780_v56, %v1269_v19  ;;  %v1474_v63 = vperm.slane %v790_v58, %v1269_v19 }
 0x25d   :  { %v772_v0 = vperm.slane %v766_v61, %v1269_v19  ;;  %v1478_v1 = vperm.slane %v768_v62, %v1269_v19  ;;  %v792_v2 = vsel %vm91_vm2, %v650_v25, %v791_v59  ;;  %v802_v3 = vsel %vm91_vm2, %v801_v49, %v648_v40 }
 0x25e   :  { %v1483_v4 = vperm.slane %v792_v2, %v1269_v19  ;;  %v804_v5 = vsel %vm91_vm2, %v652_v31, %v803_v50  ;;  %v1487_v6 = vperm.slane %v802_v3, %v1269_v19  ;;  %v813_v7 = vrot.slane %v784_v57, 4 }
 0x25f   :  { %v537_v8 = vrot.slane %v1427_v38, 4  ;;  %v1491_v9 = vperm.slane %v804_v5, %v1269_v19  ;;  %v815_v10 = vrot.slane %v772_v0, 4  ;;  %v825_v11 = vrot.slane %v1471_v60, 4 }
 0x260   :  { %v827_v12 = vrot.slane %v1478_v1, 4  ;;  %v839_v13 = vrot.slane %v1474_v63, 4  ;;  %v851_v14 = vrot.slane %v1483_v4, 4  ;;  %v442_v17 = vsel %vm91_vm2, %v441_v34, %v1384_v44 }
 0x261   :  { %v837_v20 = vrot.slane %v1487_v6, 4  ;;  %v444_v23 = vsel %vm91_vm2, %v400_v18, %v443_v32  ;;  %v448_v24 = vperm.slane %v442_v17, %v1269_v19  ;;  %v814_v25 = vsel %vm91_vm2, %v813_v7, %v772_v0 }
 0x262   :  { %v840_v27 = vsel %vm91_vm2, %v1487_v6, %v839_v13  ;;  %v852_v31 = vsel %vm91_vm2, %v1491_v9, %v851_v14  ;;  %v452_v22 = vperm.slane %v444_v23, %v1269_v19  ;;  %v816_v34 = vsel %vm91_vm2, %v784_v57, %v815_v10 }
 0x263   :  { %v1512_v35 = vperm.slane %v840_v27, %v1282_v41  ;;  %v849_v44 = vrot.slane %v1491_v9, 4  ;;  %v477_v32 = vrot.slane %v448_v24, 4  ;;  %v480_v18 = vsel %vm91_vm2, %v448_v24, %v479_v29 }
 0x264   :  { %v1519_v36 = vperm.slane %v852_v31, %v1282_v41  ;;  %v488_v37 = vperm.slane %v480_v18, %v1282_v41  ;;  %v489_v21 = vrot.slane %v452_v22, 4  ;;  %v492_v39 = vsel %vm91_vm2, %v452_v22, %v491_v30 }
 0x265   :  { %v478_v40 = vsel %vm91_vm2, %v477_v32, %v1399_v15  ;;  %v500_v45 = vperm.slane %v492_v39, %v1282_v41  ;;  %v1529_v46 = vperm.slane %v814_v25, %v1282_v41  ;;  %v1532_v29 = vperm.slane %v816_v34, %v1282_v41 }
 0x266   :  { %v484_v47 = vperm.slane %v478_v40, %v1282_v41  ;;  %v490_v48 = vsel %vm91_vm2, %v489_v21, %v1402_v16  ;;  %v530_v30 = vsel %vm91_vm2, %v529_v42, %v488_v37  ;;  %v531_v49 = vrot.slane %v488_v37, 4 }
 0x267   :  { %v496_v15 = vperm.slane %v490_v48, %v1282_v41  ;;  %v538_v50 = vsel %vm91_vm2, %v537_v8, %v500_v45  ;;  %v539_v51 = vrot.slane %v500_v45, 4  ;;  %v653_v53 = vrot.slane %v530_v30, 4 }
 0x268   :  { %v526_v54 = vsel %vm91_vm2, %v525_v52, %v484_v47  ;;  %v527_v55 = vrot.slane %v484_v47, 4  ;;  %v532_v56 = vsel %vm91_vm2, %v1412_v26, %v531_v49  ;;  %v677_v16 = vrot.slane %v538_v50, 4 }
 0x269   :  { %v534_v42 = vsel %vm91_vm2, %v533_v43, %v496_v15  ;;  %v535_v57 = vrot.slane %v496_v15, 4  ;;  %v540_v58 = vsel %vm91_vm2, %v1427_v38, %v539_v51  ;;  %v654_v59 = vsel %vm91_vm2, %v653_v53, %v526_v54 }
 0x26a   :  { %v528_v61 = vsel %vm91_vm2, %v1423_v33, %v527_v55  ;;  %v655_v62 = vrot.slane %v526_v54, 4  ;;  %v660_v52 = vperm.slane %v654_v59, %v1269_v19  ;;  %v665_v0 = vrot.slane %v532_v56, 4 }
 0x26b   :  { %v536_v26 = vsel %vm91_vm2, %v1416_v28, %v535_v57  ;;  %v667_v2 = vrot.slane %v528_v61, 4  ;;  %v678_v3 = vsel %vm91_vm2, %v677_v16, %v534_v42  ;;  %v679_v43 = vrot.slane %v534_v42, 4 }
 0x26c   :  { %v656_v5 = vsel %vm91_vm2, %v530_v30, %v655_v62  ;;  %v666_v38 = vsel %vm91_vm2, %v665_v0, %v528_v61  ;;  %v684_v7 = vperm.slane %v678_v3, %v1269_v19  ;;  %v689_v8 = vrot.slane %v540_v58, 4 }
 0x26d   :  { %v664_v33 = vperm.slane %v656_v5, %v1269_v19  ;;  %v668_v10 = vsel %vm91_vm2, %v532_v56, %v667_v2  ;;  %v672_v13 = vperm.slane %v666_v38, %v1269_v19  ;;  %v680_v14 = vsel %vm91_vm2, %v538_v50, %v679_v43 }
 0x26e   :  { %v676_v28 = vperm.slane %v668_v10, %v1269_v19  ;;  %v688_v17 = vperm.slane %v680_v14, %v1269_v19  ;;  %v690_v23 = vsel %vm91_vm2, %v689_v8, %v536_v26  ;;  %v691_v24 = vrot.slane %v536_v26, 4 }
 0x26f   :  { %v696_v25 = vperm.slane %v690_v23, %v1269_v19  ;;  %v701_v27 = vrot.slane %v672_v13, 4  ;;  %v703_v31 = vrot.slane %v660_v52, 4  ;;  %v715_v22 = vrot.slane %v664_v33, 4 }
 0x270   :  { %v692_v34 = vsel %vm91_vm2, %v540_v58, %v691_v24  ;;  %v713_v32 = vrot.slane %v676_v28, 4  ;;  %v727_v18 = vrot.slane %v684_v7, 4  ;;  %v739_v37 = vrot.slane %v688_v17, 4 }
 0x271   :  { %v700_v21 = vperm.slane %v692_v34, %v1269_v19  ;;  %v725_v39 = vrot.slane %v696_v25, 4  ;;  %v702_v40 = vsel %vm91_vm2, %v701_v27, %v660_v52  ;;  %v704_v45 = vsel %vm91_vm2, %v672_v13, %v703_v31 }
 0x272   :  { %v728_v47 = vsel %vm91_vm2, %v696_v25, %v727_v18  ;;  %v708_v48 = vperm.slane %v702_v40, %v1282_v41  ;;  %v712_v30 = vperm.slane %v704_v45, %v1282_v41  ;;  %v714_v49 = vsel %vm91_vm2, %v713_v32, %v664_v33 }
 0x273   :  { %v737_v15 = vrot.slane %v700_v21, 4  ;;  %v740_v50 = vsel %vm91_vm2, %v700_v21, %v739_v37  ;;  %v716_v51 = vsel %vm91_vm2, %v676_v28, %v715_v22  ;;  %v720_v53 = vperm.slane %v714_v49, %v1282_v41 }
 0x274   :  { %v724_v54 = vperm.slane %v716_v51, %v1282_v41  ;;  %v726_v55 = vsel %vm91_vm2, %v725_v39, %v684_v7  ;;  %v736_v56 = vperm.slane %v728_v47, %v1282_v41  ;;  %v748_v16 = vperm.slane %v740_v50, %v1282_v41 }
 0x275   :  { %v732_v42 = vperm.slane %v726_v55, %v1282_v41  ;;  %v738_v57 = vsel %vm91_vm2, %v737_v15, %v688_v17  ;;  %v751_v58 = vrot.slane %v708_v48, 4  ;;  %v755_v59 = vrot.slane %v712_v30, 4 }
 0x276   :  { %v744_v61 = vperm.slane %v738_v57, %v1282_v41  ;;  %v753_v62 = vrot.slane %v736_v56, 4  ;;  %v759_v52 = vrot.slane %v720_v53, 4  ;;  %v761_v0 = vrot.slane %v748_v16, 4 }
 0x277   :  { %v749_v26 = vrot.slane %v732_v42, 4  ;;  %v752_v2 = vsel %vm91_vm2, %v732_v42, %v751_v58  ;;  %v756_v3 = vsel %vm91_vm2, %v736_v56, %v755_v59  ;;  %v763_v43 = vrot.slane %v724_v54, 4 }
 0x278   :  { %v754_v5 = vsel %vm91_vm2, %v753_v62, %v712_v30  ;;  %v757_v38 = vrot.slane %v744_v61, 4  ;;  %v760_v7 = vsel %vm91_vm2, %v744_v61, %v759_v52  ;;  %v762_v8 = vsel %vm91_vm2, %v761_v0, %v724_v54 }
 0x279   :  { %v750_v33 = vsel %vm91_vm2, %v749_v26, %v708_v48  ;;  %v764_v10 = vsel %vm91_vm2, %v748_v16, %v763_v43  ;;  %v877_v13 = vrot.slane %v754_v5, 4  ;;  %v889_v14 = vrot.slane %v756_v3, 4 }
 0x27a   :  { %v758_v28 = vsel %vm91_vm2, %v757_v38, %v720_v53  ;;  %v901_v17 = vrot.slane %v762_v8, 4  ;;  %v913_v23 = vrot.slane %v764_v10, 4  ;;  %v915_v24 = vrot.slane %v760_v7, 4 }
 0x27b   :  { %v878_v25 = vsel %vm91_vm2, %v877_v13, %v750_v33  ;;  %v890_v27 = vsel %vm91_vm2, %v889_v14, %v752_v2  ;;  %v903_v31 = vrot.slane %v758_v28, 4  ;;  %v879_v22 = vrot.slane %v750_v33, 4 }
 0x27c   :  { %v884_v34 = vperm.slane %v878_v25, %v1269_v19  ;;  %v896_v32 = vperm.slane %v890_v27, %v1269_v19  ;;  %v902_v18 = vsel %vm91_vm2, %v901_v17, %v758_v28  ;;  %v914_v37 = vsel %vm91_vm2, %v913_v23, %v760_v7 }
 0x27d   :  { %v908_v21 = vperm.slane %v902_v18, %v1269_v19  ;;  %v920_v39 = vperm.slane %v914_v37, %v1269_v19  ;;  %v880_v40 = vsel %vm91_vm2, %v754_v5, %v879_v22  ;;  %v891_v45 = vrot.slane %v752_v2, 4 }
 0x27e   :  { %v927_v47 = vrot.slane %v884_v34, 4  ;;  %v925_v48 = vrot.slane %v896_v32, 4  ;;  %v888_v30 = vperm.slane %v880_v40, %v1269_v19  ;;  %v904_v49 = vsel %vm91_vm2, %v762_v8, %v903_v31 }
 0x27f   :  { %v951_v15 = vrot.slane %v908_v21, 4  ;;  %v949_v50 = vrot.slane %v920_v39, 4  ;;  %v892_v51 = vsel %vm91_vm2, %v756_v3, %v891_v45  ;;  %v912_v53 = vperm.slane %v904_v49, %v1269_v19 }
 0x280   :  { %v928_v54 = vsel %vm91_vm2, %v896_v32, %v927_v47  ;;  %v926_v55 = vsel %vm91_vm2, %v925_v48, %v884_v34  ;;  %v900_v56 = vperm.slane %v892_v51, %v1269_v19  ;;  %v916_v16 = vsel %vm91_vm2, %v764_v10, %v915_v24 }
 0x281   :  { %v936_v42 = vperm.slane %v928_v54, %v1282_v41  ;;  %v952_v57 = vsel %vm91_vm2, %v920_v39, %v951_v15  ;;  %v1616_v58 = vperm.slane %v926_v55, %v1282_v41  ;;  %v950_v59 = vsel %vm91_vm2, %v949_v50, %v908_v21 }
 0x282   :  { %v960_v61 = vperm.slane %v952_v57, %v1282_v41  ;;  %v1621_v62 = vperm.slane %v950_v59, %v1282_v41  ;;  %v924_v52 = vperm.slane %v916_v16, %v1269_v19  ;;  %v939_v0 = vrot.slane %v888_v30, 4 }
 0x283   :  { %v979_v26 = vrot.slane %v936_v42, 4  ;;  %v975_v2 = vrot.slane %v1616_v58, 4  ;;  %v963_v3 = vrot.slane %v912_v53, 4  ;;  %v937_v43 = vrot.slane %v900_v56, 4 }
 0x284   :  { %v977_v5 = vrot.slane %v960_v61, 4  ;;  %v940_v38 = vsel %vm91_vm2, %v900_v56, %v939_v0  ;;  %v961_v7 = vrot.slane %v924_v52, 4  ;;  %v826_v8 = vsel %vm91_vm2, %v825_v11, %v1478_v1 }
 0x285   :  { %v980_v33 = vsel %vm91_vm2, %v960_v61, %v979_v26  ;;  %v976_v10 = vsel %vm91_vm2, %v1621_v62, %v975_v2  ;;  %v1634_v13 = vperm.slane %v940_v38, %v1282_v41  ;;  %v964_v14 = vsel %vm91_vm2, %v924_v52, %v963_v3 }
 0x286   :  { %1110 = vrot.lane.b32.xlu1 %v980_v33, %s1222_s22  ;;  %1102 = vrot.lane.b32.xlu0 %v976_v10, %s1220_s0  ;;  %v978_v28 = vsel %vm91_vm2, %v977_v5, %v936_v42  ;;  %v1641_v17 = vperm.slane %v964_v14, %v1282_v41  ;;  %v938_v11 = vsel %vm91_vm2, %v937_v43, %v888_v30  ;;  %v863_v23 = vrot.slane %v1529_v46, 4 }
 0x287   :  { %1106 = vrot.lane.b32.xlu2 %v978_v28, %s1223_s23  ;;  %v944_v24 = vperm.slane %v938_v11, %v1282_v41  ;;  %v962_v25 = vsel %vm91_vm2, %v961_v7, %v912_v53  ;;  %v828_v27 = vsel %vm91_vm2, %v1471_v60, %v827_v12  ;;  %v832_v31 = vperm.slane %v826_v8, %v1282_v41 }
 0x288   :  { %v985_v22 = vrot.slane %v1641_v17, 4  ;;  %v968_v34 = vperm.slane %v962_v25, %v1282_v41  ;;  %v836_v32 = vperm.slane %v828_v27, %v1282_v41  ;;  %v838_v18 = vsel %vm91_vm2, %v837_v20, %v1474_v63 }
 0x289   :  { %v983_v37 = vrot.slane %v944_v24, 4  ;;  %v844_v21 = vperm.slane %v838_v18, %v1282_v41  ;;  %v850_v60 = vsel %vm91_vm2, %v849_v44, %v1483_v4  ;;  %v865_v1 = vrot.slane %v1512_v35, 4 }
 0x28a   :  { %v986_v12 = vsel %vm91_vm2, %v985_v22, %v1634_v13  ;;  %v981_v39 = vrot.slane %v968_v34, 4  ;;  %v856_v40 = vperm.slane %v850_v60, %v1282_v41  ;;  %v867_v6 = vrot.slane %v1532_v29, 4 }
 0x28b   :  { %v984_v63 = vsel %vm91_vm2, %v968_v34, %v983_v37  ;;  %v861_v20 = vrot.slane %v844_v21, 4  ;;  %v864_v45 = vsel %vm91_vm2, %v844_v21, %v863_v23  ;;  %v866_v9 = vsel %vm91_vm2, %v865_v1, %v1532_v29 }
 0x28c   :  { %v982_v4 = vsel %vm91_vm2, %v981_v39, %v944_v24  ;;  %v868_v44 = vsel %vm91_vm2, %v1512_v35, %v867_v6  ;;  %v869_v47 = vrot.slane %v856_v40, 4  ;;  %v871_v48 = vrot.slane %v832_v31, 4 }
 0x28d   :  { %v862_v30 = vsel %vm91_vm2, %v861_v20, %v1529_v46  ;;  %v873_v49 = vrot.slane %v1519_v36, 4  ;;  %v875_v15 = vrot.slane %v836_v32, 4  ;;  %v989_v50 = vrot.slane %v866_v9, 4 }
 0x28e   :  { %1122 = vrot.lane.b32.xlu1 %v986_v12, %s1224_s24  ;;  %1114 = vrot.lane.b32.xlu0 %v982_v4, %s1225_s25  ;;  %v870_v29 = vsel %vm91_vm2, %v869_v47, %v832_v31  ;;  %v872_v51 = vsel %vm91_vm2, %v856_v40, %v871_v48  ;;  %v1001_v53 = vrot.slane %v868_v44, 4  ;;  %v991_v54 = vrot.slane %v862_v30, 4 }
 0x28f   :  { %1118 = vrot.lane.b32.xlu2 %v984_v63, %s1221_s21  ;;  %v874_v35 = vsel %vm91_vm2, %v873_v49, %v836_v32  ;;  %v876_v46 = vsel %vm91_vm2, %v1519_v36, %v875_v15  ;;  %v990_v55 = vsel %vm91_vm2, %v989_v50, %v862_v30  ;;  %v1015_v56 = vrot.slane %v870_v29, 4 }
 0x290   :  { %v996_v16 = vperm.slane %v990_v55, %v1269_v19  ;;  %v1002_v42 = vsel %vm91_vm2, %v1001_v53, %v864_v45  ;;  %v1013_v57 = vrot.slane %v874_v35, 4  ;;  %v1025_v59 = vrot.slane %v876_v46, 4 }
 0x291   :  { %v1008_v61 = vperm.slane %v1002_v42, %v1269_v19  ;;  %v1027_v52 = vrot.slane %v872_v51, 4  ;;  %v992_v0 = vsel %vm91_vm2, %v866_v9, %v991_v54  ;;  %v1003_v26 = vrot.slane %v864_v45, 4 }
 0x292   :  { %v1014_v2 = vsel %vm91_vm2, %v1013_v57, %v870_v29  ;;  %v1026_v3 = vsel %vm91_vm2, %v1025_v59, %v872_v51  ;;  %v1039_v36 = vrot.slane %v996_v16, 4  ;;  %v1000_v43 = vperm.slane %v992_v0, %v1269_v19 }
 0x293   :  { %v1020_v5 = vperm.slane %v1014_v2, %v1269_v19  ;;  %v1032_v38 = vperm.slane %v1026_v3, %v1269_v19  ;;  %v1037_v7 = vrot.slane %v1008_v61, 4  ;;  %v1004_v8 = vsel %vm91_vm2, %v868_v44, %v1003_v26 }
 0x294   :  { %v1040_v33 = vsel %vm91_vm2, %v1008_v61, %v1039_v36  ;;  %v1012_v10 = vperm.slane %v1004_v8, %v1269_v19  ;;  %v1016_v14 = vsel %vm91_vm2, %v874_v35, %v1015_v56  ;;  %v1028_v28 = vsel %vm91_vm2, %v876_v46, %v1027_v52 }
 0x295   :  { %v1038_v11 = vsel %vm91_vm2, %v1037_v7, %v996_v16  ;;  %v1061_v23 = vrot.slane %v1032_v38, 4  ;;  %v1048_v24 = vperm.slane %v1040_v33, %v1282_v41  ;;  %v1063_v25 = vrot.slane %v1020_v5, 4 }
 0x296   :  { %v1044_v27 = vperm.slane %v1038_v11, %v1282_v41  ;;  %v1024_v31 = vperm.slane %v1016_v14, %v1269_v19  ;;  %v1036_v22 = vperm.slane %v1028_v28, %v1269_v19  ;;  %v1049_v34 = vrot.slane %v1012_v10, 4 }
 0x297   :  { %v1062_v32 = vsel %vm91_vm2, %v1061_v23, %v1020_v5  ;;  %v1064_v18 = vsel %vm91_vm2, %v1032_v38, %v1063_v25  ;;  %v1091_v37 = vrot.slane %v1048_v24, 4  ;;  %v973_v21 = vrot.slane %v1621_v62, 4 }
 0x298   :  { %v1068_v60 = vperm.slane %v1062_v32, %v1282_v41  ;;  %v1087_v1 = vrot.slane %v1044_v27, 4  ;;  %v1072_v12 = vperm.slane %v1064_v18, %v1282_v41  ;;  %v1050_v39 = vsel %vm91_vm2, %v1049_v34, %v1000_v43 }
 0x299   :  { %v1073_v40 = vrot.slane %v1036_v22, 4  ;;  %v1051_v6 = vrot.slane %v1000_v43, 4  ;;  %v1075_v63 = vrot.slane %v1024_v31, 4  ;;  %v1056_v47 = vperm.slane %v1050_v39, %v1282_v41 }
 0x29a   :  { %v1085_v20 = vrot.slane %v1068_v60, 4  ;;  %v1088_v19 = vsel %vm91_vm2, %v1068_v60, %v1087_v1  ;;  %v1092_v45 = vsel %vm91_vm2, %v1072_v12, %v1091_v37  ;;  %v1089_v9 = vrot.slane %v1072_v12, 4 }
 0x29b   :  { %1130 = vrot.lane.b32.xlu1 %v1088_v19, %s1220_s0  ;;  %1138 = vrot.lane.b32.xlu2 %v1092_v45, %s1222_s22  ;;  %v1074_v62 = vsel %vm91_vm2, %v1073_v40, %v1024_v31  ;;  %v1076_v4 = vsel %vm91_vm2, %v1036_v22, %v1075_v63  ;;  %v1052_v49 = vsel %vm91_vm2, %v1012_v10, %v1051_v6  ;;  %v1095_v54 = vrot.slane %v1056_v47, 4 }
 0x29c   :  { %v1090_v44 = vsel %vm91_vm2, %v1089_v9, %v1048_v24  ;;  %v1080_v48 = vperm.slane %v1074_v62, %v1282_v41  ;;  %v1084_v30 = vperm.slane %v1076_v4, %v1282_v41  ;;  %v974_v15 = vsel %vm91_vm2, %v973_v21, %v1616_v58 }
 0x29d   :  { %1134 = vrot.lane.b32.xlu0 %v1090_v44, %s1223_s23  ;;  %v1086_v50 = vsel %vm91_vm2, %v1085_v20, %v1044_v27  ;;  %v1060_v53 = vperm.slane %v1052_v49, %v1282_v41  ;;  %v987_v56 = vrot.slane %v1634_v13, 4 }
 0x29e   :  { %v1093_v29 = vrot.slane %v1080_v48, 4  ;;  %v1097_v51 = vrot.slane %v1084_v30, 4  ;;  %v1096_v55 = vsel %vm91_vm2, %v1080_v48, %v1095_v54 }
 0x29f   :  { %v1099_v58 = vrot.slane %v1060_v53, 4  ;;  %v988_v41 = vsel %vm91_vm2, %v1641_v17, %v987_v56 }
 0x2a0   :  { %v1094_v35 = vsel %vm91_vm2, %v1093_v29, %v1056_v47  ;;  %v1098_v46 = vsel %vm91_vm2, %v1097_v51, %v1060_v53 }
 0x2a1   :  { %v1100_v16 = vsel %vm91_vm2, %v1084_v30, %v1099_v58 }
 0x2a3   :  { %1142 = vrot.lane.b32.xlu1 %v1094_v35, %s1225_s25  ;;  %1150 = vrot.lane.b32.xlu2 %v1098_v46, %s1224_s24 }
 0x2a5   :  { %1146 = vrot.lane.b32.xlu0 %v1096_v55, %s1221_s21 }
 0x2ab   :  { %1154 = vrot.lane.b32.xlu1 %v1100_v16, %s1226_s26 }
 0x2ad   :  { %1126 = vrot.lane.b32.xlu0 %v988_v41, %s1226_s26 }
 0x2e1   :  { %v1107_v59 = vpop.permute.xlu2 %1106 }
 0x2e9   :  { %v1119_v0 = vpop.permute.xlu2 %1118 }
 0x2f5   :  { %v1139_v13 = vpop.permute.xlu2 %1138 }
 0x2f8   :  { %v1111_v42 = vpop.permute.xlu1 %1110  ;;  %v1103_v57 = vpop.permute.xlu0 %1102 }
 0x2f9   :  { %v1157_v36 = vsel %vm343_vm3, %v974_v15, %v1103_v57 }
 0x2fa   :  { %v1158_v5 = vsel %vm345_vm4, %v1157_v36, %v1107_v59 }
 0x2fb   :  { %v1159_v33 = vsel %vm347_vm5, %v1158_v5, %v1111_v42 }
 0x2fd   :  { %v1151_v28 = vpop.permute.xlu2 %1150 }
 0x300   :  { %v1123_v61 = vpop.permute.xlu1 %1122  ;;  %v1115_v52 = vpop.permute.xlu0 %1114 }
 0x301   :  { %v1160_v10 = vsel %vm349_vm6, %v1159_v33, %v1115_v52 }
 0x302   :  { %v1161_v11 = vsel %vm351_vm7, %v1160_v10, %v1119_v0 }
 0x303   :  { %v1162_v27 = vsel %vm353_vm8, %v1161_v11, %v1123_v61 }
 0x30d   :  { %v1131_v26 = vpop.permute.xlu1 %1130 }
 0x30e   :  { %v1164_v3 = vsel %vm343_vm3, %v1086_v50, %v1131_v26 }
 0x30f   :  { %v1135_v2 = vpop.permute.xlu0 %1134 }
 0x310   :  { %v1165_v43 = vsel %vm345_vm4, %v1164_v3, %v1135_v2 }
 0x311   :  { %v1166_v38 = vsel %vm347_vm5, %v1165_v43, %v1139_v13 }
 0x315   :  { %v1143_v17 = vpop.permute.xlu1 %1142 }
 0x316   :  { %v1167_v7 = vsel %vm349_vm6, %v1166_v38, %v1143_v17 }
 0x317   :  { %v1147_v8 = vpop.permute.xlu0 %1146 }
 0x318   :  { %v1168_v14 = vsel %vm351_vm7, %v1167_v7, %v1147_v8 }
 0x319   :  { %v1169_v24 = vsel %vm353_vm8, %v1168_v14, %v1151_v28 }
 0x31d   :  { %v1155_v23 = vpop.permute.xlu1 %1154 }
 0x31e   :  { %v1170_v25 = vsel %vm355_vm9, %v1169_v24, %v1155_v23 }
 0x31f   :  { %1172 = vst [vmem:[%s1765_s3 + $0x8] sm:$0xff] %v1170_v25  ;;  %v1127_v31 = vpop.permute.xlu0 %1126 }
 0x320   :  { %v1163_v22 = vsel %vm355_vm9, %v1162_v27, %v1127_v31 }
 0x321   :  { %1171 = vst [vmem:[%s1765_s3] sm:$0xff] %v1163_v22 }

// kernel: up_forward.13
= control target key start
LH: loop header
LB: loop body
LE: loop exit
PB: predicated region body
PF: predicated region fallthrough
CT: control target
= control target key end

     0   :  { %s648_s15 = smov 0   ;;  %s650_s16 = smov 0   ;;  %s747_s0 = inlined_call_operand.vmem [shape: bf16[8,16], index: 0, kind: input, shape index: {}]   ;;  %s748_s1 = inlined_call_operand.vmem [shape: bf16[16,512], index: 1, kind: input, shape index: {}]   ;;  %s749_s2 = inlined_call_operand.vmem [shape: bf16[8,512], index: 2, kind: output, shape index: {0}]   ;;  %s750_s3 = inlined_call_operand.vmem [shape: f32[2,8,1], index: 3, kind: output, shape index: {1}]   ;;  %s751_s4 = inlined_call_operand.vmem [shape: f32[2,8,1], index: 4, kind: output, shape index: {2}]  }
   0x1   :  { %s652_s17 = smov 0   ;;  %s654_s18 = smov 0  }
   0x2   :  { %s656_s19 = smov 0   ;;  %s658_s20 = smov 0  }
   0x3   :  { %s660_s21 = smov 0  }
   0x4 LB: > { %s24_s22 = sadd.s32 1, %s612_s19  ;;  %s27_s23 = sadd.s32 1, %s616_s20  ;;  %s620_s21 = sphi %s660_s21, %s15_s21   ;;  %s616_s20 = sphi %s658_s20, %s757_s20   ;;  %s612_s19 = sphi %s656_s19, %s756_s19   ;;  %s608_s18 = sphi %s654_s18, %s755_s18   ;;  %s604_s17 = sphi %s652_s17, %s754_s17   ;;  %s600_s16 = sphi %s650_s16, %s753_s16   ;;  %s596_s15 = sphi %s648_s15, %s752_s15  }
   0x5   : > { %p25_p0 = scmp.ge.s32.totalorder %s24_s22, 2  ;;  %p66_p1 = scmp.ne.s32.totalorder %s600_s16, %s596_s15 }
   0x6   : > { %p67_p2 = scmp.eq.s32.totalorder %s620_s21, 0  ;;  %s485_s24 = sshll.u32 %s616_s20, 1 }
   0x7   : > { %s759_s22 = smov (%p25_p0, %s24_s22), 0  ;;  %s761_s23 = smov (!%p25_p0, %s27_s23), %s616_s20 }
   0x8   : > { %p29_p3 = scmp.ge.s32.totalorder %s761_s23, 2  ;;  %p68_p4 = por %p67_p2, %p66_p1 }
   0x9   : > { %s53_s25 = sadd.s32 %s612_s19, %s485_s24  ;;  %s59_s29 = sadd.s32 1, %s600_s16 }
   0xa   : > { %s763_s23 = smov (%p29_p3, %s761_s23), 0  ;;  %p490_p6 = scmp.ge.s32.totalorder %s620_s21, 4 }
   0xb   : > { %s486_s26 = sshll.u32 %s763_s23, 1 }
   0xc   : > { %s55_s27 = sadd.s32 %s486_s26, %s759_s22  ;;  %177 = sbr.rel (%p490_p6) target bundleno = 23 (0x17), region = 20 }
   0xd   : > { %s56_s28 = ssub.s32 %s53_s25, %s55_s27 }
   0xe   : > { %p57_p5 = scmp.eq.s32.totalorder %s56_s28, 0 }
  0x10   : > { %s699_s30 = scalar_select %p57_p5, %s600_s16, %s59_s29  }
  0x11   : > { %180 = sbr.rel (!%p68_p4) target bundleno = 23 (0x17), region = 24  ;;  %s182_s5 = sand.u32 (%p68_p4), 1, %s600_s16  }
  0x12   : > { %s493_s6 = sshll.u32 (%p68_p4), %s53_s25, 2  ;;  %s491_s7 = sshll.u32 (%p68_p4), %s182_s5, 3 }
  0x13   : > { %s188_s10 = scalar_lea.vmem (%p68_p4), %s748_s1, %s493_s6  ;;  %s184_s11 = scalar_lea.vmem (%p68_p4), [#allocation2], %s491_s7 }
  0x14   : > { %v205_v0 = vld [vmem:[%s188_s10] sm:$0xf] (%p68_p4)  ;;  %v207_v1 = vld [vmem:[%s188_s10 + $0x10] sm:$0xf] (%p68_p4) }
  0x15   : > { %206 = vst [vmem:[%s184_s11] sm:$0xf] (%p68_p4), %v205_v0 }
  0x16   : > { %208 = vst [vmem:[%s184_s11 + $0x4] sm:$0xf] %v207_v1 }
  0x17 PF: > { %p494_p7 = scmp.ge.s32.totalorder %s620_s21, 1  ;;  %p235_p8 = scmp.lt.s32.totalorder %s620_s21, 5 }
  0x19   : > { %p236_p9 = pnand %p494_p7, %p235_p8 }
  0x1a   : > { %s242_s12 = sand.u32 (!%p236_p9), 1, %s596_s15   ;;  %p286_p10 = scmp.lt.s32.totalorder (!%p236_p9), %s608_s18, 1 }
  0x1b   : > { %239 = sbr.rel (%p236_p9) target bundleno = 300 (0x12c), region = 65  ;;  %s495_s13 = sshll.u32 (!%p236_p9), %s242_s12, 3 }
  0x1c   : > { %s244_s24 = scalar_lea.vmem (!%p236_p9), [#allocation2], %s495_s13  ;;  %s496_s8 = sshll.u32 (!%p236_p9), %s608_s18, 1 }
  0x1d   : > { %s279_s9 = sadd.s32 (!%p236_p9), %s604_s17, %s496_s8  ;;  %p505_p12 = scmp.ne.s32.totalorder (!%p236_p9), %s604_s17, 0 }
  0x1e   : > { %p280_p11 = scmp.lt.s32.totalorder (!%p236_p9), %s279_s9, 3 }
  0x20   : > { %s287_s14 = scalar_select %p286_p10, %s608_s18, 1  ;;  %v508_v2 = vld [vmem:[%s244_s24] sm:$0xff]  ;;  %vm304_vm0 = vcmask 130048  }
  0x21   : > { %315 = vmatpush.bf16.msra.mxu0 %v508_v2  ;;  %v295_v3 = vld [vmem:[%s747_s0] sm:$0xf]  ;;  %s765_s9 = smov (!%p280_p11, %s279_s9), 3 }
  0x22   : > { %s498_s25 = sshll.u32 %s287_s14, 3  ;;  %s497_s10 = sshll.u32 %s765_s9, 2 }
  0x23   : > { %s289_s5 = scalar_lea.vmem %s750_s3, %s498_s25  ;;  %s293_s15 = scalar_lea.vmem %s751_s4, %s498_s25 }
  0x24   : > { %504 = vmatmul.msk.bf16.vlgmr.msra.gmra.mxu0 %vm304_vm0, %v295_v3  ;;  %s283_s13 = scalar_lea.vmem %s749_s2, %s497_s10 }
  0xa1   : > { %v317_v4 = vpop.f32.mrf.mxu0 }
  0xa2   : > { %v321_v5 = vpack.c.bf16 %v317_v4, %v317_v4 }
  0xa4   : > { %322 = vst [vmem:[%s283_s13] sm:$0xf] %v321_v5 }
  0xa5   : > { %326 = sbr.rel (%p505_p12) target bundleno = 173 (0xad), region = 73 }
  0xa9   : > { %v319_v6 = vpop.f32.mrf.mxu0 }
  0xaa   : > { %vm327_vm1 = vcmask 7168   ;;  %v622_v7 = vmov 0.0  }
  0xab   : > { %328 = vst.msk [vmem:[%s289_s5] sm:$0xff] %vm327_vm1, %v622_v7 }
  0xac   : > { %329 = vst.msk [vmem:[%s293_s15] sm:$0xff] %vm327_vm1, %v622_v7 }
  0xad PF: > { %331 = vadd.xlane.f32.xlu0 %v317_v4  ;;  %v337_v8 = vmul.f32 %v317_v4, %v317_v4  ;;  %vm334_vm2 = vcmask 7168  }
  0xb2   : > { %v330_v9 = vld [vmem:[%s289_s5] sm:$0xff] }
  0xb3   : > { %v336_v12 = vld [vmem:[%s293_s15] sm:$0xff] }
  0xb5   : > { %338 = vadd.xlane.f32.xlu0 %v337_v8 }
 0x120   : > { %v332_v10 = vpop.xlane.xlu0 %331 }
 0x121   : > { %v333_v11 = vadd.f32 %v332_v10, %v330_v9 }
 0x123   : > { %335 = vst.msk [vmem:[%s289_s5] sm:$0xff] %vm334_vm2, %v333_v11 }
 0x128   : > { %v339_v13 = vpop.xlane.xlu0 %338 }
 0x129   : > { %v340_v14 = vadd.f32 %v339_v13, %v336_v12 }
 0x12b   : > { %341 = vst.msk [vmem:[%s293_s15] sm:$0xff] %vm334_vm2, %v340_v14 }
 0x12c PF: > { %s15_s21 = sadd.s32 1, %s620_s21   ;;  %s752_s15 = smov %s600_s16 }
 0x12d   : > { %p12_p13 = scmp.ge.s32.totalorder %s15_s21, 6   ;;  %s753_s16 = smov %s699_s30 }
 0x12e   : > { %s754_s17 = smov %s612_s19  ;;  %s755_s18 = smov %s616_s20 }
 0x12f   : > { %s756_s19 = smov %s759_s22  ;;  %s757_s20 = smov %s763_s23 }
 0x130   :  { %14 = sbr.rel (!%p12_p13) target bundleno = 4 (0x4), region = 132 }

// kernel: up_forward.14
= control target key start
LH: loop header
LB: loop body
LE: loop exit
PB: predicated region body
PF: predicated region fallthrough
CT: control target
= control target key end

     0   :  { %s288_s12 = smov 0   ;;  %s311_s0 = inlined_call_operand.vmem [shape: bf16[8,512], index: 0, kind: input, shape index: {}]   ;;  %s312_s1 = inlined_call_operand.vmem [shape: f32[8,1], index: 1, kind: input, shape index: {}]   ;;  %s313_s2 = inlined_call_operand.vmem [shape: f32[8,1], index: 2, kind: input, shape index: {}]   ;;  %s314_s3 = inlined_call_operand.vmem [shape: bf16[8,512], index: 3, kind: output, shape index: {}]  }
   0x1 LB: > { %s240_s13 = sadd.s32 4294967295, %s265_s12   ;;  %p244_p0 = scmp.ge.s32.totalorder %s265_s12, 1  ;;  %s265_s12 = sphi %s288_s12, %s13_s12  }
   0x2   : > { %p136_p1 = scmp.lt.s32.totalorder %s265_s12, 5 }
   0x4   : > { %p137_p2 = pnand %p244_p0, %p136_p1 }
   0x5   : > { %p158_p3 = scmp.lt.s32.totalorder (!%p137_p2), %s240_s13, 3 }
   0x6   : > { %140 = sbr.rel (%p137_p2) target bundleno = 144 (0x90), region = 32 }
   0xb   : > { %v168_v0 = vld [vmem:[%s312_s1] sm:$0xff]  ;;  %v267_v1 = vmov 0   ;;  %s316_s13 = smov (!%p158_p3, %s240_s13), 3 }
   0xc   : > { %258 = vset.pattern.permute.xlu0 %v267_v1  ;;  %v175_v2 = vld [vmem:[%s313_s2] sm:$0xff]  ;;  %s245_s18 = sshll.u32 %s316_s13, 2 }
   0xd   : > { %171 = vperm.xlu0 %258, %v168_v0   ;;  %s161_s21 = scalar_lea.vmem %s311_s0, %s245_s18  ;;  %s165_s24 = scalar_lea.vmem %s314_s3, %s245_s18 }
   0xe   : > { %v166_v4 = vld [vmem:[%s161_s21] sm:$0xf] }
   0xf   : > { %v167_v5 = vunpack.c.l.bf16 %v166_v4 }
  0x15   : > { %178 = vperm.xlu0 %258, %v175_v2  }
  0x7f   : > { %v172_v3 = vpop.permute.xlu0 %171 }
  0x80   : > { %v174_v6 = vmul.f32 %v172_v3, %v167_v5 }
  0x87   : > { %v179_v7 = vpop.permute.xlu0 %178 }
  0x88   : > { %v181_v8 = vadd.f32 %v179_v7, %v174_v6 }
  0x8a   : > { %vm182_vm0 = vcmp.ge.f32.partialorder %v181_v8, 0.0  ;;  %v183_v9 = vmul.f32 0.01, %v181_v8 }
  0x8c   : > { %v184_v10 = vsel %vm182_vm0, %v181_v8, %v183_v9 }
  0x8d   : > { %v185_v11 = vpack.c.bf16 %v184_v10, %v184_v10 }
  0x8f   : > { %186 = vst [vmem:[%s165_s24] sm:$0xf] %v185_v11 }
  0x90 PF: > { %s13_s12 = sadd.s32 1, %s265_s12  }
  0x91   : > { %p10_p4 = scmp.ge.s32.totalorder %s13_s12, 6  }
  0x93   :  { %12 = sbr.rel (!%p10_p4) target bundleno = 1 (0x1), region = 62 }

// kernel: up_forward.15
= control target key start
LH: loop header
LB: loop body
LE: loop exit
PB: predicated region body
PF: predicated region fallthrough
CT: control target
= control target key end

     0   :  { %s673_s15 = smov 0   ;;  %s675_s16 = smov 0   ;;  %s802_s0 = inlined_call_operand.vmem [shape: bf16[16,8], index: 0, kind: input, shape index: {}]   ;;  %s803_s1 = inlined_call_operand.vmem [shape: bf16[8,512], index: 1, kind: input, shape index: {}]   ;;  %s804_s2 = inlined_call_operand.vmem [shape: bf16[16,512], index: 2, kind: output, shape index: {0}]   ;;  %s805_s3 = inlined_call_operand.vmem [shape: f32[2,16,1], index: 3, kind: output, shape index: {1}]   ;;  %s806_s4 = inlined_call_operand.vmem [shape: f32[2,16,1], index: 4, kind: output, shape index: {2}]  }
   0x1   :  { %s677_s17 = smov 0   ;;  %s679_s18 = smov 0  }
   0x2   :  { %s681_s19 = smov 0   ;;  %s683_s20 = smov 0  }
   0x3   :  { %s685_s21 = smov 0  }
   0x4 LB: > { %s24_s22 = sadd.s32 1, %s637_s19  ;;  %s27_s23 = sadd.s32 1, %s641_s20  ;;  %s645_s21 = sphi %s685_s21, %s15_s21   ;;  %s641_s20 = sphi %s683_s20, %s813_s20   ;;  %s637_s19 = sphi %s681_s19, %s812_s19   ;;  %s633_s18 = sphi %s679_s18, %s811_s18   ;;  %s629_s17 = sphi %s677_s17, %s810_s17   ;;  %s625_s16 = sphi %s675_s16, %s809_s16   ;;  %s621_s15 = sphi %s673_s15, %s808_s15  }
   0x5   : > { %p25_p0 = scmp.ge.s32.totalorder %s24_s22, 2  ;;  %s499_s24 = sadd.s32 4294967295, %s645_s21  }
   0x6   : > { %s503_s25 = sshll.u32 %s641_s20, 1  ;;  %p99_p1 = scmp.ne.s32.totalorder %s625_s16, %s621_s15 }
   0x7   : > { %s815_s22 = smov (%p25_p0, %s24_s22), 0  ;;  %s817_s23 = smov (!%p25_p0, %s27_s23), %s641_s20 }
   0x8   : > { %s83_s26 = sadd.s32 %s637_s19, %s503_s25  ;;  %p29_p2 = scmp.ge.s32.totalorder %s817_s23, 2 }
   0x9   : > { %p100_p3 = scmp.eq.s32.totalorder %s499_s24, 3  ;;  %p507_p4 = scmp.ge.s32.totalorder %s645_s21, 1 }
   0xa   : > { %p190_p5 = scmp.lt.s32.totalorder %s645_s21, 5  ;;  %s819_s23 = smov (%p29_p2, %s817_s23), 0 }
   0xb   : > { %p722_p6 = por %p100_p3, %p99_p1  ;;  %s504_s28 = sshll.u32 %s819_s23, 1 }
   0xc   : > { %p191_p7 = pnand %p507_p4, %p190_p5  ;;  %s85_s29 = sadd.s32 %s504_s28, %s815_s22 }
   0xd   : > { %s86_s30 = ssub.s32 %s83_s26, %s85_s29  ;;  %s89_s5 = sadd.s32 1, %s625_s16 }
   0xe   : > { %p87_p8 = scmp.eq.s32.totalorder %s86_s30, 0  ;;  %194 = sbr.rel (%p191_p7) target bundleno = 300 (0x12c), region = 28 }
   0xf   : > { %s509_s7 = sshll.u32 (!%p191_p7), %s633_s18, 1  ;;  %p236_p9 = scmp.lt.s32.totalorder (!%p191_p7), %s633_s18, 1 }
  0x10   : > { %s730_s6 = scalar_select %p87_p8, %s625_s16, %s89_s5  }
  0x11   : > { %s735_s8 = sadd.s32 (!%p191_p7), %s629_s17, %s509_s7  ;;  %s209_s7 = sand.u32 (!%p191_p7), 1, %s621_s15  }
  0x12   : > { %p228_p10 = scmp.lt.s32.totalorder (!%p191_p7), %s735_s8, 3  ;;  %p520_p11 = scmp.ne.s32.totalorder (!%p191_p7), %s629_s17, 0 }
  0x13   : > { %s821_s18 = smov (!%p236_p9, %s633_s18), 1  ;;  %vm259_vm0 = vcmask 1043456   ;;  %v528_v2 = vld [vmem:[%s802_s0] sm:$0xff]  ;;  %vm255_vm1 = vcmask 64512  }
  0x14   : > { %s229_s9 = scalar_select %p228_p10, %s735_s8, 3 }
  0x15   : > { %s526_s10 = sshll.u32 %s821_s18, 4 }
  0x16   : > { %s510_s11 = sshll.u32 %s229_s9, 2  ;;  %s743_s14 = scalar_lea.vmem %s805_s3, %s526_s10 }
  0x17   : > { %s231_s26 = scalar_lea.vmem %s803_s1, %s510_s11  ;;  %s751_s30 = scalar_lea.vmem %s806_s4, %s526_s10 }
  0x18   : > { %v249_v0 = vld [vmem:[%s231_s26] sm:$0xf]  ;;  %s508_s9 = sshll.u32 %s209_s7, 3 }
  0x19   : > { %v261_v1 = vsel %vm259_vm0, %v249_v0, 0  ;;  %s757_s11 = scalar_lea.vmem [#allocation2], %s508_s9 }
  0x1a   : > { %270 = vmatpush.bf16.msra.mxu0 %v261_v1 }
  0x1d   : > { %519 = vmatmul.msk.bf16.vlgmr.msra.gmra.mxu0 %vm255_vm1, %v528_v2 }
  0x9a   : > { %v272_v3 = vpop.f32.mrf.mxu0 }
  0xa1   : > { %284 = sbr.rel (%p520_p11) target bundleno = 171 (0xab), region = 32 }
  0xa2   : > { %v274_v4 = vpop.f32.mrf.mxu0 }
  0xa3   : > { %v532_v5 = vpack.c.bf16 %v274_v4, %v272_v3 }
  0xa5   : > { %533 = vst [vmem:[%s757_s11] sm:$0xff] %v532_v5  }
  0xa6   : > { %vm285_vm2 = vcmask 7168   ;;  %v647_v6 = vmov 0.0  }
  0xa7   : > { %286 = vst.msk [vmem:[%s743_s14] sm:$0xff] %vm285_vm2, %v647_v6 }
  0xa8   : > { %287 = vst.msk [vmem:[%s743_s14 + $0x8] sm:$0xff] %vm285_vm2, %v647_v6 }
  0xa9   : > { %288 = vst.msk [vmem:[%s751_s30] sm:$0xff] %vm285_vm2, %v647_v6 }
  0xaa   : > { %289 = vst.msk [vmem:[%s751_s30 + $0x8] sm:$0xff] %vm285_vm2, %v647_v6 }
  0xab PF: > { %292 = vadd.xlane.f32.xlu0 %v272_v3  ;;  %v303_v7 = vmul.f32 %v272_v3, %v272_v3  ;;  %v304_v8 = vmul.f32 %v274_v4, %v274_v4  ;;  %vm298_vm3 = vcmask 7168   ;;  %s523_s15 = sshll.u32 (%p722_p6), %s735_s8, 2 }
  0xac   : > { %s333_s12 = scalar_lea.vmem (%p722_p6), %s804_s2, %s523_s15 }
  0xad   : > { %305 = vadd.xlane.f32.xlu1 %v303_v7 }
  0xae   : > { %v290_v9 = vld [vmem:[%s743_s14] sm:$0xff] }
  0xaf   : > { %v291_v15 = vld [vmem:[%s743_s14 + $0x8] sm:$0xff] }
  0xb0   : > { %v301_v11 = vld [vmem:[%s751_s30] sm:$0xff] }
  0xb1   : > { %v302_v17 = vld [vmem:[%s751_s30 + $0x8] sm:$0xff] }
  0xb2   : > { %v350_v21 = vld [vmem:[%s757_s11] sm:$0xf] (%p722_p6)  ;;  %v352_v22 = vld [vmem:[%s757_s11 + $0x4] sm:$0xf] (%p722_p6) }
  0xb3   : > { %294 = vadd.xlane.f32.xlu0 %v274_v4  ;;  %351 = vst [vmem:[%s333_s12] sm:$0xf] (%p722_p6), %v350_v21 }
  0xb4   : > { %353 = vst [vmem:[%s333_s12 + $0x10] sm:$0xf] (%p722_p6), %v352_v22 }
  0xb5   : > { %307 = vadd.xlane.f32.xlu1 %v304_v8 }
 0x11e   : > { %v293_v10 = vpop.xlane.xlu0 %292 }
 0x11f   : > { %v296_v12 = vadd.f32 %v293_v10, %v290_v9 }
 0x120   : > { %v306_v13 = vpop.xlane.xlu1 %305 }
 0x121   : > { %299 = vst.msk [vmem:[%s743_s14] sm:$0xff] %vm298_vm3, %v296_v12  ;;  %v309_v14 = vadd.f32 %v306_v13, %v301_v11 }
 0x123   : > { %311 = vst.msk [vmem:[%s751_s30] sm:$0xff] %vm298_vm3, %v309_v14 }
 0x126   : > { %v295_v16 = vpop.xlane.xlu0 %294 }
 0x127   : > { %v297_v18 = vadd.f32 %v295_v16, %v291_v15  ;;  %329 = sbr.rel (!%p722_p6) target bundleno = 300 (0x12c), region = 36 }
 0x128   : > { %v308_v19 = vpop.xlane.xlu1 %307 }
 0x129   : > { %300 = vst.msk [vmem:[%s743_s14 + $0x8] sm:$0xff] %vm298_vm3, %v297_v18  ;;  %v310_v20 = vadd.f32 %v308_v19, %v302_v17 }
 0x12b   : > { %312 = vst.msk [vmem:[%s751_s30 + $0x8] sm:$0xff] %vm298_vm3, %v310_v20 }
 0x12c PF: > { %s15_s21 = sadd.s32 1, %s645_s21   ;;  %s808_s15 = smov %s625_s16 }
 0x12d   : > { %p12_p12 = scmp.ge.s32.totalorder %s15_s21, 6   ;;  %s809_s16 = smov %s730_s6 }
 0x12e   : > { %s810_s17 = smov %s637_s19  ;;  %s811_s18 = smov %s641_s20 }
 0x12f   : > { %s812_s19 = smov %s815_s22  ;;  %s813_s20 = smov %s819_s23 }
 0x130   :  { %14 = sbr.rel (!%p12_p12) target bundleno = 4 (0x4), region = 127 }

// kernel: up_forward.16
= control target key start
LH: loop header
LB: loop body
LE: loop exit
PB: predicated region body
PF: predicated region fallthrough
CT: control target
= control target key end

     0   :  { %s443_s12 = smov 0   ;;  %s445_s13 = smov 0   ;;  %s515_s0 = inlined_call_operand.vmem [shape: bf16[16,512], index: 0, kind: input, shape index: {}]   ;;  %s516_s1 = inlined_call_operand.vmem [shape: f32[16,1], index: 1, kind: input, shape index: {}]   ;;  %s517_s2 = inlined_call_operand.vmem [shape: f32[16,1], index: 2, kind: input, shape index: {}]   ;;  %s518_s3 = inlined_call_operand.vmem [shape: f32[16,512], index: 3, kind: output, shape index: {}]  }
   0x1   :  { %s447_s14 = smov 0  }
   0x2 LB: > { %s354_s15 = sadd.s32 4294967295, %s420_s14   ;;  %s460_s16 = sadd.s32 1, %s420_s14   ;;  %s420_s14 = sphi %s447_s14, %s522_s14   ;;  %s416_s13 = sphi %s445_s13, %s521_s13   ;;  %s412_s12 = sphi %s443_s12, %s520_s12  }
   0x3   : > { %s17_s17 = ssub.s32 %s420_s14, %s460_s16  ;;  %s20_s18 = sadd.s32 1, %s416_s13 }
   0x4   : > { %p18_p0 = scmp.eq.s32.totalorder %s17_s17, 0  ;;  %p27_p1 = scmp.ne.s32.totalorder %s416_s13, %s412_s12 }
   0x5   : > { %p28_p2 = scmp.eq.s32.totalorder %s420_s14, 0  ;;  %p99_p3 = scmp.eq.s32.totalorder %s354_s15, 3 }
   0x6   : > { %s471_s19 = scalar_select %p18_p0, %s416_s13, %s20_s18  }
   0x7   : > { %p29_p4 = por %p28_p2, %p27_p1  ;;  %p473_p5 = por %p99_p3, %p27_p1 }
   0x8   : > { %p357_p6 = scmp.ge.s32.totalorder %s420_s14, 4 }
   0xa   : > { %127 = sbr.rel (%p357_p6) target bundleno = 21 (0x15), region = 24 }
   0xf   : > { %130 = sbr.rel (!%p29_p4) target bundleno = 21 (0x15), region = 28  ;;  %s132_s21 = sand.u32 (%p29_p4), 1, %s416_s13  }
  0x10   : > { %s359_s22 = sshll.u32 (%p29_p4), %s420_s14, 2  ;;  %s358_s23 = sshll.u32 (%p29_p4), %s132_s21, 3 }
  0x11   : > { %s136_s26 = scalar_lea.vmem (%p29_p4), %s515_s0, %s359_s22  ;;  %s134_s27 = scalar_lea.vmem (%p29_p4), [#allocation2], %s358_s23 }
  0x12   : > { %v153_v0 = vld [vmem:[%s136_s26] sm:$0xf] (%p29_p4)  ;;  %v155_v1 = vld [vmem:[%s136_s26 + $0x10] sm:$0xf] (%p29_p4) }
  0x13   : > { %154 = vst [vmem:[%s134_s27] sm:$0xf] (%p29_p4), %v153_v0 }
  0x14   : > { %156 = vst [vmem:[%s134_s27 + $0x4] sm:$0xf] %v155_v1 }
  0x15 PF: > { %p360_p7 = scmp.ge.s32.totalorder %s420_s14, 1  ;;  %p183_p8 = scmp.lt.s32.totalorder %s420_s14, 5 }
  0x17   : > { %p184_p9 = pnand %p360_p7, %p183_p8 }
  0x18   : > { %s190_s9 = sand.u32 (!%p184_p9), 1, %s412_s12  }
  0x19   : > { %187 = sbr.rel (%p184_p9) target bundleno = 171 (0xab), region = 69  ;;  %s361_s10 = sshll.u32 (!%p184_p9), %s190_s9, 3 }
  0x1a   : > { %s192_s11 = scalar_lea.vmem (!%p184_p9), [#allocation2], %s361_s10  ;;  %s362_s17 = sshll.u32 (!%p184_p9), %s190_s9, 4 }
  0x1b   : > { %s211_s18 = scalar_lea.vmem (!%p184_p9), [#allocation3], %s362_s17 }
  0x1e   : > { %v230_v2 = vld [vmem:[%s517_s2] sm:$0xff]  ;;  %v422_v4 = vmov 0   ;;  %v231_v5 = vld [vmem:[%s517_s2 + $0x8] sm:$0xff]  ;;  %s364_s12 = sshll.u32 (%p473_p5), %s354_s15, 3 }
  0x1f   : > { %v216_v3 = vld [vmem:[%s516_s1] sm:$0xff]  ;;  %397 = vset.pattern.permute.xlu1 %v422_v4  ;;  %396 = vset.pattern.permute.xlu0 %v422_v4  ;;  %v217_v6 = vld [vmem:[%s516_s1 + $0x8] sm:$0xff]  ;;  %s260_s23 = scalar_lea.vmem (%p473_p5), %s518_s3, %s364_s12 }
  0x20   : > { %234 = vperm.xlu1 %397, %v230_v2   ;;  %220 = vperm.xlu0 %396, %v216_v3   ;;  %v368_v7 = vld [vmem:[%s192_s11] sm:$0xff]  }
  0x21   : > { %v369_v8 = vunpack.c.l.bf16 %v368_v7  ;;  %v370_v14 = vunpack.c.h.bf16 %v368_v7 }
  0x28   : > { %239 = vperm.xlu1 %397, %v231_v5   ;;  %225 = vperm.xlu0 %396, %v217_v6  }
  0x92   : > { %v235_v9 = vpop.permute.xlu1 %234  ;;  %v221_v10 = vpop.permute.xlu0 %220 }
  0x93   : > { %v228_v11 = vmul.f32 %v369_v8, %v221_v10 }
  0x95   : > { %v242_v12 = vadd.f32 %v235_v9, %v228_v11 }
  0x97   : > { %vm244_vm0 = vcmp.ge.f32.partialorder %v242_v12, 0.0  ;;  %v246_v13 = vmul.f32 0.01, %v242_v12 }
  0x99   : > { %v248_v15 = vsel %vm244_vm0, %v242_v12, %v246_v13 }
  0x9a   : > { %250 = vst [vmem:[%s211_s18] sm:$0xff] %v248_v15  ;;  %v226_v16 = vpop.permute.xlu0 %225  ;;  %v240_v18 = vpop.permute.xlu1 %239 }
  0x9b   : > { %v229_v17 = vmul.f32 %v370_v14, %v226_v16 }
  0x9d   : > { %v243_v19 = vadd.f32 %v240_v18, %v229_v17 }
  0x9e   : > { %258 = sbr.rel (!%p473_p5) target bundleno = 171 (0xab), region = 77 }
  0x9f   : > { %vm245_vm1 = vcmp.ge.f32.partialorder %v243_v19, 0.0  ;;  %v247_v20 = vmul.f32 0.01, %v243_v19 }
  0xa1   : > { %v249_v21 = vsel %vm245_vm1, %v243_v19, %v247_v20  ;;  %v291_v22 = vld [vmem:[%s211_s18] sm:$0xff] (%p473_p5) }
  0xa2   : > { %251 = vst [vmem:[%s211_s18 + $0x8] sm:$0xff] %v249_v21 }
  0xa3   : > { %292 = vst [vmem:[%s260_s23] sm:$0xff] %v291_v22 }
  0xa9   : > { %v293_v23 = vld [vmem:[%s211_s18 + $0x8] sm:$0xff] }
  0xaa   : > { %294 = vst [vmem:[%s260_s23 + $0x20] sm:$0xff] %v293_v23 }
  0xab PF: > { %p10_p10 = scmp.ge.s32.totalorder %s460_s16, 6   ;;  %s520_s12 = smov %s416_s13 }
  0xac   : > { %s521_s13 = smov %s471_s19  ;;  %s522_s14 = smov %s460_s16 }
  0xad   :  { %12 = sbr.rel (!%p10_p10) target bundleno = 2 (0x2), region = 146 }

// kernel: reverse.1
= control target key start
LH: loop header
LB: loop body
LE: loop exit
PB: predicated region body
PF: predicated region fallthrough
CT: control target
= control target key end

     0   :  { %v104_v10 = vlaneseq  ;;  %v97_v14 = vld [vmem:[#allocation0 + $0x7] ss:$-1 sm:$0xff]  ;;  %v111_v19 = vld [vmem:[#allocation0 + $0x17] ss:$-1 sm:$0xff]  ;;  %s606_s0 = inlined_call_operand.vmem [shape: f32[8,2,16,7], index: 0, kind: input, shape index: {}]   ;;  %s607_s1 = inlined_call_operand.vmem [shape: f32[8,2,16,7], index: 1, kind: output, shape index: {}]  }
   0x1   :  { %v61_v0 = vld [vmem:[%s606_s0] sm:$0xff]  ;;  %v63_v1 = vld [vmem:[%s606_s0 + $0x8] sm:$0xff]  ;;  %v65_v2 = vld [vmem:[%s606_s0 + $0x10] sm:$0xff]  ;;  %v98_v21 = vrot.slane %v97_v14, 1  ;;  %v112_v25 = vrot.slane %v111_v19, 1 }
   0x2   :  { %62 = vst [vmem:[#allocation0 + $0x8] sm:$0xff] %v61_v0  ;;  %v67_v3 = vld [vmem:[%s606_s0 + $0x18] sm:$0xff]  ;;  %v69_v4 = vld [vmem:[%s606_s0 + $0x20] sm:$0xff]  ;;  %v71_v5 = vld [vmem:[%s606_s0 + $0x28] sm:$0xff]  ;;  %v517_v17 = vshrl.u32 %v104_v10, 7 }
   0x3   :  { %64 = vst [vmem:[#allocation0 + $0x18] sm:$0xff] %v63_v1  ;;  %v73_v6 = vld [vmem:[%s606_s0 + $0x30] sm:$0xff]  ;;  %v75_v7 = vld [vmem:[%s606_s0 + $0x38] sm:$0xff]  ;;  %v77_v8 = vld [vmem:[%s606_s0 + $0x40] sm:$0xff] }
   0x4   :  { %66 = vst [vmem:[#allocation0 + $0x28] sm:$0xff] %v65_v2  ;;  %v79_v9 = vld [vmem:[%s606_s0 + $0x48] sm:$0xff]  ;;  %v81_v11 = vld [vmem:[%s606_s0 + $0x50] sm:$0xff]  ;;  %v83_v12 = vld [vmem:[%s606_s0 + $0x58] sm:$0xff]  ;;  %vm106_vm0 = vcmp.lt.s32.totalorder %v517_v17, 7 }
   0x5   :  { %68 = vst [vmem:[#allocation0 + $0x38] sm:$0xff] %v67_v3  ;;  %v85_v13 = vld [vmem:[%s606_s0 + $0x60] sm:$0xff]  ;;  %v87_v15 = vld [vmem:[%s606_s0 + $0x68] sm:$0xff]  ;;  %v89_v18 = vld [vmem:[%s606_s0 + $0x70] sm:$0xff] }
   0x6   :  { %70 = vst [vmem:[#allocation0 + $0x48] sm:$0xff] %v69_v4  ;;  %v91_v20 = vld [vmem:[%s606_s0 + $0x78] sm:$0xff]  ;;  %v125_v24 = vld [vmem:[#allocation0 + $0x27] ss:$-1 sm:$0xff]  ;;  %v139_v28 = vld [vmem:[#allocation0 + $0x37] ss:$-1 sm:$0xff] }
   0x7   :  { %72 = vst [vmem:[#allocation0 + $0x58] sm:$0xff] %v71_v5  ;;  %v126_v29 = vrot.slane %v125_v24, 1  ;;  %v153_v32 = vld [vmem:[#allocation0 + $0x47] ss:$-1 sm:$0xff]  ;;  %v140_v33 = vrot.slane %v139_v28, 1 }
   0x8   :  { %74 = vst [vmem:[#allocation0 + $0x68] sm:$0xff] %v73_v6  ;;  %v167_v36 = vld [vmem:[#allocation0 + $0x57] ss:$-1 sm:$0xff]  ;;  %v154_v37 = vrot.slane %v153_v32, 1  ;;  %v181_v40 = vld [vmem:[#allocation0 + $0x67] ss:$-1 sm:$0xff] }
   0x9   :  { %76 = vst [vmem:[#allocation0 + $0x78] sm:$0xff] %v75_v7  ;;  %v102_v16 = vld [vmem:[#allocation0 + $0xf] ss:$-1 sm:$0xff]  ;;  %v168_v41 = vrot.slane %v167_v36, 1  ;;  %v195_v44 = vld [vmem:[#allocation0 + $0x77] ss:$-1 sm:$0xff] }
   0xa   :  { %78 = vst [vmem:[#allocation0 + $0x88] sm:$0xff] %v77_v8  ;;  %v116_v22 = vld [vmem:[#allocation0 + $0x1f] ss:$-1 sm:$0xff]  ;;  %v103_v23 = vrot.slane %v102_v16, 1  ;;  %v182_v45 = vrot.slane %v181_v40, 1  ;;  %v196_v49 = vrot.slane %v195_v44, 1 }
   0xb   :  { %80 = vst [vmem:[#allocation0 + $0x98] sm:$0xff] %v79_v9  ;;  %v130_v26 = vld [vmem:[#allocation0 + $0x2f] ss:$-1 sm:$0xff]  ;;  %v117_v27 = vrot.slane %v116_v22, 1  ;;  %v209_v48 = vld [vmem:[#allocation0 + $0x87] ss:$-1 sm:$0xff] }
   0xc   :  { %82 = vst [vmem:[#allocation0 + $0xa8] sm:$0xff] %v81_v11  ;;  %v144_v30 = vld [vmem:[#allocation0 + $0x3f] ss:$-1 sm:$0xff]  ;;  %v131_v31 = vrot.slane %v130_v26, 1  ;;  %v223_v52 = vld [vmem:[#allocation0 + $0x97] ss:$-1 sm:$0xff] }
   0xd   :  { %84 = vst [vmem:[#allocation0 + $0xb8] sm:$0xff] %v83_v12  ;;  %v158_v34 = vld [vmem:[#allocation0 + $0x4f] ss:$-1 sm:$0xff]  ;;  %v145_v35 = vrot.slane %v144_v30, 1  ;;  %v210_v53 = vrot.slane %v209_v48, 1  ;;  %v224_v57 = vrot.slane %v223_v52, 1 }
   0xe   :  { %86 = vst [vmem:[#allocation0 + $0xc8] sm:$0xff] %v85_v13  ;;  %v172_v38 = vld [vmem:[#allocation0 + $0x5f] ss:$-1 sm:$0xff]  ;;  %v159_v39 = vrot.slane %v158_v34, 1  ;;  %v237_v56 = vld [vmem:[#allocation0 + $0xa7] ss:$-1 sm:$0xff] }
   0xf   :  { %88 = vst [vmem:[#allocation0 + $0xd8] sm:$0xff] %v87_v15  ;;  %v186_v42 = vld [vmem:[#allocation0 + $0x6f] ss:$-1 sm:$0xff]  ;;  %v173_v43 = vrot.slane %v172_v38, 1  ;;  %v251_v60 = vld [vmem:[#allocation0 + $0xb7] ss:$-1 sm:$0xff] }
  0x10   :  { %90 = vst [vmem:[#allocation0 + $0xe8] sm:$0xff] %v89_v18  ;;  %v200_v46 = vld [vmem:[#allocation0 + $0x7f] ss:$-1 sm:$0xff]  ;;  %v187_v47 = vrot.slane %v186_v42, 1  ;;  %v238_v61 = vrot.slane %v237_v56, 1  ;;  %v252_v1 = vrot.slane %v251_v60, 1 }
  0x11   :  { %92 = vst [vmem:[#allocation0 + $0xf8] sm:$0xff] %v91_v20  ;;  %v214_v50 = vld [vmem:[#allocation0 + $0x8f] ss:$-1 sm:$0xff]  ;;  %v201_v51 = vrot.slane %v200_v46, 1  ;;  %v265_v0 = vld [vmem:[#allocation0 + $0xc7] ss:$-1 sm:$0xff] }
  0x12   :  { %99 = vst [vmem:[#allocation1] sm:$0xff] %v98_v21  ;;  %v228_v54 = vld [vmem:[#allocation0 + $0x9f] ss:$-1 sm:$0xff]  ;;  %v215_v55 = vrot.slane %v214_v50, 1  ;;  %v279_v4 = vld [vmem:[#allocation0 + $0xd7] ss:$-1 sm:$0xff] }
  0x13   :  { %107 = vst.msk [vmem:[#allocation1] sm:$0xff] %vm106_vm0, %v103_v23  ;;  %v242_v58 = vld [vmem:[#allocation0 + $0xaf] ss:$-1 sm:$0xff]  ;;  %v229_v59 = vrot.slane %v228_v54, 1  ;;  %v266_v5 = vrot.slane %v265_v0, 1  ;;  %v280_v9 = vrot.slane %v279_v4, 1 }
  0x14   :  { %113 = vst [vmem:[#allocation1 + $0x8] sm:$0xff] %v112_v25  ;;  %v256_v62 = vld [vmem:[#allocation0 + $0xbf] ss:$-1 sm:$0xff]  ;;  %v243_v63 = vrot.slane %v242_v58, 1  ;;  %v293_v8 = vld [vmem:[#allocation0 + $0xe7] ss:$-1 sm:$0xff] }
  0x15   :  { %121 = vst.msk [vmem:[#allocation1 + $0x8] sm:$0xff] %vm106_vm0, %v117_v27  ;;  %v270_v2 = vld [vmem:[#allocation0 + $0xcf] ss:$-1 sm:$0xff]  ;;  %v257_v3 = vrot.slane %v256_v62, 1  ;;  %v307_v12 = vld [vmem:[#allocation0 + $0xf7] ss:$-1 sm:$0xff] }
  0x16   :  { %127 = vst [vmem:[#allocation1 + $0x10] sm:$0xff] %v126_v29  ;;  %v284_v6 = vld [vmem:[#allocation0 + $0xdf] ss:$-1 sm:$0xff]  ;;  %v271_v7 = vrot.slane %v270_v2, 1  ;;  %v294_v13 = vrot.slane %v293_v8, 1  ;;  %v308_v16 = vrot.slane %v307_v12, 1 }
  0x17   :  { %135 = vst.msk [vmem:[#allocation1 + $0x10] sm:$0xff] %vm106_vm0, %v131_v31  ;;  %v298_v10 = vld [vmem:[#allocation0 + $0xef] ss:$-1 sm:$0xff]  ;;  %v285_v11 = vrot.slane %v284_v6, 1 }
  0x18   :  { %141 = vst [vmem:[#allocation1 + $0x18] sm:$0xff] %v140_v33  ;;  %v312_v14 = vld [vmem:[#allocation0 + $0xff] ss:$-1 sm:$0xff]  ;;  %v299_v15 = vrot.slane %v298_v10, 1 }
  0x19   :  { %149 = vst.msk [vmem:[#allocation1 + $0x18] sm:$0xff] %vm106_vm0, %v145_v35  ;;  %v313_v18 = vrot.slane %v312_v14, 1 }
  0x1a   :  { %155 = vst [vmem:[#allocation1 + $0x20] sm:$0xff] %v154_v37  ;;  %v376_v19 = vld [vmem:[#allocation1] sm:$0xff] }
  0x1b   :  { %163 = vst.msk [vmem:[#allocation1 + $0x20] sm:$0xff] %vm106_vm0, %v159_v39 }
  0x1c   :  { %169 = vst [vmem:[#allocation1 + $0x28] sm:$0xff] %v168_v41  ;;  %v378_v20 = vld [vmem:[#allocation1 + $0x8] sm:$0xff] }
  0x1d   :  { %177 = vst.msk [vmem:[#allocation1 + $0x28] sm:$0xff] %vm106_vm0, %v173_v43 }
  0x1e   :  { %183 = vst [vmem:[#allocation1 + $0x30] sm:$0xff] %v182_v45  ;;  %v380_v17 = vld [vmem:[#allocation1 + $0x10] sm:$0xff] }
  0x1f   :  { %191 = vst.msk [vmem:[#allocation1 + $0x30] sm:$0xff] %vm106_vm0, %v187_v47 }
  0x20   :  { %197 = vst [vmem:[#allocation1 + $0x38] sm:$0xff] %v196_v49  ;;  %v382_v21 = vld [vmem:[#allocation1 + $0x18] sm:$0xff] }
  0x21   :  { %205 = vst.msk [vmem:[#allocation1 + $0x38] sm:$0xff] %vm106_vm0, %v201_v51 }
  0x22   :  { %211 = vst [vmem:[#allocation1 + $0x40] sm:$0xff] %v210_v53  ;;  %v384_v22 = vld [vmem:[#allocation1 + $0x20] sm:$0xff] }
  0x23   :  { %219 = vst.msk [vmem:[#allocation1 + $0x40] sm:$0xff] %vm106_vm0, %v215_v55 }
  0x24   :  { %225 = vst [vmem:[#allocation1 + $0x48] sm:$0xff] %v224_v57  ;;  %v386_v23 = vld [vmem:[#allocation1 + $0x28] sm:$0xff] }
  0x25   :  { %233 = vst.msk [vmem:[#allocation1 + $0x48] sm:$0xff] %vm106_vm0, %v229_v59 }
  0x26   :  { %239 = vst [vmem:[#allocation1 + $0x50] sm:$0xff] %v238_v61  ;;  %v388_v24 = vld [vmem:[#allocation1 + $0x30] sm:$0xff] }
  0x27   :  { %247 = vst.msk [vmem:[#allocation1 + $0x50] sm:$0xff] %vm106_vm0, %v243_v63 }
  0x28   :  { %253 = vst [vmem:[#allocation1 + $0x58] sm:$0xff] %v252_v1  ;;  %v390_v25 = vld [vmem:[#allocation1 + $0x38] sm:$0xff] }
  0x29   :  { %261 = vst.msk [vmem:[#allocation1 + $0x58] sm:$0xff] %vm106_vm0, %v257_v3 }
  0x2a   :  { %267 = vst [vmem:[#allocation1 + $0x60] sm:$0xff] %v266_v5  ;;  %v392_v26 = vld [vmem:[#allocation1 + $0x40] sm:$0xff] }
  0x2b   :  { %275 = vst.msk [vmem:[#allocation1 + $0x60] sm:$0xff] %vm106_vm0, %v271_v7 }
  0x2c   :  { %281 = vst [vmem:[#allocation1 + $0x68] sm:$0xff] %v280_v9  ;;  %v394_v27 = vld [vmem:[#allocation1 + $0x48] sm:$0xff] }
  0x2d   :  { %289 = vst.msk [vmem:[#allocation1 + $0x68] sm:$0xff] %vm106_vm0, %v285_v11 }
  0x2e   :  { %295 = vst [vmem:[#allocation1 + $0x70] sm:$0xff] %v294_v13  ;;  %v396_v28 = vld [vmem:[#allocation1 + $0x50] sm:$0xff] }
  0x2f   :  { %303 = vst.msk [vmem:[#allocation1 + $0x70] sm:$0xff] %vm106_vm0, %v299_v15 }
  0x30   :  { %309 = vst [vmem:[#allocation1 + $0x78] sm:$0xff] %v308_v16  ;;  %v398_v29 = vld [vmem:[#allocation1 + $0x58] sm:$0xff] }
  0x31   :  { %317 = vst.msk [vmem:[#allocation1 + $0x78] sm:$0xff] %vm106_vm0, %v313_v18 }
  0x32   :  { %377 = vst [vmem:[%s607_s1] sm:$0xff] %v376_v19  ;;  %v400_v30 = vld [vmem:[#allocation1 + $0x60] sm:$0xff] }
  0x33   :  { %379 = vst [vmem:[%s607_s1 + $0x8] sm:$0xff] %v378_v20 }
  0x34   :  { %381 = vst [vmem:[%s607_s1 + $0x10] sm:$0xff] %v380_v17  ;;  %v402_v31 = vld [vmem:[#allocation1 + $0x68] sm:$0xff] }
  0x35   :  { %383 = vst [vmem:[%s607_s1 + $0x18] sm:$0xff] %v382_v21 }
  0x36   :  { %385 = vst [vmem:[%s607_s1 + $0x20] sm:$0xff] %v384_v22  ;;  %v404_v32 = vld [vmem:[#allocation1 + $0x70] sm:$0xff] }
  0x37   :  { %387 = vst [vmem:[%s607_s1 + $0x28] sm:$0xff] %v386_v23 }
  0x38   :  { %389 = vst [vmem:[%s607_s1 + $0x30] sm:$0xff] %v388_v24  ;;  %v406_v33 = vld [vmem:[#allocation1 + $0x78] sm:$0xff] }
  0x39   :  { %391 = vst [vmem:[%s607_s1 + $0x38] sm:$0xff] %v390_v25 }
  0x3a   :  { %393 = vst [vmem:[%s607_s1 + $0x40] sm:$0xff] %v392_v26 }
  0x3b   :  { %395 = vst [vmem:[%s607_s1 + $0x48] sm:$0xff] %v394_v27 }
  0x3c   :  { %397 = vst [vmem:[%s607_s1 + $0x50] sm:$0xff] %v396_v28 }
  0x3d   :  { %399 = vst [vmem:[%s607_s1 + $0x58] sm:$0xff] %v398_v29 }
  0x3e   :  { %401 = vst [vmem:[%s607_s1 + $0x60] sm:$0xff] %v400_v30 }
  0x3f   :  { %403 = vst [vmem:[%s607_s1 + $0x68] sm:$0xff] %v402_v31 }
  0x40   :  { %405 = vst [vmem:[%s607_s1 + $0x70] sm:$0xff] %v404_v32 }
  0x41   :  { %407 = vst [vmem:[%s607_s1 + $0x78] sm:$0xff] %v406_v33 }

// kernel: up_forward.10
= control target key start
LH: loop header
LB: loop body
LE: loop exit
PB: predicated region body
PF: predicated region fallthrough
CT: control target
= control target key end

     0   :  { %s723_s15 = smov 0   ;;  %s725_s16 = smov 0   ;;  %s832_s0 = inlined_call_operand.vmem [shape: bf16[8,72], index: 0, kind: input, shape index: {}]   ;;  %s833_s1 = inlined_call_operand.vmem [shape: bf16[72,512], index: 1, kind: input, shape index: {}]   ;;  %s834_s2 = inlined_call_operand.vmem [shape: bf16[8,512], index: 2, kind: output, shape index: {0}]   ;;  %s835_s3 = inlined_call_operand.vmem [shape: f32[2,8,1], index: 3, kind: output, shape index: {1}]   ;;  %s836_s4 = inlined_call_operand.vmem [shape: f32[2,8,1], index: 4, kind: output, shape index: {2}]  }
   0x1   :  { %s727_s17 = smov 0   ;;  %s729_s18 = smov 0  }
   0x2   :  { %s731_s19 = smov 0   ;;  %s733_s20 = smov 0  }
   0x3   :  { %s735_s21 = smov 0  }
   0x4 LB: > { %s24_s22 = sadd.s32 1, %s687_s19  ;;  %s27_s23 = sadd.s32 1, %s691_s20  ;;  %s695_s21 = sphi %s735_s21, %s15_s21   ;;  %s691_s20 = sphi %s733_s20, %s842_s20   ;;  %s687_s19 = sphi %s731_s19, %s841_s19   ;;  %s683_s18 = sphi %s729_s18, %s840_s18   ;;  %s679_s17 = sphi %s727_s17, %s839_s17   ;;  %s675_s16 = sphi %s725_s16, %s838_s16   ;;  %s671_s15 = sphi %s723_s15, %s837_s15  }
   0x5   : > { %p25_p0 = scmp.ge.s32.totalorder %s24_s22, 2  ;;  %p66_p1 = scmp.ne.s32.totalorder %s675_s16, %s671_s15 }
   0x6   : > { %p67_p2 = scmp.eq.s32.totalorder %s695_s21, 0  ;;  %s545_s24 = sshll.u32 %s691_s20, 1 }
   0x7   : > { %s844_s22 = smov (%p25_p0, %s24_s22), 0  ;;  %s846_s23 = smov (!%p25_p0, %s27_s23), %s691_s20 }
   0x8   : > { %p29_p3 = scmp.ge.s32.totalorder %s846_s23, 2  ;;  %p68_p4 = por %p67_p2, %p66_p1 }
   0x9   : > { %s53_s25 = sadd.s32 %s687_s19, %s545_s24  ;;  %s59_s29 = sadd.s32 1, %s675_s16 }
   0xa   : > { %s848_s23 = smov (%p29_p3, %s846_s23), 0  ;;  %p550_p6 = scmp.ge.s32.totalorder %s695_s21, 4 }
   0xb   : > { %s546_s26 = sshll.u32 %s848_s23, 1 }
   0xc   : > { %s55_s27 = sadd.s32 %s546_s26, %s844_s22  ;;  %177 = sbr.rel (%p550_p6) target bundleno = 30 (0x1e), region = 20 }
   0xd   : > { %s56_s28 = ssub.s32 %s53_s25, %s55_s27 }
   0xe   : > { %p57_p5 = scmp.eq.s32.totalorder %s56_s28, 0 }
  0x10   : > { %s774_s30 = scalar_select %p57_p5, %s675_s16, %s59_s29  }
  0x11   : > { %180 = sbr.rel (!%p68_p4) target bundleno = 30 (0x1e), region = 24  ;;  %s182_s5 = sand.u32 (%p68_p4), 1, %s675_s16  }
  0x12   : > { %s552_s6 = sshll.u32 (%p68_p4), %s53_s25, 2  ;;  %s582_s7 = smul.u32 (%p68_p4), 36, %s182_s5 }
  0x13   : > { %s188_s10 = scalar_lea.vmem (%p68_p4), %s833_s1, %s552_s6 }
  0x14   : > { %v205_v0 = vld [vmem:[%s188_s10] sm:$0xf] (%p68_p4)  ;;  %v207_v1 = vld [vmem:[%s188_s10 + $0x10] sm:$0xf] (%p68_p4)  ;;  %s184_s11 = scalar_lea.vmem (%p68_p4), [#allocation2], %s582_s7 }
  0x15   : > { %v209_v2 = vld [vmem:[%s188_s10 + $0x20] sm:$0xf] (%p68_p4)  ;;  %206 = vst [vmem:[%s184_s11] sm:$0xf] (%p68_p4), %v205_v0  ;;  %v211_v3 = vld [vmem:[%s188_s10 + $0x30] sm:$0xf] (%p68_p4) }
  0x16   : > { %208 = vst [vmem:[%s184_s11 + $0x4] sm:$0xf] %v207_v1  ;;  %v213_v4 = vld [vmem:[%s188_s10 + $0x40] sm:$0xf]  ;;  %v215_v5 = vld [vmem:[%s188_s10 + $0x50] sm:$0xf] }
  0x17   : > { %210 = vst [vmem:[%s184_s11 + $0x8] sm:$0xf] %v209_v2  ;;  %v217_v6 = vld [vmem:[%s188_s10 + $0x60] sm:$0xf]  ;;  %v219_v7 = vld [vmem:[%s188_s10 + $0x70] sm:$0xf] }
  0x18   : > { %212 = vst [vmem:[%s184_s11 + $0xc] sm:$0xf] %v211_v3  ;;  %v221_v8 = vld [vmem:[%s188_s10 + $0x80] sm:$0xf] }
  0x19   : > { %214 = vst [vmem:[%s184_s11 + $0x10] sm:$0xf] %v213_v4 }
  0x1a   : > { %216 = vst [vmem:[%s184_s11 + $0x14] sm:$0xf] %v215_v5 }
  0x1b   : > { %218 = vst [vmem:[%s184_s11 + $0x18] sm:$0xf] %v217_v6 }
  0x1c   : > { %220 = vst [vmem:[%s184_s11 + $0x1c] sm:$0xf] %v219_v7 }
  0x1d   : > { %222 = vst [vmem:[%s184_s11 + $0x20] sm:$0xf] %v221_v8 }
  0x1e PF: > { %p553_p7 = scmp.ge.s32.totalorder %s695_s21, 1  ;;  %p263_p8 = scmp.lt.s32.totalorder %s695_s21, 5 }
  0x20   : > { %p264_p9 = pnand %p553_p7, %p263_p8 }
  0x21   : > { %s270_s12 = sand.u32 (!%p264_p9), 1, %s671_s15   ;;  %p314_p10 = scmp.lt.s32.totalorder (!%p264_p9), %s683_s18, 1 }
  0x22   : > { %267 = sbr.rel (%p264_p9) target bundleno = 328 (0x148), region = 65  ;;  %s554_s8 = sshll.u32 (!%p264_p9), %s683_s18, 1 }
  0x23   : > { %s583_s13 = smul.u32 (!%p264_p9), 36, %s270_s12  ;;  %s307_s9 = sadd.s32 (!%p264_p9), %s679_s17, %s554_s8 }
  0x24   : > { %p308_p11 = scmp.lt.s32.totalorder (!%p264_p9), %s307_s9, 3  ;;  %p575_p12 = scmp.ne.s32.totalorder (!%p264_p9), %s679_s17, 0 }
  0x25   : > { %s272_s25 = scalar_lea.vmem (!%p264_p9), [#allocation2], %s583_s13 }
  0x27   : > { %s315_s14 = scalar_select %p314_p10, %s683_s18, 1  ;;  %v332_v9 = vld [vmem:[%s272_s25 + $0x20] sm:$0xf]  ;;  %vm364_vm0 = vcmask 1043456   ;;  %v581_v13 = vld [vmem:[%s272_s25 + $0x18] sm:$0xff]  ;;  %v580_v14 = vld [vmem:[%s272_s25 + $0x10] sm:$0xff] }
  0x28   : > { %v350_v10 = vunpack.c.l.b16 %v332_v9  ;;  %v579_v15 = vld [vmem:[%s272_s25 + $0x8] sm:$0xff]  ;;  %v578_v16 = vld [vmem:[%s272_s25] sm:$0xff]  ;;  %vm360_vm1 = vcmask 588800   ;;  %s850_s9 = smov (!%p308_p11, %s307_s9), 3 }
  0x29   : > { %s556_s24 = sshll.u32 %s315_s14, 3  ;;  %v323_v17 = vld [vmem:[%s832_s0] sm:$0xf]  ;;  %s555_s10 = sshll.u32 %s850_s9, 2 }
  0x2a   : > { %s789_s28 = scalar_lea.vmem %s835_s3, %s556_s24  ;;  %s794_s6 = scalar_lea.vmem %s836_s4, %s556_s24  ;;  %v355_v11 = vpack.c.b16 %v350_v10, %v350_v10 }
  0x2b   : > { %s311_s13 = scalar_lea.vmem %s834_s2, %s555_s10 }
  0x2c   : > { %v366_v12 = vsel %vm364_vm0, %v355_v11, 0 }
  0x2d   : > { %371 = vmatpush.bf16.msra.mxu0 %v366_v12 }
  0x31   : > { %372 = vmatpush.bf16.msra.mxu0 %v581_v13 }
  0x35   : > { %373 = vmatpush.bf16.msra.mxu0 %v580_v14 }
  0x39   : > { %374 = vmatpush.bf16.msra.mxu0 %v579_v15 }
  0x3d   : > { %375 = vmatpush.bf16.msra.mxu0 %v578_v16 }
  0x40   : > { %574 = vmatmul.msk.bf16.vlgmr.msra.gmra.mxu0 %vm360_vm1, %v323_v17 }
  0xbd   : > { %v377_v18 = vpop.f32.mrf.mxu0 }
  0xbe   : > { %v381_v19 = vpack.c.bf16 %v377_v18, %v377_v18 }
  0xc0   : > { %382 = vst [vmem:[%s311_s13] sm:$0xf] %v381_v19 }
  0xc1   : > { %386 = sbr.rel (%p575_p12) target bundleno = 201 (0xc9), region = 73 }
  0xc5   : > { %v379_v20 = vpop.f32.mrf.mxu0 }
  0xc6   : > { %vm387_vm2 = vcmask 7168   ;;  %v697_v21 = vmov 0.0  }
  0xc7   : > { %388 = vst.msk [vmem:[%s789_s28] sm:$0xff] %vm387_vm2, %v697_v21 }
  0xc8   : > { %389 = vst.msk [vmem:[%s794_s6] sm:$0xff] %vm387_vm2, %v697_v21 }
  0xc9 PF: > { %391 = vadd.xlane.f32.xlu0 %v377_v18  ;;  %v397_v22 = vmul.f32 %v377_v18, %v377_v18  ;;  %vm394_vm3 = vcmask 7168  }
  0xce   : > { %v390_v23 = vld [vmem:[%s789_s28] sm:$0xff] }
  0xcf   : > { %v396_v26 = vld [vmem:[%s794_s6] sm:$0xff] }
  0xd1   : > { %398 = vadd.xlane.f32.xlu0 %v397_v22 }
 0x13c   : > { %v392_v24 = vpop.xlane.xlu0 %391 }
 0x13d   : > { %v393_v25 = vadd.f32 %v392_v24, %v390_v23 }
 0x13f   : > { %395 = vst.msk [vmem:[%s789_s28] sm:$0xff] %vm394_vm3, %v393_v25 }
 0x144   : > { %v399_v27 = vpop.xlane.xlu0 %398 }
 0x145   : > { %v400_v28 = vadd.f32 %v399_v27, %v396_v26 }
 0x147   : > { %401 = vst.msk [vmem:[%s794_s6] sm:$0xff] %vm394_vm3, %v400_v28 }
 0x148 PF: > { %s15_s21 = sadd.s32 1, %s695_s21   ;;  %s837_s15 = smov %s675_s16 }
 0x149   : > { %p12_p13 = scmp.ge.s32.totalorder %s15_s21, 6   ;;  %s838_s16 = smov %s774_s30 }
 0x14a   : > { %s839_s17 = smov %s687_s19  ;;  %s840_s18 = smov %s691_s20 }
 0x14b   : > { %s841_s19 = smov %s844_s22  ;;  %s842_s20 = smov %s848_s23 }
 0x14c   :  { %14 = sbr.rel (!%p12_p13) target bundleno = 4 (0x4), region = 132 }

// kernel: up_forward.12
= control target key start
LH: loop header
LB: loop body
LE: loop exit
PB: predicated region body
PF: predicated region fallthrough
CT: control target
= control target key end

     0   :  { %s681_s15 = smov 0   ;;  %s683_s16 = smov 0   ;;  %s790_s0 = inlined_call_operand.vmem [shape: bf16[8,36], index: 0, kind: input, shape index: {}]   ;;  %s791_s1 = inlined_call_operand.vmem [shape: bf16[36,512], index: 1, kind: input, shape index: {}]   ;;  %s792_s2 = inlined_call_operand.vmem [shape: bf16[8,512], index: 2, kind: output, shape index: {0}]   ;;  %s793_s3 = inlined_call_operand.vmem [shape: f32[2,8,1], index: 3, kind: output, shape index: {1}]   ;;  %s794_s4 = inlined_call_operand.vmem [shape: f32[2,8,1], index: 4, kind: output, shape index: {2}]  }
   0x1   :  { %s685_s17 = smov 0   ;;  %s687_s18 = smov 0  }
   0x2   :  { %s689_s19 = smov 0   ;;  %s691_s20 = smov 0  }
   0x3   :  { %s693_s21 = smov 0  }
   0x4 LB: > { %s24_s22 = sadd.s32 1, %s645_s19  ;;  %s27_s23 = sadd.s32 1, %s649_s20  ;;  %s653_s21 = sphi %s693_s21, %s15_s21   ;;  %s649_s20 = sphi %s691_s20, %s800_s20   ;;  %s645_s19 = sphi %s689_s19, %s799_s19   ;;  %s641_s18 = sphi %s687_s18, %s798_s18   ;;  %s637_s17 = sphi %s685_s17, %s797_s17   ;;  %s633_s16 = sphi %s683_s16, %s796_s16   ;;  %s629_s15 = sphi %s681_s15, %s795_s15  }
   0x5   : > { %p25_p0 = scmp.ge.s32.totalorder %s24_s22, 2  ;;  %p66_p1 = scmp.ne.s32.totalorder %s633_s16, %s629_s15 }
   0x6   : > { %p67_p2 = scmp.eq.s32.totalorder %s653_s21, 0  ;;  %s513_s24 = sshll.u32 %s649_s20, 1 }
   0x7   : > { %s802_s22 = smov (%p25_p0, %s24_s22), 0  ;;  %s804_s23 = smov (!%p25_p0, %s27_s23), %s649_s20 }
   0x8   : > { %p29_p3 = scmp.ge.s32.totalorder %s804_s23, 2  ;;  %p68_p4 = por %p67_p2, %p66_p1 }
   0x9   : > { %s53_s25 = sadd.s32 %s645_s19, %s513_s24  ;;  %s59_s29 = sadd.s32 1, %s633_s16 }
   0xa   : > { %s806_s23 = smov (%p29_p3, %s804_s23), 0  ;;  %p518_p6 = scmp.ge.s32.totalorder %s653_s21, 4 }
   0xb   : > { %s514_s26 = sshll.u32 %s806_s23, 1 }
   0xc   : > { %s55_s27 = sadd.s32 %s514_s26, %s802_s22  ;;  %177 = sbr.rel (%p518_p6) target bundleno = 26 (0x1a), region = 20 }
   0xd   : > { %s56_s28 = ssub.s32 %s53_s25, %s55_s27 }
   0xe   : > { %p57_p5 = scmp.eq.s32.totalorder %s56_s28, 0 }
  0x10   : > { %s732_s30 = scalar_select %p57_p5, %s633_s16, %s59_s29  }
  0x11   : > { %180 = sbr.rel (!%p68_p4) target bundleno = 26 (0x1a), region = 24  ;;  %s182_s5 = sand.u32 (%p68_p4), 1, %s633_s16  }
  0x12   : > { %s520_s6 = sshll.u32 (%p68_p4), %s53_s25, 2  ;;  %s540_s7 = smul.u32 (%p68_p4), 20, %s182_s5 }
  0x13   : > { %s188_s10 = scalar_lea.vmem (%p68_p4), %s791_s1, %s520_s6 }
  0x14   : > { %v205_v0 = vld [vmem:[%s188_s10] sm:$0xf] (%p68_p4)  ;;  %v207_v1 = vld [vmem:[%s188_s10 + $0x10] sm:$0xf] (%p68_p4)  ;;  %s184_s11 = scalar_lea.vmem (%p68_p4), [#allocation2], %s540_s7 }
  0x15   : > { %v209_v2 = vld [vmem:[%s188_s10 + $0x20] sm:$0xf] (%p68_p4)  ;;  %206 = vst [vmem:[%s184_s11] sm:$0xf] (%p68_p4), %v205_v0  ;;  %v211_v3 = vld [vmem:[%s188_s10 + $0x30] sm:$0xf] (%p68_p4) }
  0x16   : > { %208 = vst [vmem:[%s184_s11 + $0x4] sm:$0xf] %v207_v1  ;;  %v213_v4 = vld [vmem:[%s188_s10 + $0x40] sm:$0xf] }
  0x17   : > { %210 = vst [vmem:[%s184_s11 + $0x8] sm:$0xf] %v209_v2 }
  0x18   : > { %212 = vst [vmem:[%s184_s11 + $0xc] sm:$0xf] %v211_v3 }
  0x19   : > { %214 = vst [vmem:[%s184_s11 + $0x10] sm:$0xf] %v213_v4 }
  0x1a PF: > { %p521_p7 = scmp.ge.s32.totalorder %s653_s21, 1  ;;  %p247_p8 = scmp.lt.s32.totalorder %s653_s21, 5 }
  0x1c   : > { %p248_p9 = pnand %p521_p7, %p247_p8 }
  0x1d   : > { %s254_s12 = sand.u32 (!%p248_p9), 1, %s629_s15   ;;  %p298_p10 = scmp.lt.s32.totalorder (!%p248_p9), %s641_s18, 1 }
  0x1e   : > { %251 = sbr.rel (%p248_p9) target bundleno = 316 (0x13c), region = 65  ;;  %s522_s8 = sshll.u32 (!%p248_p9), %s641_s18, 1 }
  0x1f   : > { %s541_s13 = smul.u32 (!%p248_p9), 20, %s254_s12  ;;  %s291_s9 = sadd.s32 (!%p248_p9), %s637_s17, %s522_s8 }
  0x20   : > { %p292_p11 = scmp.lt.s32.totalorder (!%p248_p9), %s291_s9, 3  ;;  %p535_p12 = scmp.ne.s32.totalorder (!%p248_p9), %s637_s17, 0 }
  0x21   : > { %s256_s25 = scalar_lea.vmem (!%p248_p9), [#allocation2], %s541_s13 }
  0x23   : > { %s299_s14 = scalar_select %p298_p10, %s641_s18, 1  ;;  %v312_v5 = vld [vmem:[%s256_s25 + $0x10] sm:$0x3]  ;;  %vm332_vm0 = vcmask 1041408   ;;  %v539_v9 = vld [vmem:[%s256_s25 + $0x8] sm:$0xff]  ;;  %v538_v10 = vld [vmem:[%s256_s25] sm:$0xff] }
  0x24   : > { %v322_v6 = vunpack.c.l.b16 %v312_v5  ;;  %v307_v11 = vld [vmem:[%s790_s0] sm:$0xf]  ;;  %vm328_vm1 = vcmask 293888   ;;  %s808_s9 = smov (!%p292_p11, %s291_s9), 3 }
  0x25   : > { %s524_s24 = sshll.u32 %s299_s14, 3  ;;  %s523_s10 = sshll.u32 %s808_s9, 2 }
  0x26   : > { %s747_s28 = scalar_lea.vmem %s793_s3, %s524_s24  ;;  %s752_s6 = scalar_lea.vmem %s794_s4, %s524_s24  ;;  %v325_v7 = vpack.c.b16 %v322_v6, %v322_v6 }
  0x27   : > { %s295_s13 = scalar_lea.vmem %s792_s2, %s523_s10 }
  0x28   : > { %v334_v8 = vsel %vm332_vm0, %v325_v7, 0 }
  0x29   : > { %341 = vmatpush.bf16.msra.mxu0 %v334_v8 }
  0x2d   : > { %342 = vmatpush.bf16.msra.mxu0 %v539_v9 }
  0x31   : > { %343 = vmatpush.bf16.msra.mxu0 %v538_v10 }
  0x34   : > { %534 = vmatmul.msk.bf16.vlgmr.msra.gmra.mxu0 %vm328_vm1, %v307_v11 }
  0xb1   : > { %v345_v12 = vpop.f32.mrf.mxu0 }
  0xb2   : > { %v349_v13 = vpack.c.bf16 %v345_v12, %v345_v12 }
  0xb4   : > { %350 = vst [vmem:[%s295_s13] sm:$0xf] %v349_v13 }
  0xb5   : > { %354 = sbr.rel (%p535_p12) target bundleno = 189 (0xbd), region = 73 }
  0xb9   : > { %v347_v14 = vpop.f32.mrf.mxu0 }
  0xba   : > { %vm355_vm2 = vcmask 7168   ;;  %v655_v15 = vmov 0.0  }
  0xbb   : > { %356 = vst.msk [vmem:[%s747_s28] sm:$0xff] %vm355_vm2, %v655_v15 }
  0xbc   : > { %357 = vst.msk [vmem:[%s752_s6] sm:$0xff] %vm355_vm2, %v655_v15 }
  0xbd PF: > { %359 = vadd.xlane.f32.xlu0 %v345_v12  ;;  %v365_v16 = vmul.f32 %v345_v12, %v345_v12  ;;  %vm362_vm3 = vcmask 7168  }
  0xc2   : > { %v358_v17 = vld [vmem:[%s747_s28] sm:$0xff] }
  0xc3   : > { %v364_v20 = vld [vmem:[%s752_s6] sm:$0xff] }
  0xc5   : > { %366 = vadd.xlane.f32.xlu0 %v365_v16 }
 0x130   : > { %v360_v18 = vpop.xlane.xlu0 %359 }
 0x131   : > { %v361_v19 = vadd.f32 %v360_v18, %v358_v17 }
 0x133   : > { %363 = vst.msk [vmem:[%s747_s28] sm:$0xff] %vm362_vm3, %v361_v19 }
 0x138   : > { %v367_v21 = vpop.xlane.xlu0 %366 }
 0x139   : > { %v368_v22 = vadd.f32 %v367_v21, %v364_v20 }
 0x13b   : > { %369 = vst.msk [vmem:[%s752_s6] sm:$0xff] %vm362_vm3, %v368_v22 }
 0x13c PF: > { %s15_s21 = sadd.s32 1, %s653_s21   ;;  %s795_s15 = smov %s633_s16 }
 0x13d   : > { %p12_p13 = scmp.ge.s32.totalorder %s15_s21, 6   ;;  %s796_s16 = smov %s732_s30 }
 0x13e   : > { %s797_s17 = smov %s645_s19  ;;  %s798_s18 = smov %s649_s20 }
 0x13f   : > { %s799_s19 = smov %s802_s22  ;;  %s800_s20 = smov %s806_s23 }
 0x140   :  { %14 = sbr.rel (!%p12_p13) target bundleno = 4 (0x4), region = 132 }

// kernel: up_forward.17
= control target key start
LH: loop header
LB: loop body
LE: loop exit
PB: predicated region body
PF: predicated region fallthrough
CT: control target
= control target key end

     0   :  { %s351_s15 = smov 0   ;;  %s377_s0 = inlined_call_operand.vmem [shape: bf16[8,512], index: 0, kind: input, shape index: {}]   ;;  %s378_s1 = inlined_call_operand.vmem [shape: f32[8,1], index: 1, kind: input, shape index: {}]   ;;  %s379_s2 = inlined_call_operand.vmem [shape: f32[8,1], index: 2, kind: input, shape index: {}]   ;;  %s380_s3 = inlined_call_operand.vmem [shape: f32[8,512], index: 3, kind: input, shape index: {}]   ;;  %s381_s4 = inlined_call_operand.vmem [shape: f32[8,512], index: 4, kind: output, shape index: {}]  }
   0x1 LB: > { %s297_s16 = sadd.s32 4294967295, %s323_s15   ;;  %p301_p0 = scmp.ge.s32.totalorder %s323_s15, 1  ;;  %s323_s15 = sphi %s351_s15, %s14_s15  }
   0x2   : > { %p170_p1 = scmp.lt.s32.totalorder %s323_s15, 5 }
   0x4   : > { %p171_p2 = pnand %p301_p0, %p170_p1 }
   0x5   : > { %p198_p3 = scmp.lt.s32.totalorder (!%p171_p2), %s297_s16, 3 }
   0x6   : > { %174 = sbr.rel (%p171_p2) target bundleno = 144 (0x90), region = 36 }
   0xb   : > { %v212_v0 = vld [vmem:[%s378_s1] sm:$0xff]  ;;  %v325_v1 = vmov 0   ;;  %s383_s16 = smov (!%p198_p3, %s297_s16), 3 }
   0xc   : > { %316 = vset.pattern.permute.xlu0 %v325_v1  ;;  %v219_v2 = vld [vmem:[%s379_s2] sm:$0xff]  ;;  %s302_s21 = sshll.u32 %s383_s16, 2  ;;  %s303_s25 = sshll.u32 %s383_s16, 3 }
   0xd   : > { %215 = vperm.xlu0 %316, %v212_v0   ;;  %s201_s24 = scalar_lea.vmem %s377_s0, %s302_s21  ;;  %s205_s28 = scalar_lea.vmem %s380_s3, %s303_s25 }
   0xe   : > { %v210_v4 = vld [vmem:[%s201_s24] sm:$0xf]  ;;  %s209_s5 = scalar_lea.vmem %s381_s4, %s303_s25 }
   0xf   : > { %v211_v5 = vunpack.c.l.bf16 %v210_v4  ;;  %v229_v10 = vld [vmem:[%s205_s28] sm:$0xff] }
  0x15   : > { %222 = vperm.xlu0 %316, %v219_v2  }
  0x7f   : > { %v216_v3 = vpop.permute.xlu0 %215 }
  0x80   : > { %v218_v6 = vmul.f32 %v216_v3, %v211_v5 }
  0x87   : > { %v223_v7 = vpop.permute.xlu0 %222 }
  0x88   : > { %v225_v8 = vadd.f32 %v223_v7, %v218_v6 }
  0x8a   : > { %vm226_vm0 = vcmp.ge.f32.partialorder %v225_v8, 0.0  ;;  %v227_v9 = vmul.f32 0.01, %v225_v8 }
  0x8c   : > { %v228_v11 = vsel %vm226_vm0, %v225_v8, %v227_v9 }
  0x8d   : > { %v230_v12 = vadd.f32 %v229_v10, %v228_v11 }
  0x8f   : > { %231 = vst [vmem:[%s209_s5] sm:$0xff] %v230_v12 }
  0x90 PF: > { %s14_s15 = sadd.s32 1, %s323_s15  }
  0x91   : > { %p11_p4 = scmp.ge.s32.totalorder %s14_s15, 6  }
  0x93   :  { %13 = sbr.rel (!%p11_p4) target bundleno = 1 (0x1), region = 69 }

</bundles_post_ra>
